<compile_context>
chip_gen: v6e
topology: v6e:2x2x1
jax: 0.10.0
libtpu: 0.0.40
codegen_flags: <defaults>
</compile_context>

<pallas_src>
import functools

import jax
import jax.numpy as jnp
from jax.experimental import pallas as pl
from jax.experimental.pallas import tpu as pltpu

KSIZE = 7        # SpatialAttention kernel_size
PAD = 3          # padding for kernel_size 7
RATIO = 16       # ChannelAttention reduction ratio
ROWBLK = 8       # conv row-block (sublane quantum) -> vreg-resident accumulator
VMEM_LIMIT = 48 * 1024 * 1024   # v7x-safe scoped VMEM limit with headroom


def _pick_tile(n, cap, quantum):
    """Largest multiple of `quantum` that divides n and is <= cap (else n)."""
    if n <= cap:
        return n
    d = (cap // quantum) * quantum
    while d >= quantum:
        if n % d == 0:
            return d
        d -= quantum
    return n


# --------------------------------------------------------------------------
# Kernel 1: channel pools + spatial maps + 7x7 conv + relu->sigmoid (+1 fold).
# --------------------------------------------------------------------------
def _stats_kernel(x_ref, wsa_ref, pools_ref, att_ref, pad_ref, *, img_h, img_w):
    # x_ref:    (1, C, HW)    input, spatial flattened (lane-dense load)
    # wsa_ref:  SMEM (2*7*7,) conv weight, [avg-map taps ; max-map taps]
    # pools_ref:(1, C, 2) f32 [:, :, 0]=avg, [:, :, 1]=max   (tiny output)
    # att_ref:  (1, 1, H, W) f32  = sigmoid(relu(conv)) + 1
    # pad_ref:  VMEM (2, H+2*PAD, WP) zero-padded 2-D [cmean ; cmax] maps
    x = x_ref[0].astype(jnp.float32)                       # (C, HW)
    hw = x.shape[1]

    # ---- channel pools: exact f32 VPU reductions (no MXU detour) ----
    pools_ref[0, :, 0:1] = jnp.sum(x, axis=1, keepdims=True) * (1.0 / float(hw))
    pools_ref[0, :, 1:2] = jnp.max(x, axis=1, keepdims=True)

    # ---- spatial maps (reduce over channels) ----
    cmean = jnp.mean(x, axis=0, keepdims=True)             # (1, HW)
    cmax = jnp.max(x, axis=0, keepdims=True)               # (1, HW)

    # Zero the padded-scratch flanks only once: the interior is fully
    # overwritten every step and the flanks are never dirtied.  Safe because
    # the batch grid axis is "arbitrary" (sequential), so step 0 runs first
    # on the (single) core that owns this scratch.
    @pl.when(pl.program_id(0) == 0)
    def _init():
        pad_ref[...] = jnp.zeros_like(pad_ref)

    # Write the maps row-by-row into the 2-D zero-padded scratch (row stride
    # WP is a multiple of 128, so the conv's row offsets need no lane shifts).
    for r in range(img_h):
        s = r * img_w
        pad_ref[0, PAD + r:PAD + r + 1, PAD:PAD + img_w] = cmean[:, s:s + img_w]
        pad_ref[1, PAD + r:PAD + r + 1, PAD:PAD + img_w] = cmax[:, s:s + img_w]

    # ---- 7x7 conv: only 7 lane-offset slices per map (one per column
    # offset); the 7 row offsets are value (sublane) slices of the strip.
    # Row-blocked so the accumulator stays in vregs at any image size. ----
    for r0 in range(0, img_h, ROWBLK):
        rb = min(ROWBLK, img_h - r0)
        total = jnp.zeros((rb, img_w), jnp.float32)
        for oj in range(-PAD, PAD + 1):
            c0 = PAD + oj
            strip_a = pad_ref[0, r0:r0 + rb + 2 * PAD, c0:c0 + img_w]
            strip_m = pad_ref[1, r0:r0 + rb + 2 * PAD, c0:c0 + img_w]
            for oi in range(-PAD, PAD + 1):
                ki = (oi + PAD) * KSIZE + (oj + PAD)
                r1 = PAD + oi
                total = total + (wsa_ref[ki] * strip_a[r1:r1 + rb, :]
                                 + wsa_ref[KSIZE * KSIZE + ki]
                                 * strip_m[r1:r1 + rb, :])
        # relu -> sigmoid, residual folded: att' = att + 1
        att_ref[0, 0, r0:r0 + rb, :] = (
            jax.nn.sigmoid(jnp.maximum(total, 0.0)) + 1.0)


def _stats(x_flat, wsa_flat, img_h, img_w):
    B, C, HW = x_flat.shape
    n_w = wsa_flat.shape[0]
    hp = img_h + 2 * PAD
    wp = pl.cdiv(img_w + 2 * PAD, 128) * 128
    kernel = functools.partial(_stats_kernel, img_h=img_h, img_w=img_w)
    return pl.pallas_call(
        kernel,
        out_shape=(jax.ShapeDtypeStruct((B, C, 2), jnp.float32),
                   jax.ShapeDtypeStruct((B, 1, img_h, img_w), jnp.float32)),
        grid=(B,),
        in_specs=[
            pl.BlockSpec((1, C, HW), lambda b: (b, 0, 0)),
            pl.BlockSpec((n_w,), lambda b: (0,),
                         memory_space=pltpu.MemorySpace.SMEM),
        ],
        out_specs=(
            pl.BlockSpec((1, C, 2), lambda b: (b, 0, 0)),
            pl.BlockSpec((1, 1, img_h, img_w), lambda b: (b, 0, 0, 0)),
        ),
        scratch_shapes=[pltpu.VMEM((2, hp, wp), jnp.float32)],
        compiler_params=pltpu.CompilerParams(
            # "arbitrary": scratch-flank init persists (and this pass is
            # HBM-read-bound, so megacore sharding would not help anyway).
            dimension_semantics=("arbitrary",),
            vmem_limit_bytes=VMEM_LIMIT),
    )(x_flat, wsa_flat)


# --------------------------------------------------------------------------
# Kernel 2: purely elementwise apply, tiled over (B, C-tiles, HW-tiles).
# --------------------------------------------------------------------------
def _apply_kernel(x_ref, gate_ref, att_ref, out_ref):
    # x_ref:    (1, Ct, St)   gate_ref: (1, Ct, 1) f32 (= relu(mlp)+1)
    # att_ref:  (1, 1, St) f32 (= sigmoid(relu(conv))+1)
    # out_ref:  (1, 2, Ct, St)  [0]=channel-attention, [1]=spatial-attention
    x = x_ref[0].astype(jnp.float32)                       # (Ct, St)
    out_ref[0, 0, :, :] = (x * gate_ref[0]).astype(out_ref.dtype)
    out_ref[0, 1, :, :] = (x * att_ref[0]).astype(out_ref.dtype)


def _attention_apply(x_flat, gate, att_flat):
    B, C, HW = x_flat.shape
    ct = _pick_tile(C, 128, 8)
    st = _pick_tile(HW, 2048, 128)
    grid = (B, C // ct, HW // st)
    return pl.pallas_call(
        _apply_kernel,
        out_shape=jax.ShapeDtypeStruct((B, 2, C, HW), x_flat.dtype),
        grid=grid,
        in_specs=[
            pl.BlockSpec((1, ct, st), lambda b, c, s: (b, c, s)),
            pl.BlockSpec((1, ct, 1), lambda b, c, s: (b, c, 0)),
            pl.BlockSpec((1, 1, st), lambda b, c, s: (b, 0, s)),
        ],
        out_specs=pl.BlockSpec((1, 2, ct, st), lambda b, c, s: (b, 0, c, s)),
        compiler_params=pltpu.CompilerParams(
            dimension_semantics=("parallel", "parallel", "parallel"),
            vmem_limit_bytes=VMEM_LIMIT),
    )(x_flat, gate, att_flat)


# --------------------------------------------------------------------------
# BasicBlock forward
# --------------------------------------------------------------------------
def basic_block_forward(x, w1, w2, w_sa):
    """x: (B, C, H, W); w1: (C//16, C); w2: (C, C//16); w_sa: (2, 7, 7)."""
    B, C, H, W = x.shape
    HW = H * W
    x_flat = x.reshape(B, C, HW)              # free reshape (trailing dims)

    pooled, att = _stats(x_flat, w_sa.reshape(-1).astype(jnp.float32), H, W)
    avg_p = pooled[:, :, 0]                   # (B, C) f32
    max_p = pooled[:, :, 1]                   # (B, C) f32

    def mlp(v):                               # 1x1 convs on (B, C, 1, 1)
        hdn = v @ w1.T                        # fc1 (no bias)
        hdn = jax.nn.gelu(hdn, approximate=False)   # exact GELU (torch default)
        return hdn @ w2.T                     # fc2 (no bias)

    # Residual fold: gate' = relu(avg_out + max_out) + 1  (kept in f32).
    gate = (jax.nn.relu(mlp(avg_p) + mlp(max_p)) + 1.0).astype(jnp.float32)
    gate = gate.reshape(B, C, 1)

    att_flat = att.reshape(B, 1, HW)          # f32, already includes the +1

    out = _attention_apply(x_flat, gate, att_flat)     # (B, 2, C, HW)
    return out.reshape(B, 2 * C, H, W)        # free reshape == channel concat


# --------------------------------------------------------------------------
# Pure-JAX reference (mirrors the PyTorch module) for verification.
# --------------------------------------------------------------------------
def _reference(x, w1, w2, w_sa):
    avg = jnp.mean(x, axis=(2, 3))
    mx = jnp.max(x, axis=(2, 3))

    def mlp(v):
        return jax.nn.gelu(v @ w1.T, approximate=False) @ w2.T

    gate = jax.nn.relu(mlp(avg) + mlp(mx))
    y_ca = x * gate[:, :, None, None] + x

    cmean = jnp.mean(x, axis=1, keepdims=True)
    cmax = jnp.max(x, axis=1, keepdims=True)
    inp = jnp.concatenate([cmean, cmax], axis=1)              # (B, 2, H, W)
    conv = jax.lax.conv_general_dilated(
        inp, w_sa[None], window_strides=(1, 1),
        padding=((PAD, PAD), (PAD, PAD)),
        dimension_numbers=("NCHW", "OIHW", "NCHW"))           # (B, 1, H, W)
    att = jax.nn.sigmoid(jax.nn.relu(conv))
    y_sa = x * att + x
    return jnp.concatenate([y_ca, y_sa], axis=1)


if __name__ == "__main__":
    B, C, H, W = 2, 32, 16, 16        # planes=32 -> hidden = planes // 16 = 2
    key = jax.random.PRNGKey(0)
    kx, k1, k2, k3 = jax.random.split(key, 4)

    x = jax.random.normal(kx, (B, C, H, W), jnp.float32)
    w1 = jax.random.normal(k1, (C // RATIO, C), jnp.float32) * 0.3   # fc1
    w2 = jax.random.normal(k2, (C, C // RATIO), jnp.float32) * 0.3   # fc2
    w_sa = jax.random.normal(k3, (2, KSIZE, KSIZE), jnp.float32) * 0.2

    out = jax.jit(basic_block_forward)(x, w1, w2, w_sa)
    out = jax.block_until_ready(out)

    ref = _reference(x, w1, w2, w_sa)
    assert out.shape == (B, 2 * C, H, W), out.shape
    err = float(jnp.max(jnp.abs(out - ref)))
    if not (err == err) or err > 1e-3:   # NaN check + tolerance (exact f32 pools)
        raise AssertionError(f"mismatch vs reference: max abs err = {err}")

    print("KERNEL_OK")
</pallas_src>

<mosaic_0001>
module attributes {stable_mosaic.version = 11 : i64} {
  func.func @_stats_kernel(%arg0: i32, %arg1: memref<1x32x256xf32, #tpu.memory_space<vmem>>, %arg2: memref<98xf32, #tpu.memory_space<smem>>, %arg3: memref<1x32x2xf32, #tpu.memory_space<vmem>>, %arg4: memref<1x1x16x16xf32, #tpu.memory_space<vmem>>, %arg5: memref<2x22x128xf32, #tpu.memory_space<vmem>>) attributes {dimension_semantics = [#tpu.dimension_semantics<arbitrary>], iteration_bounds = array<i64: 2>, scalar_prefetch = 0 : i64, scratch_operands = 1 : i64, tpu.core_type = #tpu.core_type<tc>, window_params = [{transform_indices = @transform_0, window_bounds = array<i64: 1, 32, 256>}, {transform_indices = @transform_1, window_bounds = array<i64: 98>}, {transform_indices = @transform_2, window_bounds = array<i64: 1, 32, 2>}, {transform_indices = @transform_3, window_bounds = array<i64: 1, 1, 16, 16>}]} {
    %c0 = arith.constant 0 : index
    %c0_0 = arith.constant 0 : index
    %c0_1 = arith.constant 0 : index
    %0 = vector.load %arg1[%c0, %c0_0, %c0_1] : memref<1x32x256xf32, #tpu.memory_space<vmem>>, vector<1x32x256xf32>
    %1 = vector.shape_cast %0 : vector<1x32x256xf32> to vector<32x256xf32>
    %cst = arith.constant dense<0.000000e+00> : vector<32xf32>
    %2 = vector.multi_reduction <add>, %1, %cst [1] : vector<32x256xf32> to vector<32xf32>
    %3 = vector.shape_cast %2 : vector<32xf32> to vector<32x1xf32>
    %cst_2 = arith.constant 3.906250e-03 : f32
    %4 = vector.broadcast %cst_2 : f32 to vector<32x1xf32>
    %5 = arith.mulf %3, %4 : vector<32x1xf32>
    %c0_3 = arith.constant 0 : index
    %c0_4 = arith.constant 0 : index
    %c0_5 = arith.constant 0 : index
    %6 = vector.load %arg3[%c0_3, %c0_4, %c0_5] : memref<1x32x2xf32, #tpu.memory_space<vmem>>, vector<1x32x1xf32>
    %7 = vector.shape_cast %6 : vector<1x32x1xf32> to vector<32x1xf32>
    %8 = vector.shape_cast %5 : vector<32x1xf32> to vector<1x32x1xf32>
    tpu.vector_store %arg3[%c0_3, %c0_4, %c0_5], %8 {strides = array<i32>} : memref<1x32x2xf32, #tpu.memory_space<vmem>>, vector<1x32x1xf32>,
    %cst_6 = arith.constant dense<0xFF800000> : vector<32xf32>
    %9 = vector.multi_reduction <maximumf>, %1, %cst_6 [1] : vector<32x256xf32> to vector<32xf32>
    %10 = vector.shape_cast %9 : vector<32xf32> to vector<32x1xf32>
    %c0_7 = arith.constant 0 : index
    %c0_8 = arith.constant 0 : index
    %c1 = arith.constant 1 : index
    %11 = vector.load %arg3[%c0_7, %c0_8, %c1] : memref<1x32x2xf32, #tpu.memory_space<vmem>>, vector<1x32x1xf32>
    %12 = vector.shape_cast %11 : vector<1x32x1xf32> to vector<32x1xf32>
    %13 = vector.shape_cast %10 : vector<32x1xf32> to vector<1x32x1xf32>
    tpu.vector_store %arg3[%c0_7, %c0_8, %c1], %13 {strides = array<i32>} : memref<1x32x2xf32, #tpu.memory_space<vmem>>, vector<1x32x1xf32>,
    %cst_9 = arith.constant dense<0.000000e+00> : vector<256xf32>
    %14 = vector.multi_reduction <add>, %1, %cst_9 [0] : vector<32x256xf32> to vector<256xf32>
    %15 = vector.shape_cast %14 : vector<256xf32> to vector<1x256xf32>
    %cst_10 = arith.constant 3.200000e+01 : f32
    %16 = vector.broadcast %cst_10 : f32 to vector<1x256xf32>
    %17 = arith.divf %15, %16 : vector<1x256xf32>
    %cst_11 = arith.constant dense<0xFF800000> : vector<256xf32>
    %18 = vector.multi_reduction <maximumf>, %1, %cst_11 [0] : vector<32x256xf32> to vector<256xf32>
    %19 = vector.shape_cast %18 : vector<256xf32> to vector<1x256xf32>
    %c0_i32 = arith.constant 0 : i32
    %20 = arith.cmpi eq, %arg0, %c0_i32 : i32
    %21 = arith.extui %20 : i1 to i32
    %c0_i32_12 = arith.constant 0 : i32
    %22 = arith.cmpi ne, %21, %c0_i32_12 : i32
    scf.if %22 {
      %cst_309 = arith.constant 0.000000e+00 : f32
      %1213 = vector.broadcast %cst_309 : f32 to vector<2x22x128xf32>
      %c0_310 = arith.constant 0 : index
      %c0_311 = arith.constant 0 : index
      %c0_312 = arith.constant 0 : index
      %1214 = vector.load %arg5[%c0_310, %c0_311, %c0_312] : memref<2x22x128xf32, #tpu.memory_space<vmem>>, vector<2x22x128xf32>
      tpu.vector_store %arg5[%c0_310, %c0_311, %c0_312], %1213 {strides = array<i32>} : memref<2x22x128xf32, #tpu.memory_space<vmem>>, vector<2x22x128xf32>,
    } else {
    }
    %23 = vector.extract_strided_slice %17 {offsets = [0, 0], sizes = [1, 16], strides = [1, 1]} : vector<1x256xf32> to vector<1x16xf32>
    %c0_13 = arith.constant 0 : index
    %c3 = arith.constant 3 : index
    %c3_14 = arith.constant 3 : index
    %24 = vector.load %arg5[%c0_13, %c3, %c3_14] : memref<2x22x128xf32, #tpu.memory_space<vmem>>, vector<1x1x16xf32>
    %25 = vector.shape_cast %24 : vector<1x1x16xf32> to vector<1x16xf32>
    %26 = vector.shape_cast %23 : vector<1x16xf32> to vector<1x1x16xf32>
    tpu.vector_store %arg5[%c0_13, %c3, %c3_14], %26 {strides = array<i32>} : memref<2x22x128xf32, #tpu.memory_space<vmem>>, vector<1x1x16xf32>,
    %27 = vector.extract_strided_slice %19 {offsets = [0, 0], sizes = [1, 16], strides = [1, 1]} : vector<1x256xf32> to vector<1x16xf32>
    %c1_15 = arith.constant 1 : index
    %c3_16 = arith.constant 3 : index
    %c3_17 = arith.constant 3 : index
    %28 = vector.load %arg5[%c1_15, %c3_16, %c3_17] : memref<2x22x128xf32, #tpu.memory_space<vmem>>, vector<1x1x16xf32>
    %29 = vector.shape_cast %28 : vector<1x1x16xf32> to vector<1x16xf32>
    %30 = vector.shape_cast %27 : vector<1x16xf32> to vector<1x1x16xf32>
    tpu.vector_store %arg5[%c1_15, %c3_16, %c3_17], %30 {strides = array<i32>} : memref<2x22x128xf32, #tpu.memory_space<vmem>>, vector<1x1x16xf32>,
    %31 = vector.extract_strided_slice %17 {offsets = [0, 16], sizes = [1, 16], strides = [1, 1]} : vector<1x256xf32> to vector<1x16xf32>
    %c0_18 = arith.constant 0 : index
    %c4 = arith.constant 4 : index
    %c3_19 = arith.constant 3 : index
    %32 = vector.load %arg5[%c0_18, %c4, %c3_19] : memref<2x22x128xf32, #tpu.memory_space<vmem>>, vector<1x1x16xf32>
    %33 = vector.shape_cast %32 : vector<1x1x16xf32> to vector<1x16xf32>
    %34 = vector.shape_cast %31 : vector<1x16xf32> to vector<1x1x16xf32>
    tpu.vector_store %arg5[%c0_18, %c4, %c3_19], %34 {strides = array<i32>} : memref<2x22x128xf32, #tpu.memory_space<vmem>>, vector<1x1x16xf32>,
    %35 = vector.extract_strided_slice %19 {offsets = [0, 16], sizes = [1, 16], strides = [1, 1]} : vector<1x256xf32> to vector<1x16xf32>
    %c1_20 = arith.constant 1 : index
    %c4_21 = arith.constant 4 : index
    %c3_22 = arith.constant 3 : index
    %36 = vector.load %arg5[%c1_20, %c4_21, %c3_22] : memref<2x22x128xf32, #tpu.memory_space<vmem>>, vector<1x1x16xf32>
    %37 = vector.shape_cast %36 : vector<1x1x16xf32> to vector<1x16xf32>
    %38 = vector.shape_cast %35 : vector<1x16xf32> to vector<1x1x16xf32>
    tpu.vector_store %arg5[%c1_20, %c4_21, %c3_22], %38 {strides = array<i32>} : memref<2x22x128xf32, #tpu.memory_space<vmem>>, vector<1x1x16xf32>,
    %39 = vector.extract_strided_slice %17 {offsets = [0, 32], sizes = [1, 16], strides = [1, 1]} : vector<1x256xf32> to vector<1x16xf32>
    %c0_23 = arith.constant 0 : index
    %c5 = arith.constant 5 : index
    %c3_24 = arith.constant 3 : index
    %40 = vector.load %arg5[%c0_23, %c5, %c3_24] : memref<2x22x128xf32, #tpu.memory_space<vmem>>, vector<1x1x16xf32>
    %41 = vector.shape_cast %40 : vector<1x1x16xf32> to vector<1x16xf32>
    %42 = vector.shape_cast %39 : vector<1x16xf32> to vector<1x1x16xf32>
    tpu.vector_store %arg5[%c0_23, %c5, %c3_24], %42 {strides = array<i32>} : memref<2x22x128xf32, #tpu.memory_space<vmem>>, vector<1x1x16xf32>,
    %43 = vector.extract_strided_slice %19 {offsets = [0, 32], sizes = [1, 16], strides = [1, 1]} : vector<1x256xf32> to vector<1x16xf32>
    %c1_25 = arith.constant 1 : index
    %c5_26 = arith.constant 5 : index
    %c3_27 = arith.constant 3 : index
    %44 = vector.load %arg5[%c1_25, %c5_26, %c3_27] : memref<2x22x128xf32, #tpu.memory_space<vmem>>, vector<1x1x16xf32>
    %45 = vector.shape_cast %44 : vector<1x1x16xf32> to vector<1x16xf32>
    %46 = vector.shape_cast %43 : vector<1x16xf32> to vector<1x1x16xf32>
    tpu.vector_store %arg5[%c1_25, %c5_26, %c3_27], %46 {strides = array<i32>} : memref<2x22x128xf32, #tpu.memory_space<vmem>>, vector<1x1x16xf32>,
    %47 = vector.extract_strided_slice %17 {offsets = [0, 48], sizes = [1, 16], strides = [1, 1]} : vector<1x256xf32> to vector<1x16xf32>
    %c0_28 = arith.constant 0 : index
    %c6 = arith.constant 6 : index
    %c3_29 = arith.constant 3 : index
    %48 = vector.load %arg5[%c0_28, %c6, %c3_29] : memref<2x22x128xf32, #tpu.memory_space<vmem>>, vector<1x1x16xf32>
    %49 = vector.shape_cast %48 : vector<1x1x16xf32> to vector<1x16xf32>
    %50 = vector.shape_cast %47 : vector<1x16xf32> to vector<1x1x16xf32>
    tpu.vector_store %arg5[%c0_28, %c6, %c3_29], %50 {strides = array<i32>} : memref<2x22x128xf32, #tpu.memory_space<vmem>>, vector<1x1x16xf32>,
    %51 = vector.extract_strided_slice %19 {offsets = [0, 48], sizes = [1, 16], strides = [1, 1]} : vector<1x256xf32> to vector<1x16xf32>
    %c1_30 = arith.constant 1 : index
    %c6_31 = arith.constant 6 : index
    %c3_32 = arith.constant 3 : index
    %52 = vector.load %arg5[%c1_30, %c6_31, %c3_32] : memref<2x22x128xf32, #tpu.memory_space<vmem>>, vector<1x1x16xf32>
    %53 = vector.shape_cast %52 : vector<1x1x16xf32> to vector<1x16xf32>
    %54 = vector.shape_cast %51 : vector<1x16xf32> to vector<1x1x16xf32>
    tpu.vector_store %arg5[%c1_30, %c6_31, %c3_32], %54 {strides = array<i32>} : memref<2x22x128xf32, #tpu.memory_space<vmem>>, vector<1x1x16xf32>,
    %55 = vector.extract_strided_slice %17 {offsets = [0, 64], sizes = [1, 16], strides = [1, 1]} : vector<1x256xf32> to vector<1x16xf32>
    %c0_33 = arith.constant 0 : index
    %c7 = arith.constant 7 : index
    %c3_34 = arith.constant 3 : index
    %56 = vector.load %arg5[%c0_33, %c7, %c3_34] : memref<2x22x128xf32, #tpu.memory_space<vmem>>, vector<1x1x16xf32>
    %57 = vector.shape_cast %56 : vector<1x1x16xf32> to vector<1x16xf32>
    %58 = vector.shape_cast %55 : vector<1x16xf32> to vector<1x1x16xf32>
    tpu.vector_store %arg5[%c0_33, %c7, %c3_34], %58 {strides = array<i32>} : memref<2x22x128xf32, #tpu.memory_space<vmem>>, vector<1x1x16xf32>,
    %59 = vector.extract_strided_slice %19 {offsets = [0, 64], sizes = [1, 16], strides = [1, 1]} : vector<1x256xf32> to vector<1x16xf32>
    %c1_35 = arith.constant 1 : index
    %c7_36 = arith.constant 7 : index
    %c3_37 = arith.constant 3 : index
    %60 = vector.load %arg5[%c1_35, %c7_36, %c3_37] : memref<2x22x128xf32, #tpu.memory_space<vmem>>, vector<1x1x16xf32>
    %61 = vector.shape_cast %60 : vector<1x1x16xf32> to vector<1x16xf32>
    %62 = vector.shape_cast %59 : vector<1x16xf32> to vector<1x1x16xf32>
    tpu.vector_store %arg5[%c1_35, %c7_36, %c3_37], %62 {strides = array<i32>} : memref<2x22x128xf32, #tpu.memory_space<vmem>>, vector<1x1x16xf32>,
    %63 = vector.extract_strided_slice %17 {offsets = [0, 80], sizes = [1, 16], strides = [1, 1]} : vector<1x256xf32> to vector<1x16xf32>
    %c0_38 = arith.constant 0 : index
    %c8 = arith.constant 8 : index
    %c3_39 = arith.constant 3 : index
    %64 = vector.load %arg5[%c0_38, %c8, %c3_39] : memref<2x22x128xf32, #tpu.memory_space<vmem>>, vector<1x1x16xf32>
    %65 = vector.shape_cast %64 : vector<1x1x16xf32> to vector<1x16xf32>
    %66 = vector.shape_cast %63 : vector<1x16xf32> to vector<1x1x16xf32>
    tpu.vector_store %arg5[%c0_38, %c8, %c3_39], %66 {strides = array<i32>} : memref<2x22x128xf32, #tpu.memory_space<vmem>>, vector<1x1x16xf32>,
    %67 = vector.extract_strided_slice %19 {offsets = [0, 80], sizes = [1, 16], strides = [1, 1]} : vector<1x256xf32> to vector<1x16xf32>
    %c1_40 = arith.constant 1 : index
    %c8_41 = arith.constant 8 : index
    %c3_42 = arith.constant 3 : index
    %68 = vector.load %arg5[%c1_40, %c8_41, %c3_42] : memref<2x22x128xf32, #tpu.memory_space<vmem>>, vector<1x1x16xf32>
    %69 = vector.shape_cast %68 : vector<1x1x16xf32> to vector<1x16xf32>
    %70 = vector.shape_cast %67 : vector<1x16xf32> to vector<1x1x16xf32>
    tpu.vector_store %arg5[%c1_40, %c8_41, %c3_42], %70 {strides = array<i32>} : memref<2x22x128xf32, #tpu.memory_space<vmem>>, vector<1x1x16xf32>,
    %71 = vector.extract_strided_slice %17 {offsets = [0, 96], sizes = [1, 16], strides = [1, 1]} : vector<1x256xf32> to vector<1x16xf32>
    %c0_43 = arith.constant 0 : index
    %c9 = arith.constant 9 : index
    %c3_44 = arith.constant 3 : index
    %72 = vector.load %arg5[%c0_43, %c9, %c3_44] : memref<2x22x128xf32, #tpu.memory_space<vmem>>, vector<1x1x16xf32>
    %73 = vector.shape_cast %72 : vector<1x1x16xf32> to vector<1x16xf32>
    %74 = vector.shape_cast %71 : vector<1x16xf32> to vector<1x1x16xf32>
    tpu.vector_store %arg5[%c0_43, %c9, %c3_44], %74 {strides = array<i32>} : memref<2x22x128xf32, #tpu.memory_space<vmem>>, vector<1x1x16xf32>,
    %75 = vector.extract_strided_slice %19 {offsets = [0, 96], sizes = [1, 16], strides = [1, 1]} : vector<1x256xf32> to vector<1x16xf32>
    %c1_45 = arith.constant 1 : index
    %c9_46 = arith.constant 9 : index
    %c3_47 = arith.constant 3 : index
    %76 = vector.load %arg5[%c1_45, %c9_46, %c3_47] : memref<2x22x128xf32, #tpu.memory_space<vmem>>, vector<1x1x16xf32>
    %77 = vector.shape_cast %76 : vector<1x1x16xf32> to vector<1x16xf32>
    %78 = vector.shape_cast %75 : vector<1x16xf32> to vector<1x1x16xf32>
    tpu.vector_store %arg5[%c1_45, %c9_46, %c3_47], %78 {strides = array<i32>} : memref<2x22x128xf32, #tpu.memory_space<vmem>>, vector<1x1x16xf32>,
    %79 = vector.extract_strided_slice %17 {offsets = [0, 112], sizes = [1, 16], strides = [1, 1]} : vector<1x256xf32> to vector<1x16xf32>
    %c0_48 = arith.constant 0 : index
    %c10 = arith.constant 10 : index
    %c3_49 = arith.constant 3 : index
    %80 = vector.load %arg5[%c0_48, %c10, %c3_49] : memref<2x22x128xf32, #tpu.memory_space<vmem>>, vector<1x1x16xf32>
    %81 = vector.shape_cast %80 : vector<1x1x16xf32> to vector<1x16xf32>
    %82 = vector.shape_cast %79 : vector<1x16xf32> to vector<1x1x16xf32>
    tpu.vector_store %arg5[%c0_48, %c10, %c3_49], %82 {strides = array<i32>} : memref<2x22x128xf32, #tpu.memory_space<vmem>>, vector<1x1x16xf32>,
    %83 = vector.extract_strided_slice %19 {offsets = [0, 112], sizes = [1, 16], strides = [1, 1]} : vector<1x256xf32> to vector<1x16xf32>
    %c1_50 = arith.constant 1 : index
    %c10_51 = arith.constant 10 : index
    %c3_52 = arith.constant 3 : index
    %84 = vector.load %arg5[%c1_50, %c10_51, %c3_52] : memref<2x22x128xf32, #tpu.memory_space<vmem>>, vector<1x1x16xf32>
    %85 = vector.shape_cast %84 : vector<1x1x16xf32> to vector<1x16xf32>
    %86 = vector.shape_cast %83 : vector<1x16xf32> to vector<1x1x16xf32>
    tpu.vector_store %arg5[%c1_50, %c10_51, %c3_52], %86 {strides = array<i32>} : memref<2x22x128xf32, #tpu.memory_space<vmem>>, vector<1x1x16xf32>,
    %87 = vector.extract_strided_slice %17 {offsets = [0, 128], sizes = [1, 16], strides = [1, 1]} : vector<1x256xf32> to vector<1x16xf32>
    %c0_53 = arith.constant 0 : index
    %c11 = arith.constant 11 : index
    %c3_54 = arith.constant 3 : index
    %88 = vector.load %arg5[%c0_53, %c11, %c3_54] : memref<2x22x128xf32, #tpu.memory_space<vmem>>, vector<1x1x16xf32>
    %89 = vector.shape_cast %88 : vector<1x1x16xf32> to vector<1x16xf32>
    %90 = vector.shape_cast %87 : vector<1x16xf32> to vector<1x1x16xf32>
    tpu.vector_store %arg5[%c0_53, %c11, %c3_54], %90 {strides = array<i32>} : memref<2x22x128xf32, #tpu.memory_space<vmem>>, vector<1x1x16xf32>,
    %91 = vector.extract_strided_slice %19 {offsets = [0, 128], sizes = [1, 16], strides = [1, 1]} : vector<1x256xf32> to vector<1x16xf32>
    %c1_55 = arith.constant 1 : index
    %c11_56 = arith.constant 11 : index
    %c3_57 = arith.constant 3 : index
    %92 = vector.load %arg5[%c1_55, %c11_56, %c3_57] : memref<2x22x128xf32, #tpu.memory_space<vmem>>, vector<1x1x16xf32>
    %93 = vector.shape_cast %92 : vector<1x1x16xf32> to vector<1x16xf32>
    %94 = vector.shape_cast %91 : vector<1x16xf32> to vector<1x1x16xf32>
    tpu.vector_store %arg5[%c1_55, %c11_56, %c3_57], %94 {strides = array<i32>} : memref<2x22x128xf32, #tpu.memory_space<vmem>>, vector<1x1x16xf32>,
    %95 = vector.extract_strided_slice %17 {offsets = [0, 144], sizes = [1, 16], strides = [1, 1]} : vector<1x256xf32> to vector<1x16xf32>
    %c0_58 = arith.constant 0 : index
    %c12 = arith.constant 12 : index
    %c3_59 = arith.constant 3 : index
    %96 = vector.load %arg5[%c0_58, %c12, %c3_59] : memref<2x22x128xf32, #tpu.memory_space<vmem>>, vector<1x1x16xf32>
    %97 = vector.shape_cast %96 : vector<1x1x16xf32> to vector<1x16xf32>
    %98 = vector.shape_cast %95 : vector<1x16xf32> to vector<1x1x16xf32>
    tpu.vector_store %arg5[%c0_58, %c12, %c3_59], %98 {strides = array<i32>} : memref<2x22x128xf32, #tpu.memory_space<vmem>>, vector<1x1x16xf32>,
    %99 = vector.extract_strided_slice %19 {offsets = [0, 144], sizes = [1, 16], strides = [1, 1]} : vector<1x256xf32> to vector<1x16xf32>
    %c1_60 = arith.constant 1 : index
    %c12_61 = arith.constant 12 : index
    %c3_62 = arith.constant 3 : index
    %100 = vector.load %arg5[%c1_60, %c12_61, %c3_62] : memref<2x22x128xf32, #tpu.memory_space<vmem>>, vector<1x1x16xf32>
    %101 = vector.shape_cast %100 : vector<1x1x16xf32> to vector<1x16xf32>
    %102 = vector.shape_cast %99 : vector<1x16xf32> to vector<1x1x16xf32>
    tpu.vector_store %arg5[%c1_60, %c12_61, %c3_62], %102 {strides = array<i32>} : memref<2x22x128xf32, #tpu.memory_space<vmem>>, vector<1x1x16xf32>,
    %103 = vector.extract_strided_slice %17 {offsets = [0, 160], sizes = [1, 16], strides = [1, 1]} : vector<1x256xf32> to vector<1x16xf32>
    %c0_63 = arith.constant 0 : index
    %c13 = arith.constant 13 : index
    %c3_64 = arith.constant 3 : index
    %104 = vector.load %arg5[%c0_63, %c13, %c3_64] : memref<2x22x128xf32, #tpu.memory_space<vmem>>, vector<1x1x16xf32>
    %105 = vector.shape_cast %104 : vector<1x1x16xf32> to vector<1x16xf32>
    %106 = vector.shape_cast %103 : vector<1x16xf32> to vector<1x1x16xf32>
    tpu.vector_store %arg5[%c0_63, %c13, %c3_64], %106 {strides = array<i32>} : memref<2x22x128xf32, #tpu.memory_space<vmem>>, vector<1x1x16xf32>,
    %107 = vector.extract_strided_slice %19 {offsets = [0, 160], sizes = [1, 16], strides = [1, 1]} : vector<1x256xf32> to vector<1x16xf32>
    %c1_65 = arith.constant 1 : index
    %c13_66 = arith.constant 13 : index
    %c3_67 = arith.constant 3 : index
    %108 = vector.load %arg5[%c1_65, %c13_66, %c3_67] : memref<2x22x128xf32, #tpu.memory_space<vmem>>, vector<1x1x16xf32>
    %109 = vector.shape_cast %108 : vector<1x1x16xf32> to vector<1x16xf32>
    %110 = vector.shape_cast %107 : vector<1x16xf32> to vector<1x1x16xf32>
    tpu.vector_store %arg5[%c1_65, %c13_66, %c3_67], %110 {strides = array<i32>} : memref<2x22x128xf32, #tpu.memory_space<vmem>>, vector<1x1x16xf32>,
    %111 = vector.extract_strided_slice %17 {offsets = [0, 176], sizes = [1, 16], strides = [1, 1]} : vector<1x256xf32> to vector<1x16xf32>
    %c0_68 = arith.constant 0 : index
    %c14 = arith.constant 14 : index
    %c3_69 = arith.constant 3 : index
    %112 = vector.load %arg5[%c0_68, %c14, %c3_69] : memref<2x22x128xf32, #tpu.memory_space<vmem>>, vector<1x1x16xf32>
    %113 = vector.shape_cast %112 : vector<1x1x16xf32> to vector<1x16xf32>
    %114 = vector.shape_cast %111 : vector<1x16xf32> to vector<1x1x16xf32>
    tpu.vector_store %arg5[%c0_68, %c14, %c3_69], %114 {strides = array<i32>} : memref<2x22x128xf32, #tpu.memory_space<vmem>>, vector<1x1x16xf32>,
    %115 = vector.extract_strided_slice %19 {offsets = [0, 176], sizes = [1, 16], strides = [1, 1]} : vector<1x256xf32> to vector<1x16xf32>
    %c1_70 = arith.constant 1 : index
    %c14_71 = arith.constant 14 : index
    %c3_72 = arith.constant 3 : index
    %116 = vector.load %arg5[%c1_70, %c14_71, %c3_72] : memref<2x22x128xf32, #tpu.memory_space<vmem>>, vector<1x1x16xf32>
    %117 = vector.shape_cast %116 : vector<1x1x16xf32> to vector<1x16xf32>
    %118 = vector.shape_cast %115 : vector<1x16xf32> to vector<1x1x16xf32>
    tpu.vector_store %arg5[%c1_70, %c14_71, %c3_72], %118 {strides = array<i32>} : memref<2x22x128xf32, #tpu.memory_space<vmem>>, vector<1x1x16xf32>,
    %119 = vector.extract_strided_slice %17 {offsets = [0, 192], sizes = [1, 16], strides = [1, 1]} : vector<1x256xf32> to vector<1x16xf32>
    %c0_73 = arith.constant 0 : index
    %c15 = arith.constant 15 : index
    %c3_74 = arith.constant 3 : index
    %120 = vector.load %arg5[%c0_73, %c15, %c3_74] : memref<2x22x128xf32, #tpu.memory_space<vmem>>, vector<1x1x16xf32>
    %121 = vector.shape_cast %120 : vector<1x1x16xf32> to vector<1x16xf32>
    %122 = vector.shape_cast %119 : vector<1x16xf32> to vector<1x1x16xf32>
    tpu.vector_store %arg5[%c0_73, %c15, %c3_74], %122 {strides = array<i32>} : memref<2x22x128xf32, #tpu.memory_space<vmem>>, vector<1x1x16xf32>,
    %123 = vector.extract_strided_slice %19 {offsets = [0, 192], sizes = [1, 16], strides = [1, 1]} : vector<1x256xf32> to vector<1x16xf32>
    %c1_75 = arith.constant 1 : index
    %c15_76 = arith.constant 15 : index
    %c3_77 = arith.constant 3 : index
    %124 = vector.load %arg5[%c1_75, %c15_76, %c3_77] : memref<2x22x128xf32, #tpu.memory_space<vmem>>, vector<1x1x16xf32>
    %125 = vector.shape_cast %124 : vector<1x1x16xf32> to vector<1x16xf32>
    %126 = vector.shape_cast %123 : vector<1x16xf32> to vector<1x1x16xf32>
    tpu.vector_store %arg5[%c1_75, %c15_76, %c3_77], %126 {strides = array<i32>} : memref<2x22x128xf32, #tpu.memory_space<vmem>>, vector<1x1x16xf32>,
    %127 = vector.extract_strided_slice %17 {offsets = [0, 208], sizes = [1, 16], strides = [1, 1]} : vector<1x256xf32> to vector<1x16xf32>
    %c0_78 = arith.constant 0 : index
    %c16 = arith.constant 16 : index
    %c3_79 = arith.constant 3 : index
    %128 = vector.load %arg5[%c0_78, %c16, %c3_79] : memref<2x22x128xf32, #tpu.memory_space<vmem>>, vector<1x1x16xf32>
    %129 = vector.shape_cast %128 : vector<1x1x16xf32> to vector<1x16xf32>
    %130 = vector.shape_cast %127 : vector<1x16xf32> to vector<1x1x16xf32>
    tpu.vector_store %arg5[%c0_78, %c16, %c3_79], %130 {strides = array<i32>} : memref<2x22x128xf32, #tpu.memory_space<vmem>>, vector<1x1x16xf32>,
    %131 = vector.extract_strided_slice %19 {offsets = [0, 208], sizes = [1, 16], strides = [1, 1]} : vector<1x256xf32> to vector<1x16xf32>
    %c1_80 = arith.constant 1 : index
    %c16_81 = arith.constant 16 : index
    %c3_82 = arith.constant 3 : index
    %132 = vector.load %arg5[%c1_80, %c16_81, %c3_82] : memref<2x22x128xf32, #tpu.memory_space<vmem>>, vector<1x1x16xf32>
    %133 = vector.shape_cast %132 : vector<1x1x16xf32> to vector<1x16xf32>
    %134 = vector.shape_cast %131 : vector<1x16xf32> to vector<1x1x16xf32>
    tpu.vector_store %arg5[%c1_80, %c16_81, %c3_82], %134 {strides = array<i32>} : memref<2x22x128xf32, #tpu.memory_space<vmem>>, vector<1x1x16xf32>,
    %135 = vector.extract_strided_slice %17 {offsets = [0, 224], sizes = [1, 16], strides = [1, 1]} : vector<1x256xf32> to vector<1x16xf32>
    %c0_83 = arith.constant 0 : index
    %c17 = arith.constant 17 : index
    %c3_84 = arith.constant 3 : index
    %136 = vector.load %arg5[%c0_83, %c17, %c3_84] : memref<2x22x128xf32, #tpu.memory_space<vmem>>, vector<1x1x16xf32>
    %137 = vector.shape_cast %136 : vector<1x1x16xf32> to vector<1x16xf32>
    %138 = vector.shape_cast %135 : vector<1x16xf32> to vector<1x1x16xf32>
    tpu.vector_store %arg5[%c0_83, %c17, %c3_84], %138 {strides = array<i32>} : memref<2x22x128xf32, #tpu.memory_space<vmem>>, vector<1x1x16xf32>,
    %139 = vector.extract_strided_slice %19 {offsets = [0, 224], sizes = [1, 16], strides = [1, 1]} : vector<1x256xf32> to vector<1x16xf32>
    %c1_85 = arith.constant 1 : index
    %c17_86 = arith.constant 17 : index
    %c3_87 = arith.constant 3 : index
    %140 = vector.load %arg5[%c1_85, %c17_86, %c3_87] : memref<2x22x128xf32, #tpu.memory_space<vmem>>, vector<1x1x16xf32>
    %141 = vector.shape_cast %140 : vector<1x1x16xf32> to vector<1x16xf32>
    %142 = vector.shape_cast %139 : vector<1x16xf32> to vector<1x1x16xf32>
    tpu.vector_store %arg5[%c1_85, %c17_86, %c3_87], %142 {strides = array<i32>} : memref<2x22x128xf32, #tpu.memory_space<vmem>>, vector<1x1x16xf32>,
    %143 = vector.extract_strided_slice %17 {offsets = [0, 240], sizes = [1, 16], strides = [1, 1]} : vector<1x256xf32> to vector<1x16xf32>
    %c0_88 = arith.constant 0 : index
    %c18 = arith.constant 18 : index
    %c3_89 = arith.constant 3 : index
    %144 = vector.load %arg5[%c0_88, %c18, %c3_89] : memref<2x22x128xf32, #tpu.memory_space<vmem>>, vector<1x1x16xf32>
    %145 = vector.shape_cast %144 : vector<1x1x16xf32> to vector<1x16xf32>
    %146 = vector.shape_cast %143 : vector<1x16xf32> to vector<1x1x16xf32>
    tpu.vector_store %arg5[%c0_88, %c18, %c3_89], %146 {strides = array<i32>} : memref<2x22x128xf32, #tpu.memory_space<vmem>>, vector<1x1x16xf32>,
    %147 = vector.extract_strided_slice %19 {offsets = [0, 240], sizes = [1, 16], strides = [1, 1]} : vector<1x256xf32> to vector<1x16xf32>
    %c1_90 = arith.constant 1 : index
    %c18_91 = arith.constant 18 : index
    %c3_92 = arith.constant 3 : index
    %148 = vector.load %arg5[%c1_90, %c18_91, %c3_92] : memref<2x22x128xf32, #tpu.memory_space<vmem>>, vector<1x1x16xf32>
    %149 = vector.shape_cast %148 : vector<1x1x16xf32> to vector<1x16xf32>
    %150 = vector.shape_cast %147 : vector<1x16xf32> to vector<1x1x16xf32>
    tpu.vector_store %arg5[%c1_90, %c18_91, %c3_92], %150 {strides = array<i32>} : memref<2x22x128xf32, #tpu.memory_space<vmem>>, vector<1x1x16xf32>,
    %cst_93 = arith.constant 0.000000e+00 : f32
    %151 = vector.broadcast %cst_93 : f32 to vector<8x16xf32>
    %c0_94 = arith.constant 0 : index
    %c0_95 = arith.constant 0 : index
    %c0_96 = arith.constant 0 : index
    %152 = vector.load %arg5[%c0_94, %c0_95, %c0_96] : memref<2x22x128xf32, #tpu.memory_space<vmem>>, vector<1x14x16xf32>
    %153 = vector.shape_cast %152 : vector<1x14x16xf32> to vector<14x16xf32>
    %c1_97 = arith.constant 1 : index
    %c0_98 = arith.constant 0 : index
    %c0_99 = arith.constant 0 : index
    %154 = vector.load %arg5[%c1_97, %c0_98, %c0_99] : memref<2x22x128xf32, #tpu.memory_space<vmem>>, vector<1x14x16xf32>
    %155 = vector.shape_cast %154 : vector<1x14x16xf32> to vector<14x16xf32>
    %c0_100 = arith.constant 0 : index
    %156 = memref.load %arg2[%c0_100] : memref<98xf32, #tpu.memory_space<smem>>
    %157 = vector.extract_strided_slice %153 {offsets = [0, 0], sizes = [8, 16], strides = [1, 1]} : vector<14x16xf32> to vector<8x16xf32>
    %158 = vector.broadcast %156 : f32 to vector<8x16xf32>
    %159 = arith.mulf %158, %157 : vector<8x16xf32>
    %c49 = arith.constant 49 : index
    %160 = memref.load %arg2[%c49] : memref<98xf32, #tpu.memory_space<smem>>
    %161 = vector.extract_strided_slice %155 {offsets = [0, 0], sizes = [8, 16], strides = [1, 1]} : vector<14x16xf32> to vector<8x16xf32>
    %162 = vector.broadcast %160 : f32 to vector<8x16xf32>
    %163 = arith.mulf %162, %161 : vector<8x16xf32>
    %164 = arith.addf %159, %163 : vector<8x16xf32>
    %165 = arith.addf %151, %164 : vector<8x16xf32>
    %c7_101 = arith.constant 7 : index
    %166 = memref.load %arg2[%c7_101] : memref<98xf32, #tpu.memory_space<smem>>
    %167 = vector.extract_strided_slice %153 {offsets = [1, 0], sizes = [8, 16], strides = [1, 1]} : vector<14x16xf32> to vector<8x16xf32>
    %168 = vector.broadcast %166 : f32 to vector<8x16xf32>
    %169 = arith.mulf %168, %167 : vector<8x16xf32>
    %c56 = arith.constant 56 : index
    %170 = memref.load %arg2[%c56] : memref<98xf32, #tpu.memory_space<smem>>
    %171 = vector.extract_strided_slice %155 {offsets = [1, 0], sizes = [8, 16], strides = [1, 1]} : vector<14x16xf32> to vector<8x16xf32>
    %172 = vector.broadcast %170 : f32 to vector<8x16xf32>
    %173 = arith.mulf %172, %171 : vector<8x16xf32>
    %174 = arith.addf %169, %173 : vector<8x16xf32>
    %175 = arith.addf %165, %174 : vector<8x16xf32>
    %c14_102 = arith.constant 14 : index
    %176 = memref.load %arg2[%c14_102] : memref<98xf32, #tpu.memory_space<smem>>
    %177 = vector.extract_strided_slice %153 {offsets = [2, 0], sizes = [8, 16], strides = [1, 1]} : vector<14x16xf32> to vector<8x16xf32>
    %178 = vector.broadcast %176 : f32 to vector<8x16xf32>
    %179 = arith.mulf %178, %177 : vector<8x16xf32>
    %c63 = arith.constant 63 : index
    %180 = memref.load %arg2[%c63] : memref<98xf32, #tpu.memory_space<smem>>
    %181 = vector.extract_strided_slice %155 {offsets = [2, 0], sizes = [8, 16], strides = [1, 1]} : vector<14x16xf32> to vector<8x16xf32>
    %182 = vector.broadcast %180 : f32 to vector<8x16xf32>
    %183 = arith.mulf %182, %181 : vector<8x16xf32>
    %184 = arith.addf %179, %183 : vector<8x16xf32>
    %185 = arith.addf %175, %184 : vector<8x16xf32>
    %c21 = arith.constant 21 : index
    %186 = memref.load %arg2[%c21] : memref<98xf32, #tpu.memory_space<smem>>
    %187 = vector.extract_strided_slice %153 {offsets = [3, 0], sizes = [8, 16], strides = [1, 1]} : vector<14x16xf32> to vector<8x16xf32>
    %188 = vector.broadcast %186 : f32 to vector<8x16xf32>
    %189 = arith.mulf %188, %187 : vector<8x16xf32>
    %c70 = arith.constant 70 : index
    %190 = memref.load %arg2[%c70] : memref<98xf32, #tpu.memory_space<smem>>
    %191 = vector.extract_strided_slice %155 {offsets = [3, 0], sizes = [8, 16], strides = [1, 1]} : vector<14x16xf32> to vector<8x16xf32>
    %192 = vector.broadcast %190 : f32 to vector<8x16xf32>
    %193 = arith.mulf %192, %191 : vector<8x16xf32>
    %194 = arith.addf %189, %193 : vector<8x16xf32>
    %195 = arith.addf %185, %194 : vector<8x16xf32>
    %c28 = arith.constant 28 : index
    %196 = memref.load %arg2[%c28] : memref<98xf32, #tpu.memory_space<smem>>
    %197 = vector.extract_strided_slice %153 {offsets = [4, 0], sizes = [8, 16], strides = [1, 1]} : vector<14x16xf32> to vector<8x16xf32>
    %198 = vector.broadcast %196 : f32 to vector<8x16xf32>
    %199 = arith.mulf %198, %197 : vector<8x16xf32>
    %c77 = arith.constant 77 : index
    %200 = memref.load %arg2[%c77] : memref<98xf32, #tpu.memory_space<smem>>
    %201 = vector.extract_strided_slice %155 {offsets = [4, 0], sizes = [8, 16], strides = [1, 1]} : vector<14x16xf32> to vector<8x16xf32>
    %202 = vector.broadcast %200 : f32 to vector<8x16xf32>
    %203 = arith.mulf %202, %201 : vector<8x16xf32>
    %204 = arith.addf %199, %203 : vector<8x16xf32>
    %205 = arith.addf %195, %204 : vector<8x16xf32>
    %c35 = arith.constant 35 : index
    %206 = memref.load %arg2[%c35] : memref<98xf32, #tpu.memory_space<smem>>
    %207 = vector.extract_strided_slice %153 {offsets = [5, 0], sizes = [8, 16], strides = [1, 1]} : vector<14x16xf32> to vector<8x16xf32>
    %208 = vector.broadcast %206 : f32 to vector<8x16xf32>
    %209 = arith.mulf %208, %207 : vector<8x16xf32>
    %c84 = arith.constant 84 : index
    %210 = memref.load %arg2[%c84] : memref<98xf32, #tpu.memory_space<smem>>
    %211 = vector.extract_strided_slice %155 {offsets = [5, 0], sizes = [8, 16], strides = [1, 1]} : vector<14x16xf32> to vector<8x16xf32>
    %212 = vector.broadcast %210 : f32 to vector<8x16xf32>
    %213 = arith.mulf %212, %211 : vector<8x16xf32>
    %214 = arith.addf %209, %213 : vector<8x16xf32>
    %215 = arith.addf %205, %214 : vector<8x16xf32>
    %c42 = arith.constant 42 : index
    %216 = memref.load %arg2[%c42] : memref<98xf32, #tpu.memory_space<smem>>
    %217 = vector.extract_strided_slice %153 {offsets = [6, 0], sizes = [8, 16], strides = [1, 1]} : vector<14x16xf32> to vector<8x16xf32>
    %218 = vector.broadcast %216 : f32 to vector<8x16xf32>
    %219 = arith.mulf %218, %217 : vector<8x16xf32>
    %c91 = arith.constant 91 : index
    %220 = memref.load %arg2[%c91] : memref<98xf32, #tpu.memory_space<smem>>
    %221 = vector.extract_strided_slice %155 {offsets = [6, 0], sizes = [8, 16], strides = [1, 1]} : vector<14x16xf32> to vector<8x16xf32>
    %222 = vector.broadcast %220 : f32 to vector<8x16xf32>
    %223 = arith.mulf %222, %221 : vector<8x16xf32>
    %224 = arith.addf %219, %223 : vector<8x16xf32>
    %225 = arith.addf %215, %224 : vector<8x16xf32>
    %c0_103 = arith.constant 0 : index
    %c0_104 = arith.constant 0 : index
    %c1_105 = arith.constant 1 : index
    %226 = vector.load %arg5[%c0_103, %c0_104, %c1_105] : memref<2x22x128xf32, #tpu.memory_space<vmem>>, vector<1x14x16xf32>
    %227 = vector.shape_cast %226 : vector<1x14x16xf32> to vector<14x16xf32>
    %c1_106 = arith.constant 1 : index
    %c0_107 = arith.constant 0 : index
    %c1_108 = arith.constant 1 : index
    %228 = vector.load %arg5[%c1_106, %c0_107, %c1_108] : memref<2x22x128xf32, #tpu.memory_space<vmem>>, vector<1x14x16xf32>
    %229 = vector.shape_cast %228 : vector<1x14x16xf32> to vector<14x16xf32>
    %c1_109 = arith.constant 1 : index
    %230 = memref.load %arg2[%c1_109] : memref<98xf32, #tpu.memory_space<smem>>
    %231 = vector.extract_strided_slice %227 {offsets = [0, 0], sizes = [8, 16], strides = [1, 1]} : vector<14x16xf32> to vector<8x16xf32>
    %232 = vector.broadcast %230 : f32 to vector<8x16xf32>
    %233 = arith.mulf %232, %231 : vector<8x16xf32>
    %c50 = arith.constant 50 : index
    %234 = memref.load %arg2[%c50] : memref<98xf32, #tpu.memory_space<smem>>
    %235 = vector.extract_strided_slice %229 {offsets = [0, 0], sizes = [8, 16], strides = [1, 1]} : vector<14x16xf32> to vector<8x16xf32>
    %236 = vector.broadcast %234 : f32 to vector<8x16xf32>
    %237 = arith.mulf %236, %235 : vector<8x16xf32>
    %238 = arith.addf %233, %237 : vector<8x16xf32>
    %239 = arith.addf %225, %238 : vector<8x16xf32>
    %c8_110 = arith.constant 8 : index
    %240 = memref.load %arg2[%c8_110] : memref<98xf32, #tpu.memory_space<smem>>
    %241 = vector.extract_strided_slice %227 {offsets = [1, 0], sizes = [8, 16], strides = [1, 1]} : vector<14x16xf32> to vector<8x16xf32>
    %242 = vector.broadcast %240 : f32 to vector<8x16xf32>
    %243 = arith.mulf %242, %241 : vector<8x16xf32>
    %c57 = arith.constant 57 : index
    %244 = memref.load %arg2[%c57] : memref<98xf32, #tpu.memory_space<smem>>
    %245 = vector.extract_strided_slice %229 {offsets = [1, 0], sizes = [8, 16], strides = [1, 1]} : vector<14x16xf32> to vector<8x16xf32>
    %246 = vector.broadcast %244 : f32 to vector<8x16xf32>
    %247 = arith.mulf %246, %245 : vector<8x16xf32>
    %248 = arith.addf %243, %247 : vector<8x16xf32>
    %249 = arith.addf %239, %248 : vector<8x16xf32>
    %c15_111 = arith.constant 15 : index
    %250 = memref.load %arg2[%c15_111] : memref<98xf32, #tpu.memory_space<smem>>
    %251 = vector.extract_strided_slice %227 {offsets = [2, 0], sizes = [8, 16], strides = [1, 1]} : vector<14x16xf32> to vector<8x16xf32>
    %252 = vector.broadcast %250 : f32 to vector<8x16xf32>
    %253 = arith.mulf %252, %251 : vector<8x16xf32>
    %c64 = arith.constant 64 : index
    %254 = memref.load %arg2[%c64] : memref<98xf32, #tpu.memory_space<smem>>
    %255 = vector.extract_strided_slice %229 {offsets = [2, 0], sizes = [8, 16], strides = [1, 1]} : vector<14x16xf32> to vector<8x16xf32>
    %256 = vector.broadcast %254 : f32 to vector<8x16xf32>
    %257 = arith.mulf %256, %255 : vector<8x16xf32>
    %258 = arith.addf %253, %257 : vector<8x16xf32>
    %259 = arith.addf %249, %258 : vector<8x16xf32>
    %c22 = arith.constant 22 : index
    %260 = memref.load %arg2[%c22] : memref<98xf32, #tpu.memory_space<smem>>
    %261 = vector.extract_strided_slice %227 {offsets = [3, 0], sizes = [8, 16], strides = [1, 1]} : vector<14x16xf32> to vector<8x16xf32>
    %262 = vector.broadcast %260 : f32 to vector<8x16xf32>
    %263 = arith.mulf %262, %261 : vector<8x16xf32>
    %c71 = arith.constant 71 : index
    %264 = memref.load %arg2[%c71] : memref<98xf32, #tpu.memory_space<smem>>
    %265 = vector.extract_strided_slice %229 {offsets = [3, 0], sizes = [8, 16], strides = [1, 1]} : vector<14x16xf32> to vector<8x16xf32>
    %266 = vector.broadcast %264 : f32 to vector<8x16xf32>
    %267 = arith.mulf %266, %265 : vector<8x16xf32>
    %268 = arith.addf %263, %267 : vector<8x16xf32>
    %269 = arith.addf %259, %268 : vector<8x16xf32>
    %c29 = arith.constant 29 : index
    %270 = memref.load %arg2[%c29] : memref<98xf32, #tpu.memory_space<smem>>
    %271 = vector.extract_strided_slice %227 {offsets = [4, 0], sizes = [8, 16], strides = [1, 1]} : vector<14x16xf32> to vector<8x16xf32>
    %272 = vector.broadcast %270 : f32 to vector<8x16xf32>
    %273 = arith.mulf %272, %271 : vector<8x16xf32>
    %c78 = arith.constant 78 : index
    %274 = memref.load %arg2[%c78] : memref<98xf32, #tpu.memory_space<smem>>
    %275 = vector.extract_strided_slice %229 {offsets = [4, 0], sizes = [8, 16], strides = [1, 1]} : vector<14x16xf32> to vector<8x16xf32>
    %276 = vector.broadcast %274 : f32 to vector<8x16xf32>
    %277 = arith.mulf %276, %275 : vector<8x16xf32>
    %278 = arith.addf %273, %277 : vector<8x16xf32>
    %279 = arith.addf %269, %278 : vector<8x16xf32>
    %c36 = arith.constant 36 : index
    %280 = memref.load %arg2[%c36] : memref<98xf32, #tpu.memory_space<smem>>
    %281 = vector.extract_strided_slice %227 {offsets = [5, 0], sizes = [8, 16], strides = [1, 1]} : vector<14x16xf32> to vector<8x16xf32>
    %282 = vector.broadcast %280 : f32 to vector<8x16xf32>
    %283 = arith.mulf %282, %281 : vector<8x16xf32>
    %c85 = arith.constant 85 : index
    %284 = memref.load %arg2[%c85] : memref<98xf32, #tpu.memory_space<smem>>
    %285 = vector.extract_strided_slice %229 {offsets = [5, 0], sizes = [8, 16], strides = [1, 1]} : vector<14x16xf32> to vector<8x16xf32>
    %286 = vector.broadcast %284 : f32 to vector<8x16xf32>
    %287 = arith.mulf %286, %285 : vector<8x16xf32>
    %288 = arith.addf %283, %287 : vector<8x16xf32>
    %289 = arith.addf %279, %288 : vector<8x16xf32>
    %c43 = arith.constant 43 : index
    %290 = memref.load %arg2[%c43] : memref<98xf32, #tpu.memory_space<smem>>
    %291 = vector.extract_strided_slice %227 {offsets = [6, 0], sizes = [8, 16], strides = [1, 1]} : vector<14x16xf32> to vector<8x16xf32>
    %292 = vector.broadcast %290 : f32 to vector<8x16xf32>
    %293 = arith.mulf %292, %291 : vector<8x16xf32>
    %c92 = arith.constant 92 : index
    %294 = memref.load %arg2[%c92] : memref<98xf32, #tpu.memory_space<smem>>
    %295 = vector.extract_strided_slice %229 {offsets = [6, 0], sizes = [8, 16], strides = [1, 1]} : vector<14x16xf32> to vector<8x16xf32>
    %296 = vector.broadcast %294 : f32 to vector<8x16xf32>
    %297 = arith.mulf %296, %295 : vector<8x16xf32>
    %298 = arith.addf %293, %297 : vector<8x16xf32>
    %299 = arith.addf %289, %298 : vector<8x16xf32>
    %c0_112 = arith.constant 0 : index
    %c0_113 = arith.constant 0 : index
    %c2 = arith.constant 2 : index
    %300 = vector.load %arg5[%c0_112, %c0_113, %c2] : memref<2x22x128xf32, #tpu.memory_space<vmem>>, vector<1x14x16xf32>
    %301 = vector.shape_cast %300 : vector<1x14x16xf32> to vector<14x16xf32>
    %c1_114 = arith.constant 1 : index
    %c0_115 = arith.constant 0 : index
    %c2_116 = arith.constant 2 : index
    %302 = vector.load %arg5[%c1_114, %c0_115, %c2_116] : memref<2x22x128xf32, #tpu.memory_space<vmem>>, vector<1x14x16xf32>
    %303 = vector.shape_cast %302 : vector<1x14x16xf32> to vector<14x16xf32>
    %c2_117 = arith.constant 2 : index
    %304 = memref.load %arg2[%c2_117] : memref<98xf32, #tpu.memory_space<smem>>
    %305 = vector.extract_strided_slice %301 {offsets = [0, 0], sizes = [8, 16], strides = [1, 1]} : vector<14x16xf32> to vector<8x16xf32>
    %306 = vector.broadcast %304 : f32 to vector<8x16xf32>
    %307 = arith.mulf %306, %305 : vector<8x16xf32>
    %c51 = arith.constant 51 : index
    %308 = memref.load %arg2[%c51] : memref<98xf32, #tpu.memory_space<smem>>
    %309 = vector.extract_strided_slice %303 {offsets = [0, 0], sizes = [8, 16], strides = [1, 1]} : vector<14x16xf32> to vector<8x16xf32>
    %310 = vector.broadcast %308 : f32 to vector<8x16xf32>
    %311 = arith.mulf %310, %309 : vector<8x16xf32>
    %312 = arith.addf %307, %311 : vector<8x16xf32>
    %313 = arith.addf %299, %312 : vector<8x16xf32>
    %c9_118 = arith.constant 9 : index
    %314 = memref.load %arg2[%c9_118] : memref<98xf32, #tpu.memory_space<smem>>
    %315 = vector.extract_strided_slice %301 {offsets = [1, 0], sizes = [8, 16], strides = [1, 1]} : vector<14x16xf32> to vector<8x16xf32>
    %316 = vector.broadcast %314 : f32 to vector<8x16xf32>
    %317 = arith.mulf %316, %315 : vector<8x16xf32>
    %c58 = arith.constant 58 : index
    %318 = memref.load %arg2[%c58] : memref<98xf32, #tpu.memory_space<smem>>
    %319 = vector.extract_strided_slice %303 {offsets = [1, 0], sizes = [8, 16], strides = [1, 1]} : vector<14x16xf32> to vector<8x16xf32>
    %320 = vector.broadcast %318 : f32 to vector<8x16xf32>
    %321 = arith.mulf %320, %319 : vector<8x16xf32>
    %322 = arith.addf %317, %321 : vector<8x16xf32>
    %323 = arith.addf %313, %322 : vector<8x16xf32>
    %c16_119 = arith.constant 16 : index
    %324 = memref.load %arg2[%c16_119] : memref<98xf32, #tpu.memory_space<smem>>
    %325 = vector.extract_strided_slice %301 {offsets = [2, 0], sizes = [8, 16], strides = [1, 1]} : vector<14x16xf32> to vector<8x16xf32>
    %326 = vector.broadcast %324 : f32 to vector<8x16xf32>
    %327 = arith.mulf %326, %325 : vector<8x16xf32>
    %c65 = arith.constant 65 : index
    %328 = memref.load %arg2[%c65] : memref<98xf32, #tpu.memory_space<smem>>
    %329 = vector.extract_strided_slice %303 {offsets = [2, 0], sizes = [8, 16], strides = [1, 1]} : vector<14x16xf32> to vector<8x16xf32>
    %330 = vector.broadcast %328 : f32 to vector<8x16xf32>
    %331 = arith.mulf %330, %329 : vector<8x16xf32>
    %332 = arith.addf %327, %331 : vector<8x16xf32>
    %333 = arith.addf %323, %332 : vector<8x16xf32>
    %c23 = arith.constant 23 : index
    %334 = memref.load %arg2[%c23] : memref<98xf32, #tpu.memory_space<smem>>
    %335 = vector.extract_strided_slice %301 {offsets = [3, 0], sizes = [8, 16], strides = [1, 1]} : vector<14x16xf32> to vector<8x16xf32>
    %336 = vector.broadcast %334 : f32 to vector<8x16xf32>
    %337 = arith.mulf %336, %335 : vector<8x16xf32>
    %c72 = arith.constant 72 : index
    %338 = memref.load %arg2[%c72] : memref<98xf32, #tpu.memory_space<smem>>
    %339 = vector.extract_strided_slice %303 {offsets = [3, 0], sizes = [8, 16], strides = [1, 1]} : vector<14x16xf32> to vector<8x16xf32>
    %340 = vector.broadcast %338 : f32 to vector<8x16xf32>
    %341 = arith.mulf %340, %339 : vector<8x16xf32>
    %342 = arith.addf %337, %341 : vector<8x16xf32>
    %343 = arith.addf %333, %342 : vector<8x16xf32>
    %c30 = arith.constant 30 : index
    %344 = memref.load %arg2[%c30] : memref<98xf32, #tpu.memory_space<smem>>
    %345 = vector.extract_strided_slice %301 {offsets = [4, 0], sizes = [8, 16], strides = [1, 1]} : vector<14x16xf32> to vector<8x16xf32>
    %346 = vector.broadcast %344 : f32 to vector<8x16xf32>
    %347 = arith.mulf %346, %345 : vector<8x16xf32>
    %c79 = arith.constant 79 : index
    %348 = memref.load %arg2[%c79] : memref<98xf32, #tpu.memory_space<smem>>
    %349 = vector.extract_strided_slice %303 {offsets = [4, 0], sizes = [8, 16], strides = [1, 1]} : vector<14x16xf32> to vector<8x16xf32>
    %350 = vector.broadcast %348 : f32 to vector<8x16xf32>
    %351 = arith.mulf %350, %349 : vector<8x16xf32>
    %352 = arith.addf %347, %351 : vector<8x16xf32>
    %353 = arith.addf %343, %352 : vector<8x16xf32>
    %c37 = arith.constant 37 : index
    %354 = memref.load %arg2[%c37] : memref<98xf32, #tpu.memory_space<smem>>
    %355 = vector.extract_strided_slice %301 {offsets = [5, 0], sizes = [8, 16], strides = [1, 1]} : vector<14x16xf32> to vector<8x16xf32>
    %356 = vector.broadcast %354 : f32 to vector<8x16xf32>
    %357 = arith.mulf %356, %355 : vector<8x16xf32>
    %c86 = arith.constant 86 : index
    %358 = memref.load %arg2[%c86] : memref<98xf32, #tpu.memory_space<smem>>
    %359 = vector.extract_strided_slice %303 {offsets = [5, 0], sizes = [8, 16], strides = [1, 1]} : vector<14x16xf32> to vector<8x16xf32>
    %360 = vector.broadcast %358 : f32 to vector<8x16xf32>
    %361 = arith.mulf %360, %359 : vector<8x16xf32>
    %362 = arith.addf %357, %361 : vector<8x16xf32>
    %363 = arith.addf %353, %362 : vector<8x16xf32>
    %c44 = arith.constant 44 : index
    %364 = memref.load %arg2[%c44] : memref<98xf32, #tpu.memory_space<smem>>
    %365 = vector.extract_strided_slice %301 {offsets = [6, 0], sizes = [8, 16], strides = [1, 1]} : vector<14x16xf32> to vector<8x16xf32>
    %366 = vector.broadcast %364 : f32 to vector<8x16xf32>
    %367 = arith.mulf %366, %365 : vector<8x16xf32>
    %c93 = arith.constant 93 : index
    %368 = memref.load %arg2[%c93] : memref<98xf32, #tpu.memory_space<smem>>
    %369 = vector.extract_strided_slice %303 {offsets = [6, 0], sizes = [8, 16], strides = [1, 1]} : vector<14x16xf32> to vector<8x16xf32>
    %370 = vector.broadcast %368 : f32 to vector<8x16xf32>
    %371 = arith.mulf %370, %369 : vector<8x16xf32>
    %372 = arith.addf %367, %371 : vector<8x16xf32>
    %373 = arith.addf %363, %372 : vector<8x16xf32>
    %c0_120 = arith.constant 0 : index
    %c0_121 = arith.constant 0 : index
    %c3_122 = arith.constant 3 : index
    %374 = vector.load %arg5[%c0_120, %c0_121, %c3_122] : memref<2x22x128xf32, #tpu.memory_space<vmem>>, vector<1x14x16xf32>
    %375 = vector.shape_cast %374 : vector<1x14x16xf32> to vector<14x16xf32>
    %c1_123 = arith.constant 1 : index
    %c0_124 = arith.constant 0 : index
    %c3_125 = arith.constant 3 : index
    %376 = vector.load %arg5[%c1_123, %c0_124, %c3_125] : memref<2x22x128xf32, #tpu.memory_space<vmem>>, vector<1x14x16xf32>
    %377 = vector.shape_cast %376 : vector<1x14x16xf32> to vector<14x16xf32>
    %c3_126 = arith.constant 3 : index
    %378 = memref.load %arg2[%c3_126] : memref<98xf32, #tpu.memory_space<smem>>
    %379 = vector.extract_strided_slice %375 {offsets = [0, 0], sizes = [8, 16], strides = [1, 1]} : vector<14x16xf32> to vector<8x16xf32>
    %380 = vector.broadcast %378 : f32 to vector<8x16xf32>
    %381 = arith.mulf %380, %379 : vector<8x16xf32>
    %c52 = arith.constant 52 : index
    %382 = memref.load %arg2[%c52] : memref<98xf32, #tpu.memory_space<smem>>
    %383 = vector.extract_strided_slice %377 {offsets = [0, 0], sizes = [8, 16], strides = [1, 1]} : vector<14x16xf32> to vector<8x16xf32>
    %384 = vector.broadcast %382 : f32 to vector<8x16xf32>
    %385 = arith.mulf %384, %383 : vector<8x16xf32>
    %386 = arith.addf %381, %385 : vector<8x16xf32>
    %387 = arith.addf %373, %386 : vector<8x16xf32>
    %c10_127 = arith.constant 10 : index
    %388 = memref.load %arg2[%c10_127] : memref<98xf32, #tpu.memory_space<smem>>
    %389 = vector.extract_strided_slice %375 {offsets = [1, 0], sizes = [8, 16], strides = [1, 1]} : vector<14x16xf32> to vector<8x16xf32>
    %390 = vector.broadcast %388 : f32 to vector<8x16xf32>
    %391 = arith.mulf %390, %389 : vector<8x16xf32>
    %c59 = arith.constant 59 : index
    %392 = memref.load %arg2[%c59] : memref<98xf32, #tpu.memory_space<smem>>
    %393 = vector.extract_strided_slice %377 {offsets = [1, 0], sizes = [8, 16], strides = [1, 1]} : vector<14x16xf32> to vector<8x16xf32>
    %394 = vector.broadcast %392 : f32 to vector<8x16xf32>
    %395 = arith.mulf %394, %393 : vector<8x16xf32>
    %396 = arith.addf %391, %395 : vector<8x16xf32>
    %397 = arith.addf %387, %396 : vector<8x16xf32>
    %c17_128 = arith.constant 17 : index
    %398 = memref.load %arg2[%c17_128] : memref<98xf32, #tpu.memory_space<smem>>
    %399 = vector.extract_strided_slice %375 {offsets = [2, 0], sizes = [8, 16], strides = [1, 1]} : vector<14x16xf32> to vector<8x16xf32>
    %400 = vector.broadcast %398 : f32 to vector<8x16xf32>
    %401 = arith.mulf %400, %399 : vector<8x16xf32>
    %c66 = arith.constant 66 : index
    %402 = memref.load %arg2[%c66] : memref<98xf32, #tpu.memory_space<smem>>
    %403 = vector.extract_strided_slice %377 {offsets = [2, 0], sizes = [8, 16], strides = [1, 1]} : vector<14x16xf32> to vector<8x16xf32>
    %404 = vector.broadcast %402 : f32 to vector<8x16xf32>
    %405 = arith.mulf %404, %403 : vector<8x16xf32>
    %406 = arith.addf %401, %405 : vector<8x16xf32>
    %407 = arith.addf %397, %406 : vector<8x16xf32>
    %c24 = arith.constant 24 : index
    %408 = memref.load %arg2[%c24] : memref<98xf32, #tpu.memory_space<smem>>
    %409 = vector.extract_strided_slice %375 {offsets = [3, 0], sizes = [8, 16], strides = [1, 1]} : vector<14x16xf32> to vector<8x16xf32>
    %410 = vector.broadcast %408 : f32 to vector<8x16xf32>
    %411 = arith.mulf %410, %409 : vector<8x16xf32>
    %c73 = arith.constant 73 : index
    %412 = memref.load %arg2[%c73] : memref<98xf32, #tpu.memory_space<smem>>
    %413 = vector.extract_strided_slice %377 {offsets = [3, 0], sizes = [8, 16], strides = [1, 1]} : vector<14x16xf32> to vector<8x16xf32>
    %414 = vector.broadcast %412 : f32 to vector<8x16xf32>
    %415 = arith.mulf %414, %413 : vector<8x16xf32>
    %416 = arith.addf %411, %415 : vector<8x16xf32>
    %417 = arith.addf %407, %416 : vector<8x16xf32>
    %c31 = arith.constant 31 : index
    %418 = memref.load %arg2[%c31] : memref<98xf32, #tpu.memory_space<smem>>
    %419 = vector.extract_strided_slice %375 {offsets = [4, 0], sizes = [8, 16], strides = [1, 1]} : vector<14x16xf32> to vector<8x16xf32>
    %420 = vector.broadcast %418 : f32 to vector<8x16xf32>
    %421 = arith.mulf %420, %419 : vector<8x16xf32>
    %c80 = arith.constant 80 : index
    %422 = memref.load %arg2[%c80] : memref<98xf32, #tpu.memory_space<smem>>
    %423 = vector.extract_strided_slice %377 {offsets = [4, 0], sizes = [8, 16], strides = [1, 1]} : vector<14x16xf32> to vector<8x16xf32>
    %424 = vector.broadcast %422 : f32 to vector<8x16xf32>
    %425 = arith.mulf %424, %423 : vector<8x16xf32>
    %426 = arith.addf %421, %425 : vector<8x16xf32>
    %427 = arith.addf %417, %426 : vector<8x16xf32>
    %c38 = arith.constant 38 : index
    %428 = memref.load %arg2[%c38] : memref<98xf32, #tpu.memory_space<smem>>
    %429 = vector.extract_strided_slice %375 {offsets = [5, 0], sizes = [8, 16], strides = [1, 1]} : vector<14x16xf32> to vector<8x16xf32>
    %430 = vector.broadcast %428 : f32 to vector<8x16xf32>
    %431 = arith.mulf %430, %429 : vector<8x16xf32>
    %c87 = arith.constant 87 : index
    %432 = memref.load %arg2[%c87] : memref<98xf32, #tpu.memory_space<smem>>
    %433 = vector.extract_strided_slice %377 {offsets = [5, 0], sizes = [8, 16], strides = [1, 1]} : vector<14x16xf32> to vector<8x16xf32>
    %434 = vector.broadcast %432 : f32 to vector<8x16xf32>
    %435 = arith.mulf %434, %433 : vector<8x16xf32>
    %436 = arith.addf %431, %435 : vector<8x16xf32>
    %437 = arith.addf %427, %436 : vector<8x16xf32>
    %c45 = arith.constant 45 : index
    %438 = memref.load %arg2[%c45] : memref<98xf32, #tpu.memory_space<smem>>
    %439 = vector.extract_strided_slice %375 {offsets = [6, 0], sizes = [8, 16], strides = [1, 1]} : vector<14x16xf32> to vector<8x16xf32>
    %440 = vector.broadcast %438 : f32 to vector<8x16xf32>
    %441 = arith.mulf %440, %439 : vector<8x16xf32>
    %c94 = arith.constant 94 : index
    %442 = memref.load %arg2[%c94] : memref<98xf32, #tpu.memory_space<smem>>
    %443 = vector.extract_strided_slice %377 {offsets = [6, 0], sizes = [8, 16], strides = [1, 1]} : vector<14x16xf32> to vector<8x16xf32>
    %444 = vector.broadcast %442 : f32 to vector<8x16xf32>
    %445 = arith.mulf %444, %443 : vector<8x16xf32>
    %446 = arith.addf %441, %445 : vector<8x16xf32>
    %447 = arith.addf %437, %446 : vector<8x16xf32>
    %c0_129 = arith.constant 0 : index
    %c0_130 = arith.constant 0 : index
    %c4_131 = arith.constant 4 : index
    %448 = vector.load %arg5[%c0_129, %c0_130, %c4_131] : memref<2x22x128xf32, #tpu.memory_space<vmem>>, vector<1x14x16xf32>
    %449 = vector.shape_cast %448 : vector<1x14x16xf32> to vector<14x16xf32>
    %c1_132 = arith.constant 1 : index
    %c0_133 = arith.constant 0 : index
    %c4_134 = arith.constant 4 : index
    %450 = vector.load %arg5[%c1_132, %c0_133, %c4_134] : memref<2x22x128xf32, #tpu.memory_space<vmem>>, vector<1x14x16xf32>
    %451 = vector.shape_cast %450 : vector<1x14x16xf32> to vector<14x16xf32>
    %c4_135 = arith.constant 4 : index
    %452 = memref.load %arg2[%c4_135] : memref<98xf32, #tpu.memory_space<smem>>
    %453 = vector.extract_strided_slice %449 {offsets = [0, 0], sizes = [8, 16], strides = [1, 1]} : vector<14x16xf32> to vector<8x16xf32>
    %454 = vector.broadcast %452 : f32 to vector<8x16xf32>
    %455 = arith.mulf %454, %453 : vector<8x16xf32>
    %c53 = arith.constant 53 : index
    %456 = memref.load %arg2[%c53] : memref<98xf32, #tpu.memory_space<smem>>
    %457 = vector.extract_strided_slice %451 {offsets = [0, 0], sizes = [8, 16], strides = [1, 1]} : vector<14x16xf32> to vector<8x16xf32>
    %458 = vector.broadcast %456 : f32 to vector<8x16xf32>
    %459 = arith.mulf %458, %457 : vector<8x16xf32>
    %460 = arith.addf %455, %459 : vector<8x16xf32>
    %461 = arith.addf %447, %460 : vector<8x16xf32>
    %c11_136 = arith.constant 11 : index
    %462 = memref.load %arg2[%c11_136] : memref<98xf32, #tpu.memory_space<smem>>
    %463 = vector.extract_strided_slice %449 {offsets = [1, 0], sizes = [8, 16], strides = [1, 1]} : vector<14x16xf32> to vector<8x16xf32>
    %464 = vector.broadcast %462 : f32 to vector<8x16xf32>
    %465 = arith.mulf %464, %463 : vector<8x16xf32>
    %c60 = arith.constant 60 : index
    %466 = memref.load %arg2[%c60] : memref<98xf32, #tpu.memory_space<smem>>
    %467 = vector.extract_strided_slice %451 {offsets = [1, 0], sizes = [8, 16], strides = [1, 1]} : vector<14x16xf32> to vector<8x16xf32>
    %468 = vector.broadcast %466 : f32 to vector<8x16xf32>
    %469 = arith.mulf %468, %467 : vector<8x16xf32>
    %470 = arith.addf %465, %469 : vector<8x16xf32>
    %471 = arith.addf %461, %470 : vector<8x16xf32>
    %c18_137 = arith.constant 18 : index
    %472 = memref.load %arg2[%c18_137] : memref<98xf32, #tpu.memory_space<smem>>
    %473 = vector.extract_strided_slice %449 {offsets = [2, 0], sizes = [8, 16], strides = [1, 1]} : vector<14x16xf32> to vector<8x16xf32>
    %474 = vector.broadcast %472 : f32 to vector<8x16xf32>
    %475 = arith.mulf %474, %473 : vector<8x16xf32>
    %c67 = arith.constant 67 : index
    %476 = memref.load %arg2[%c67] : memref<98xf32, #tpu.memory_space<smem>>
    %477 = vector.extract_strided_slice %451 {offsets = [2, 0], sizes = [8, 16], strides = [1, 1]} : vector<14x16xf32> to vector<8x16xf32>
    %478 = vector.broadcast %476 : f32 to vector<8x16xf32>
    %479 = arith.mulf %478, %477 : vector<8x16xf32>
    %480 = arith.addf %475, %479 : vector<8x16xf32>
    %481 = arith.addf %471, %480 : vector<8x16xf32>
    %c25 = arith.constant 25 : index
    %482 = memref.load %arg2[%c25] : memref<98xf32, #tpu.memory_space<smem>>
    %483 = vector.extract_strided_slice %449 {offsets = [3, 0], sizes = [8, 16], strides = [1, 1]} : vector<14x16xf32> to vector<8x16xf32>
    %484 = vector.broadcast %482 : f32 to vector<8x16xf32>
    %485 = arith.mulf %484, %483 : vector<8x16xf32>
    %c74 = arith.constant 74 : index
    %486 = memref.load %arg2[%c74] : memref<98xf32, #tpu.memory_space<smem>>
    %487 = vector.extract_strided_slice %451 {offsets = [3, 0], sizes = [8, 16], strides = [1, 1]} : vector<14x16xf32> to vector<8x16xf32>
    %488 = vector.broadcast %486 : f32 to vector<8x16xf32>
    %489 = arith.mulf %488, %487 : vector<8x16xf32>
    %490 = arith.addf %485, %489 : vector<8x16xf32>
    %491 = arith.addf %481, %490 : vector<8x16xf32>
    %c32 = arith.constant 32 : index
    %492 = memref.load %arg2[%c32] : memref<98xf32, #tpu.memory_space<smem>>
    %493 = vector.extract_strided_slice %449 {offsets = [4, 0], sizes = [8, 16], strides = [1, 1]} : vector<14x16xf32> to vector<8x16xf32>
    %494 = vector.broadcast %492 : f32 to vector<8x16xf32>
    %495 = arith.mulf %494, %493 : vector<8x16xf32>
    %c81 = arith.constant 81 : index
    %496 = memref.load %arg2[%c81] : memref<98xf32, #tpu.memory_space<smem>>
    %497 = vector.extract_strided_slice %451 {offsets = [4, 0], sizes = [8, 16], strides = [1, 1]} : vector<14x16xf32> to vector<8x16xf32>
    %498 = vector.broadcast %496 : f32 to vector<8x16xf32>
    %499 = arith.mulf %498, %497 : vector<8x16xf32>
    %500 = arith.addf %495, %499 : vector<8x16xf32>
    %501 = arith.addf %491, %500 : vector<8x16xf32>
    %c39 = arith.constant 39 : index
    %502 = memref.load %arg2[%c39] : memref<98xf32, #tpu.memory_space<smem>>
    %503 = vector.extract_strided_slice %449 {offsets = [5, 0], sizes = [8, 16], strides = [1, 1]} : vector<14x16xf32> to vector<8x16xf32>
    %504 = vector.broadcast %502 : f32 to vector<8x16xf32>
    %505 = arith.mulf %504, %503 : vector<8x16xf32>
    %c88 = arith.constant 88 : index
    %506 = memref.load %arg2[%c88] : memref<98xf32, #tpu.memory_space<smem>>
    %507 = vector.extract_strided_slice %451 {offsets = [5, 0], sizes = [8, 16], strides = [1, 1]} : vector<14x16xf32> to vector<8x16xf32>
    %508 = vector.broadcast %506 : f32 to vector<8x16xf32>
    %509 = arith.mulf %508, %507 : vector<8x16xf32>
    %510 = arith.addf %505, %509 : vector<8x16xf32>
    %511 = arith.addf %501, %510 : vector<8x16xf32>
    %c46 = arith.constant 46 : index
    %512 = memref.load %arg2[%c46] : memref<98xf32, #tpu.memory_space<smem>>
    %513 = vector.extract_strided_slice %449 {offsets = [6, 0], sizes = [8, 16], strides = [1, 1]} : vector<14x16xf32> to vector<8x16xf32>
    %514 = vector.broadcast %512 : f32 to vector<8x16xf32>
    %515 = arith.mulf %514, %513 : vector<8x16xf32>
    %c95 = arith.constant 95 : index
    %516 = memref.load %arg2[%c95] : memref<98xf32, #tpu.memory_space<smem>>
    %517 = vector.extract_strided_slice %451 {offsets = [6, 0], sizes = [8, 16], strides = [1, 1]} : vector<14x16xf32> to vector<8x16xf32>
    %518 = vector.broadcast %516 : f32 to vector<8x16xf32>
    %519 = arith.mulf %518, %517 : vector<8x16xf32>
    %520 = arith.addf %515, %519 : vector<8x16xf32>
    %521 = arith.addf %511, %520 : vector<8x16xf32>
    %c0_138 = arith.constant 0 : index
    %c0_139 = arith.constant 0 : index
    %c5_140 = arith.constant 5 : index
    %522 = vector.load %arg5[%c0_138, %c0_139, %c5_140] : memref<2x22x128xf32, #tpu.memory_space<vmem>>, vector<1x14x16xf32>
    %523 = vector.shape_cast %522 : vector<1x14x16xf32> to vector<14x16xf32>
    %c1_141 = arith.constant 1 : index
    %c0_142 = arith.constant 0 : index
    %c5_143 = arith.constant 5 : index
    %524 = vector.load %arg5[%c1_141, %c0_142, %c5_143] : memref<2x22x128xf32, #tpu.memory_space<vmem>>, vector<1x14x16xf32>
    %525 = vector.shape_cast %524 : vector<1x14x16xf32> to vector<14x16xf32>
    %c5_144 = arith.constant 5 : index
    %526 = memref.load %arg2[%c5_144] : memref<98xf32, #tpu.memory_space<smem>>
    %527 = vector.extract_strided_slice %523 {offsets = [0, 0], sizes = [8, 16], strides = [1, 1]} : vector<14x16xf32> to vector<8x16xf32>
    %528 = vector.broadcast %526 : f32 to vector<8x16xf32>
    %529 = arith.mulf %528, %527 : vector<8x16xf32>
    %c54 = arith.constant 54 : index
    %530 = memref.load %arg2[%c54] : memref<98xf32, #tpu.memory_space<smem>>
    %531 = vector.extract_strided_slice %525 {offsets = [0, 0], sizes = [8, 16], strides = [1, 1]} : vector<14x16xf32> to vector<8x16xf32>
    %532 = vector.broadcast %530 : f32 to vector<8x16xf32>
    %533 = arith.mulf %532, %531 : vector<8x16xf32>
    %534 = arith.addf %529, %533 : vector<8x16xf32>
    %535 = arith.addf %521, %534 : vector<8x16xf32>
    %c12_145 = arith.constant 12 : index
    %536 = memref.load %arg2[%c12_145] : memref<98xf32, #tpu.memory_space<smem>>
    %537 = vector.extract_strided_slice %523 {offsets = [1, 0], sizes = [8, 16], strides = [1, 1]} : vector<14x16xf32> to vector<8x16xf32>
    %538 = vector.broadcast %536 : f32 to vector<8x16xf32>
    %539 = arith.mulf %538, %537 : vector<8x16xf32>
    %c61 = arith.constant 61 : index
    %540 = memref.load %arg2[%c61] : memref<98xf32, #tpu.memory_space<smem>>
    %541 = vector.extract_strided_slice %525 {offsets = [1, 0], sizes = [8, 16], strides = [1, 1]} : vector<14x16xf32> to vector<8x16xf32>
    %542 = vector.broadcast %540 : f32 to vector<8x16xf32>
    %543 = arith.mulf %542, %541 : vector<8x16xf32>
    %544 = arith.addf %539, %543 : vector<8x16xf32>
    %545 = arith.addf %535, %544 : vector<8x16xf32>
    %c19 = arith.constant 19 : index
    %546 = memref.load %arg2[%c19] : memref<98xf32, #tpu.memory_space<smem>>
    %547 = vector.extract_strided_slice %523 {offsets = [2, 0], sizes = [8, 16], strides = [1, 1]} : vector<14x16xf32> to vector<8x16xf32>
    %548 = vector.broadcast %546 : f32 to vector<8x16xf32>
    %549 = arith.mulf %548, %547 : vector<8x16xf32>
    %c68 = arith.constant 68 : index
    %550 = memref.load %arg2[%c68] : memref<98xf32, #tpu.memory_space<smem>>
    %551 = vector.extract_strided_slice %525 {offsets = [2, 0], sizes = [8, 16], strides = [1, 1]} : vector<14x16xf32> to vector<8x16xf32>
    %552 = vector.broadcast %550 : f32 to vector<8x16xf32>
    %553 = arith.mulf %552, %551 : vector<8x16xf32>
    %554 = arith.addf %549, %553 : vector<8x16xf32>
    %555 = arith.addf %545, %554 : vector<8x16xf32>
    %c26 = arith.constant 26 : index
    %556 = memref.load %arg2[%c26] : memref<98xf32, #tpu.memory_space<smem>>
    %557 = vector.extract_strided_slice %523 {offsets = [3, 0], sizes = [8, 16], strides = [1, 1]} : vector<14x16xf32> to vector<8x16xf32>
    %558 = vector.broadcast %556 : f32 to vector<8x16xf32>
    %559 = arith.mulf %558, %557 : vector<8x16xf32>
    %c75 = arith.constant 75 : index
    %560 = memref.load %arg2[%c75] : memref<98xf32, #tpu.memory_space<smem>>
    %561 = vector.extract_strided_slice %525 {offsets = [3, 0], sizes = [8, 16], strides = [1, 1]} : vector<14x16xf32> to vector<8x16xf32>
    %562 = vector.broadcast %560 : f32 to vector<8x16xf32>
    %563 = arith.mulf %562, %561 : vector<8x16xf32>
    %564 = arith.addf %559, %563 : vector<8x16xf32>
    %565 = arith.addf %555, %564 : vector<8x16xf32>
    %c33 = arith.constant 33 : index
    %566 = memref.load %arg2[%c33] : memref<98xf32, #tpu.memory_space<smem>>
    %567 = vector.extract_strided_slice %523 {offsets = [4, 0], sizes = [8, 16], strides = [1, 1]} : vector<14x16xf32> to vector<8x16xf32>
    %568 = vector.broadcast %566 : f32 to vector<8x16xf32>
    %569 = arith.mulf %568, %567 : vector<8x16xf32>
    %c82 = arith.constant 82 : index
    %570 = memref.load %arg2[%c82] : memref<98xf32, #tpu.memory_space<smem>>
    %571 = vector.extract_strided_slice %525 {offsets = [4, 0], sizes = [8, 16], strides = [1, 1]} : vector<14x16xf32> to vector<8x16xf32>
    %572 = vector.broadcast %570 : f32 to vector<8x16xf32>
    %573 = arith.mulf %572, %571 : vector<8x16xf32>
    %574 = arith.addf %569, %573 : vector<8x16xf32>
    %575 = arith.addf %565, %574 : vector<8x16xf32>
    %c40 = arith.constant 40 : index
    %576 = memref.load %arg2[%c40] : memref<98xf32, #tpu.memory_space<smem>>
    %577 = vector.extract_strided_slice %523 {offsets = [5, 0], sizes = [8, 16], strides = [1, 1]} : vector<14x16xf32> to vector<8x16xf32>
    %578 = vector.broadcast %576 : f32 to vector<8x16xf32>
    %579 = arith.mulf %578, %577 : vector<8x16xf32>
    %c89 = arith.constant 89 : index
    %580 = memref.load %arg2[%c89] : memref<98xf32, #tpu.memory_space<smem>>
    %581 = vector.extract_strided_slice %525 {offsets = [5, 0], sizes = [8, 16], strides = [1, 1]} : vector<14x16xf32> to vector<8x16xf32>
    %582 = vector.broadcast %580 : f32 to vector<8x16xf32>
    %583 = arith.mulf %582, %581 : vector<8x16xf32>
    %584 = arith.addf %579, %583 : vector<8x16xf32>
    %585 = arith.addf %575, %584 : vector<8x16xf32>
    %c47 = arith.constant 47 : index
    %586 = memref.load %arg2[%c47] : memref<98xf32, #tpu.memory_space<smem>>
    %587 = vector.extract_strided_slice %523 {offsets = [6, 0], sizes = [8, 16], strides = [1, 1]} : vector<14x16xf32> to vector<8x16xf32>
    %588 = vector.broadcast %586 : f32 to vector<8x16xf32>
    %589 = arith.mulf %588, %587 : vector<8x16xf32>
    %c96 = arith.constant 96 : index
    %590 = memref.load %arg2[%c96] : memref<98xf32, #tpu.memory_space<smem>>
    %591 = vector.extract_strided_slice %525 {offsets = [6, 0], sizes = [8, 16], strides = [1, 1]} : vector<14x16xf32> to vector<8x16xf32>
    %592 = vector.broadcast %590 : f32 to vector<8x16xf32>
    %593 = arith.mulf %592, %591 : vector<8x16xf32>
    %594 = arith.addf %589, %593 : vector<8x16xf32>
    %595 = arith.addf %585, %594 : vector<8x16xf32>
    %c0_146 = arith.constant 0 : index
    %c0_147 = arith.constant 0 : index
    %c6_148 = arith.constant 6 : index
    %596 = vector.load %arg5[%c0_146, %c0_147, %c6_148] : memref<2x22x128xf32, #tpu.memory_space<vmem>>, vector<1x14x16xf32>
    %597 = vector.shape_cast %596 : vector<1x14x16xf32> to vector<14x16xf32>
    %c1_149 = arith.constant 1 : index
    %c0_150 = arith.constant 0 : index
    %c6_151 = arith.constant 6 : index
    %598 = vector.load %arg5[%c1_149, %c0_150, %c6_151] : memref<2x22x128xf32, #tpu.memory_space<vmem>>, vector<1x14x16xf32>
    %599 = vector.shape_cast %598 : vector<1x14x16xf32> to vector<14x16xf32>
    %c6_152 = arith.constant 6 : index
    %600 = memref.load %arg2[%c6_152] : memref<98xf32, #tpu.memory_space<smem>>
    %601 = vector.extract_strided_slice %597 {offsets = [0, 0], sizes = [8, 16], strides = [1, 1]} : vector<14x16xf32> to vector<8x16xf32>
    %602 = vector.broadcast %600 : f32 to vector<8x16xf32>
    %603 = arith.mulf %602, %601 : vector<8x16xf32>
    %c55 = arith.constant 55 : index
    %604 = memref.load %arg2[%c55] : memref<98xf32, #tpu.memory_space<smem>>
    %605 = vector.extract_strided_slice %599 {offsets = [0, 0], sizes = [8, 16], strides = [1, 1]} : vector<14x16xf32> to vector<8x16xf32>
    %606 = vector.broadcast %604 : f32 to vector<8x16xf32>
    %607 = arith.mulf %606, %605 : vector<8x16xf32>
    %608 = arith.addf %603, %607 : vector<8x16xf32>
    %609 = arith.addf %595, %608 : vector<8x16xf32>
    %c13_153 = arith.constant 13 : index
    %610 = memref.load %arg2[%c13_153] : memref<98xf32, #tpu.memory_space<smem>>
    %611 = vector.extract_strided_slice %597 {offsets = [1, 0], sizes = [8, 16], strides = [1, 1]} : vector<14x16xf32> to vector<8x16xf32>
    %612 = vector.broadcast %610 : f32 to vector<8x16xf32>
    %613 = arith.mulf %612, %611 : vector<8x16xf32>
    %c62 = arith.constant 62 : index
    %614 = memref.load %arg2[%c62] : memref<98xf32, #tpu.memory_space<smem>>
    %615 = vector.extract_strided_slice %599 {offsets = [1, 0], sizes = [8, 16], strides = [1, 1]} : vector<14x16xf32> to vector<8x16xf32>
    %616 = vector.broadcast %614 : f32 to vector<8x16xf32>
    %617 = arith.mulf %616, %615 : vector<8x16xf32>
    %618 = arith.addf %613, %617 : vector<8x16xf32>
    %619 = arith.addf %609, %618 : vector<8x16xf32>
    %c20 = arith.constant 20 : index
    %620 = memref.load %arg2[%c20] : memref<98xf32, #tpu.memory_space<smem>>
    %621 = vector.extract_strided_slice %597 {offsets = [2, 0], sizes = [8, 16], strides = [1, 1]} : vector<14x16xf32> to vector<8x16xf32>
    %622 = vector.broadcast %620 : f32 to vector<8x16xf32>
    %623 = arith.mulf %622, %621 : vector<8x16xf32>
    %c69 = arith.constant 69 : index
    %624 = memref.load %arg2[%c69] : memref<98xf32, #tpu.memory_space<smem>>
    %625 = vector.extract_strided_slice %599 {offsets = [2, 0], sizes = [8, 16], strides = [1, 1]} : vector<14x16xf32> to vector<8x16xf32>
    %626 = vector.broadcast %624 : f32 to vector<8x16xf32>
    %627 = arith.mulf %626, %625 : vector<8x16xf32>
    %628 = arith.addf %623, %627 : vector<8x16xf32>
    %629 = arith.addf %619, %628 : vector<8x16xf32>
    %c27 = arith.constant 27 : index
    %630 = memref.load %arg2[%c27] : memref<98xf32, #tpu.memory_space<smem>>
    %631 = vector.extract_strided_slice %597 {offsets = [3, 0], sizes = [8, 16], strides = [1, 1]} : vector<14x16xf32> to vector<8x16xf32>
    %632 = vector.broadcast %630 : f32 to vector<8x16xf32>
    %633 = arith.mulf %632, %631 : vector<8x16xf32>
    %c76 = arith.constant 76 : index
    %634 = memref.load %arg2[%c76] : memref<98xf32, #tpu.memory_space<smem>>
    %635 = vector.extract_strided_slice %599 {offsets = [3, 0], sizes = [8, 16], strides = [1, 1]} : vector<14x16xf32> to vector<8x16xf32>
    %636 = vector.broadcast %634 : f32 to vector<8x16xf32>
    %637 = arith.mulf %636, %635 : vector<8x16xf32>
    %638 = arith.addf %633, %637 : vector<8x16xf32>
    %639 = arith.addf %629, %638 : vector<8x16xf32>
    %c34 = arith.constant 34 : index
    %640 = memref.load %arg2[%c34] : memref<98xf32, #tpu.memory_space<smem>>
    %641 = vector.extract_strided_slice %597 {offsets = [4, 0], sizes = [8, 16], strides = [1, 1]} : vector<14x16xf32> to vector<8x16xf32>
    %642 = vector.broadcast %640 : f32 to vector<8x16xf32>
    %643 = arith.mulf %642, %641 : vector<8x16xf32>
    %c83 = arith.constant 83 : index
    %644 = memref.load %arg2[%c83] : memref<98xf32, #tpu.memory_space<smem>>
    %645 = vector.extract_strided_slice %599 {offsets = [4, 0], sizes = [8, 16], strides = [1, 1]} : vector<14x16xf32> to vector<8x16xf32>
    %646 = vector.broadcast %644 : f32 to vector<8x16xf32>
    %647 = arith.mulf %646, %645 : vector<8x16xf32>
    %648 = arith.addf %643, %647 : vector<8x16xf32>
    %649 = arith.addf %639, %648 : vector<8x16xf32>
    %c41 = arith.constant 41 : index
    %650 = memref.load %arg2[%c41] : memref<98xf32, #tpu.memory_space<smem>>
    %651 = vector.extract_strided_slice %597 {offsets = [5, 0], sizes = [8, 16], strides = [1, 1]} : vector<14x16xf32> to vector<8x16xf32>
    %652 = vector.broadcast %650 : f32 to vector<8x16xf32>
    %653 = arith.mulf %652, %651 : vector<8x16xf32>
    %c90 = arith.constant 90 : index
    %654 = memref.load %arg2[%c90] : memref<98xf32, #tpu.memory_space<smem>>
    %655 = vector.extract_strided_slice %599 {offsets = [5, 0], sizes = [8, 16], strides = [1, 1]} : vector<14x16xf32> to vector<8x16xf32>
    %656 = vector.broadcast %654 : f32 to vector<8x16xf32>
    %657 = arith.mulf %656, %655 : vector<8x16xf32>
    %658 = arith.addf %653, %657 : vector<8x16xf32>
    %659 = arith.addf %649, %658 : vector<8x16xf32>
    %c48 = arith.constant 48 : index
    %660 = memref.load %arg2[%c48] : memref<98xf32, #tpu.memory_space<smem>>
    %661 = vector.extract_strided_slice %597 {offsets = [6, 0], sizes = [8, 16], strides = [1, 1]} : vector<14x16xf32> to vector<8x16xf32>
    %662 = vector.broadcast %660 : f32 to vector<8x16xf32>
    %663 = arith.mulf %662, %661 : vector<8x16xf32>
    %c97 = arith.constant 97 : index
    %664 = memref.load %arg2[%c97] : memref<98xf32, #tpu.memory_space<smem>>
    %665 = vector.extract_strided_slice %599 {offsets = [6, 0], sizes = [8, 16], strides = [1, 1]} : vector<14x16xf32> to vector<8x16xf32>
    %666 = vector.broadcast %664 : f32 to vector<8x16xf32>
    %667 = arith.mulf %666, %665 : vector<8x16xf32>
    %668 = arith.addf %663, %667 : vector<8x16xf32>
    %669 = arith.addf %659, %668 : vector<8x16xf32>
    %cst_154 = arith.constant 0.000000e+00 : f32
    %670 = vector.broadcast %cst_154 : f32 to vector<8x16xf32>
    %671 = arith.maximumf %669, %670 : vector<8x16xf32>
    %672 = arith.negf %671 : vector<8x16xf32>
    %673 = math.exp %672 : vector<8x16xf32>
    %cst_155 = arith.constant 1.000000e+00 : f32
    %674 = vector.broadcast %cst_155 : f32 to vector<8x16xf32>
    %675 = arith.addf %674, %673 : vector<8x16xf32>
    %676 = arith.divf %674, %675 : vector<8x16xf32>
    %cst_156 = arith.constant 1.000000e+00 : f32
    %677 = vector.broadcast %cst_156 : f32 to vector<8x16xf32>
    %678 = arith.addf %676, %677 : vector<8x16xf32>
    %c0_157 = arith.constant 0 : index
    %c0_158 = arith.constant 0 : index
    %c0_159 = arith.constant 0 : index
    %c0_160 = arith.constant 0 : index
    %679 = vector.load %arg4[%c0_157, %c0_158, %c0_159, %c0_160] : memref<1x1x16x16xf32, #tpu.memory_space<vmem>>, vector<1x1x8x16xf32>
    %680 = vector.shape_cast %679 : vector<1x1x8x16xf32> to vector<8x16xf32>
    %681 = vector.shape_cast %678 : vector<8x16xf32> to vector<1x1x8x16xf32>
    tpu.vector_store %arg4[%c0_157, %c0_158, %c0_159, %c0_160], %681 {strides = array<i32>} : memref<1x1x16x16xf32, #tpu.memory_space<vmem>>, vector<1x1x8x16xf32>,
    %cst_161 = arith.constant 0.000000e+00 : f32
    %682 = vector.broadcast %cst_161 : f32 to vector<8x16xf32>
    %c0_162 = arith.constant 0 : index
    %c8_163 = arith.constant 8 : index
    %c0_164 = arith.constant 0 : index
    %683 = vector.load %arg5[%c0_162, %c8_163, %c0_164] : memref<2x22x128xf32, #tpu.memory_space<vmem>>, vector<1x14x16xf32>
    %684 = vector.shape_cast %683 : vector<1x14x16xf32> to vector<14x16xf32>
    %c1_165 = arith.constant 1 : index
    %c8_166 = arith.constant 8 : index
    %c0_167 = arith.constant 0 : index
    %685 = vector.load %arg5[%c1_165, %c8_166, %c0_167] : memref<2x22x128xf32, #tpu.memory_space<vmem>>, vector<1x14x16xf32>
    %686 = vector.shape_cast %685 : vector<1x14x16xf32> to vector<14x16xf32>
    %c0_168 = arith.constant 0 : index
    %687 = memref.load %arg2[%c0_168] : memref<98xf32, #tpu.memory_space<smem>>
    %688 = vector.extract_strided_slice %684 {offsets = [0, 0], sizes = [8, 16], strides = [1, 1]} : vector<14x16xf32> to vector<8x16xf32>
    %689 = vector.broadcast %687 : f32 to vector<8x16xf32>
    %690 = arith.mulf %689, %688 : vector<8x16xf32>
    %c49_169 = arith.constant 49 : index
    %691 = memref.load %arg2[%c49_169] : memref<98xf32, #tpu.memory_space<smem>>
    %692 = vector.extract_strided_slice %686 {offsets = [0, 0], sizes = [8, 16], strides = [1, 1]} : vector<14x16xf32> to vector<8x16xf32>
    %693 = vector.broadcast %691 : f32 to vector<8x16xf32>
    %694 = arith.mulf %693, %692 : vector<8x16xf32>
    %695 = arith.addf %690, %694 : vector<8x16xf32>
    %696 = arith.addf %682, %695 : vector<8x16xf32>
    %c7_170 = arith.constant 7 : index
    %697 = memref.load %arg2[%c7_170] : memref<98xf32, #tpu.memory_space<smem>>
    %698 = vector.extract_strided_slice %684 {offsets = [1, 0], sizes = [8, 16], strides = [1, 1]} : vector<14x16xf32> to vector<8x16xf32>
    %699 = vector.broadcast %697 : f32 to vector<8x16xf32>
    %700 = arith.mulf %699, %698 : vector<8x16xf32>
    %c56_171 = arith.constant 56 : index
    %701 = memref.load %arg2[%c56_171] : memref<98xf32, #tpu.memory_space<smem>>
    %702 = vector.extract_strided_slice %686 {offsets = [1, 0], sizes = [8, 16], strides = [1, 1]} : vector<14x16xf32> to vector<8x16xf32>
    %703 = vector.broadcast %701 : f32 to vector<8x16xf32>
    %704 = arith.mulf %703, %702 : vector<8x16xf32>
    %705 = arith.addf %700, %704 : vector<8x16xf32>
    %706 = arith.addf %696, %705 : vector<8x16xf32>
    %c14_172 = arith.constant 14 : index
    %707 = memref.load %arg2[%c14_172] : memref<98xf32, #tpu.memory_space<smem>>
    %708 = vector.extract_strided_slice %684 {offsets = [2, 0], sizes = [8, 16], strides = [1, 1]} : vector<14x16xf32> to vector<8x16xf32>
    %709 = vector.broadcast %707 : f32 to vector<8x16xf32>
    %710 = arith.mulf %709, %708 : vector<8x16xf32>
    %c63_173 = arith.constant 63 : index
    %711 = memref.load %arg2[%c63_173] : memref<98xf32, #tpu.memory_space<smem>>
    %712 = vector.extract_strided_slice %686 {offsets = [2, 0], sizes = [8, 16], strides = [1, 1]} : vector<14x16xf32> to vector<8x16xf32>
    %713 = vector.broadcast %711 : f32 to vector<8x16xf32>
    %714 = arith.mulf %713, %712 : vector<8x16xf32>
    %715 = arith.addf %710, %714 : vector<8x16xf32>
    %716 = arith.addf %706, %715 : vector<8x16xf32>
    %c21_174 = arith.constant 21 : index
    %717 = memref.load %arg2[%c21_174] : memref<98xf32, #tpu.memory_space<smem>>
    %718 = vector.extract_strided_slice %684 {offsets = [3, 0], sizes = [8, 16], strides = [1, 1]} : vector<14x16xf32> to vector<8x16xf32>
    %719 = vector.broadcast %717 : f32 to vector<8x16xf32>
    %720 = arith.mulf %719, %718 : vector<8x16xf32>
    %c70_175 = arith.constant 70 : index
    %721 = memref.load %arg2[%c70_175] : memref<98xf32, #tpu.memory_space<smem>>
    %722 = vector.extract_strided_slice %686 {offsets = [3, 0], sizes = [8, 16], strides = [1, 1]} : vector<14x16xf32> to vector<8x16xf32>
    %723 = vector.broadcast %721 : f32 to vector<8x16xf32>
    %724 = arith.mulf %723, %722 : vector<8x16xf32>
    %725 = arith.addf %720, %724 : vector<8x16xf32>
    %726 = arith.addf %716, %725 : vector<8x16xf32>
    %c28_176 = arith.constant 28 : index
    %727 = memref.load %arg2[%c28_176] : memref<98xf32, #tpu.memory_space<smem>>
    %728 = vector.extract_strided_slice %684 {offsets = [4, 0], sizes = [8, 16], strides = [1, 1]} : vector<14x16xf32> to vector<8x16xf32>
    %729 = vector.broadcast %727 : f32 to vector<8x16xf32>
    %730 = arith.mulf %729, %728 : vector<8x16xf32>
    %c77_177 = arith.constant 77 : index
    %731 = memref.load %arg2[%c77_177] : memref<98xf32, #tpu.memory_space<smem>>
    %732 = vector.extract_strided_slice %686 {offsets = [4, 0], sizes = [8, 16], strides = [1, 1]} : vector<14x16xf32> to vector<8x16xf32>
    %733 = vector.broadcast %731 : f32 to vector<8x16xf32>
    %734 = arith.mulf %733, %732 : vector<8x16xf32>
    %735 = arith.addf %730, %734 : vector<8x16xf32>
    %736 = arith.addf %726, %735 : vector<8x16xf32>
    %c35_178 = arith.constant 35 : index
    %737 = memref.load %arg2[%c35_178] : memref<98xf32, #tpu.memory_space<smem>>
    %738 = vector.extract_strided_slice %684 {offsets = [5, 0], sizes = [8, 16], strides = [1, 1]} : vector<14x16xf32> to vector<8x16xf32>
    %739 = vector.broadcast %737 : f32 to vector<8x16xf32>
    %740 = arith.mulf %739, %738 : vector<8x16xf32>
    %c84_179 = arith.constant 84 : index
    %741 = memref.load %arg2[%c84_179] : memref<98xf32, #tpu.memory_space<smem>>
    %742 = vector.extract_strided_slice %686 {offsets = [5, 0], sizes = [8, 16], strides = [1, 1]} : vector<14x16xf32> to vector<8x16xf32>
    %743 = vector.broadcast %741 : f32 to vector<8x16xf32>
    %744 = arith.mulf %743, %742 : vector<8x16xf32>
    %745 = arith.addf %740, %744 : vector<8x16xf32>
    %746 = arith.addf %736, %745 : vector<8x16xf32>
    %c42_180 = arith.constant 42 : index
    %747 = memref.load %arg2[%c42_180] : memref<98xf32, #tpu.memory_space<smem>>
    %748 = vector.extract_strided_slice %684 {offsets = [6, 0], sizes = [8, 16], strides = [1, 1]} : vector<14x16xf32> to vector<8x16xf32>
    %749 = vector.broadcast %747 : f32 to vector<8x16xf32>
    %750 = arith.mulf %749, %748 : vector<8x16xf32>
    %c91_181 = arith.constant 91 : index
    %751 = memref.load %arg2[%c91_181] : memref<98xf32, #tpu.memory_space<smem>>
    %752 = vector.extract_strided_slice %686 {offsets = [6, 0], sizes = [8, 16], strides = [1, 1]} : vector<14x16xf32> to vector<8x16xf32>
    %753 = vector.broadcast %751 : f32 to vector<8x16xf32>
    %754 = arith.mulf %753, %752 : vector<8x16xf32>
    %755 = arith.addf %750, %754 : vector<8x16xf32>
    %756 = arith.addf %746, %755 : vector<8x16xf32>
    %c0_182 = arith.constant 0 : index
    %c8_183 = arith.constant 8 : index
    %c1_184 = arith.constant 1 : index
    %757 = vector.load %arg5[%c0_182, %c8_183, %c1_184] : memref<2x22x128xf32, #tpu.memory_space<vmem>>, vector<1x14x16xf32>
    %758 = vector.shape_cast %757 : vector<1x14x16xf32> to vector<14x16xf32>
    %c1_185 = arith.constant 1 : index
    %c8_186 = arith.constant 8 : index
    %c1_187 = arith.constant 1 : index
    %759 = vector.load %arg5[%c1_185, %c8_186, %c1_187] : memref<2x22x128xf32, #tpu.memory_space<vmem>>, vector<1x14x16xf32>
    %760 = vector.shape_cast %759 : vector<1x14x16xf32> to vector<14x16xf32>
    %c1_188 = arith.constant 1 : index
    %761 = memref.load %arg2[%c1_188] : memref<98xf32, #tpu.memory_space<smem>>
    %762 = vector.extract_strided_slice %758 {offsets = [0, 0], sizes = [8, 16], strides = [1, 1]} : vector<14x16xf32> to vector<8x16xf32>
    %763 = vector.broadcast %761 : f32 to vector<8x16xf32>
    %764 = arith.mulf %763, %762 : vector<8x16xf32>
    %c50_189 = arith.constant 50 : index
    %765 = memref.load %arg2[%c50_189] : memref<98xf32, #tpu.memory_space<smem>>
    %766 = vector.extract_strided_slice %760 {offsets = [0, 0], sizes = [8, 16], strides = [1, 1]} : vector<14x16xf32> to vector<8x16xf32>
    %767 = vector.broadcast %765 : f32 to vector<8x16xf32>
    %768 = arith.mulf %767, %766 : vector<8x16xf32>
    %769 = arith.addf %764, %768 : vector<8x16xf32>
    %770 = arith.addf %756, %769 : vector<8x16xf32>
    %c8_190 = arith.constant 8 : index
    %771 = memref.load %arg2[%c8_190] : memref<98xf32, #tpu.memory_space<smem>>
    %772 = vector.extract_strided_slice %758 {offsets = [1, 0], sizes = [8, 16], strides = [1, 1]} : vector<14x16xf32> to vector<8x16xf32>
    %773 = vector.broadcast %771 : f32 to vector<8x16xf32>
    %774 = arith.mulf %773, %772 : vector<8x16xf32>
    %c57_191 = arith.constant 57 : index
    %775 = memref.load %arg2[%c57_191] : memref<98xf32, #tpu.memory_space<smem>>
    %776 = vector.extract_strided_slice %760 {offsets = [1, 0], sizes = [8, 16], strides = [1, 1]} : vector<14x16xf32> to vector<8x16xf32>
    %777 = vector.broadcast %775 : f32 to vector<8x16xf32>
    %778 = arith.mulf %777, %776 : vector<8x16xf32>
    %779 = arith.addf %774, %778 : vector<8x16xf32>
    %780 = arith.addf %770, %779 : vector<8x16xf32>
    %c15_192 = arith.constant 15 : index
    %781 = memref.load %arg2[%c15_192] : memref<98xf32, #tpu.memory_space<smem>>
    %782 = vector.extract_strided_slice %758 {offsets = [2, 0], sizes = [8, 16], strides = [1, 1]} : vector<14x16xf32> to vector<8x16xf32>
    %783 = vector.broadcast %781 : f32 to vector<8x16xf32>
    %784 = arith.mulf %783, %782 : vector<8x16xf32>
    %c64_193 = arith.constant 64 : index
    %785 = memref.load %arg2[%c64_193] : memref<98xf32, #tpu.memory_space<smem>>
    %786 = vector.extract_strided_slice %760 {offsets = [2, 0], sizes = [8, 16], strides = [1, 1]} : vector<14x16xf32> to vector<8x16xf32>
    %787 = vector.broadcast %785 : f32 to vector<8x16xf32>
    %788 = arith.mulf %787, %786 : vector<8x16xf32>
    %789 = arith.addf %784, %788 : vector<8x16xf32>
    %790 = arith.addf %780, %789 : vector<8x16xf32>
    %c22_194 = arith.constant 22 : index
    %791 = memref.load %arg2[%c22_194] : memref<98xf32, #tpu.memory_space<smem>>
    %792 = vector.extract_strided_slice %758 {offsets = [3, 0], sizes = [8, 16], strides = [1, 1]} : vector<14x16xf32> to vector<8x16xf32>
    %793 = vector.broadcast %791 : f32 to vector<8x16xf32>
    %794 = arith.mulf %793, %792 : vector<8x16xf32>
    %c71_195 = arith.constant 71 : index
    %795 = memref.load %arg2[%c71_195] : memref<98xf32, #tpu.memory_space<smem>>
    %796 = vector.extract_strided_slice %760 {offsets = [3, 0], sizes = [8, 16], strides = [1, 1]} : vector<14x16xf32> to vector<8x16xf32>
    %797 = vector.broadcast %795 : f32 to vector<8x16xf32>
    %798 = arith.mulf %797, %796 : vector<8x16xf32>
    %799 = arith.addf %794, %798 : vector<8x16xf32>
    %800 = arith.addf %790, %799 : vector<8x16xf32>
    %c29_196 = arith.constant 29 : index
    %801 = memref.load %arg2[%c29_196] : memref<98xf32, #tpu.memory_space<smem>>
    %802 = vector.extract_strided_slice %758 {offsets = [4, 0], sizes = [8, 16], strides = [1, 1]} : vector<14x16xf32> to vector<8x16xf32>
    %803 = vector.broadcast %801 : f32 to vector<8x16xf32>
    %804 = arith.mulf %803, %802 : vector<8x16xf32>
    %c78_197 = arith.constant 78 : index
    %805 = memref.load %arg2[%c78_197] : memref<98xf32, #tpu.memory_space<smem>>
    %806 = vector.extract_strided_slice %760 {offsets = [4, 0], sizes = [8, 16], strides = [1, 1]} : vector<14x16xf32> to vector<8x16xf32>
    %807 = vector.broadcast %805 : f32 to vector<8x16xf32>
    %808 = arith.mulf %807, %806 : vector<8x16xf32>
    %809 = arith.addf %804, %808 : vector<8x16xf32>
    %810 = arith.addf %800, %809 : vector<8x16xf32>
    %c36_198 = arith.constant 36 : index
    %811 = memref.load %arg2[%c36_198] : memref<98xf32, #tpu.memory_space<smem>>
    %812 = vector.extract_strided_slice %758 {offsets = [5, 0], sizes = [8, 16], strides = [1, 1]} : vector<14x16xf32> to vector<8x16xf32>
    %813 = vector.broadcast %811 : f32 to vector<8x16xf32>
    %814 = arith.mulf %813, %812 : vector<8x16xf32>
    %c85_199 = arith.constant 85 : index
    %815 = memref.load %arg2[%c85_199] : memref<98xf32, #tpu.memory_space<smem>>
    %816 = vector.extract_strided_slice %760 {offsets = [5, 0], sizes = [8, 16], strides = [1, 1]} : vector<14x16xf32> to vector<8x16xf32>
    %817 = vector.broadcast %815 : f32 to vector<8x16xf32>
    %818 = arith.mulf %817, %816 : vector<8x16xf32>
    %819 = arith.addf %814, %818 : vector<8x16xf32>
    %820 = arith.addf %810, %819 : vector<8x16xf32>
    %c43_200 = arith.constant 43 : index
    %821 = memref.load %arg2[%c43_200] : memref<98xf32, #tpu.memory_space<smem>>
    %822 = vector.extract_strided_slice %758 {offsets = [6, 0], sizes = [8, 16], strides = [1, 1]} : vector<14x16xf32> to vector<8x16xf32>
    %823 = vector.broadcast %821 : f32 to vector<8x16xf32>
    %824 = arith.mulf %823, %822 : vector<8x16xf32>
    %c92_201 = arith.constant 92 : index
    %825 = memref.load %arg2[%c92_201] : memref<98xf32, #tpu.memory_space<smem>>
    %826 = vector.extract_strided_slice %760 {offsets = [6, 0], sizes = [8, 16], strides = [1, 1]} : vector<14x16xf32> to vector<8x16xf32>
    %827 = vector.broadcast %825 : f32 to vector<8x16xf32>
    %828 = arith.mulf %827, %826 : vector<8x16xf32>
    %829 = arith.addf %824, %828 : vector<8x16xf32>
    %830 = arith.addf %820, %829 : vector<8x16xf32>
    %c0_202 = arith.constant 0 : index
    %c8_203 = arith.constant 8 : index
    %c2_204 = arith.constant 2 : index
    %831 = vector.load %arg5[%c0_202, %c8_203, %c2_204] : memref<2x22x128xf32, #tpu.memory_space<vmem>>, vector<1x14x16xf32>
    %832 = vector.shape_cast %831 : vector<1x14x16xf32> to vector<14x16xf32>
    %c1_205 = arith.constant 1 : index
    %c8_206 = arith.constant 8 : index
    %c2_207 = arith.constant 2 : index
    %833 = vector.load %arg5[%c1_205, %c8_206, %c2_207] : memref<2x22x128xf32, #tpu.memory_space<vmem>>, vector<1x14x16xf32>
    %834 = vector.shape_cast %833 : vector<1x14x16xf32> to vector<14x16xf32>
    %c2_208 = arith.constant 2 : index
    %835 = memref.load %arg2[%c2_208] : memref<98xf32, #tpu.memory_space<smem>>
    %836 = vector.extract_strided_slice %832 {offsets = [0, 0], sizes = [8, 16], strides = [1, 1]} : vector<14x16xf32> to vector<8x16xf32>
    %837 = vector.broadcast %835 : f32 to vector<8x16xf32>
    %838 = arith.mulf %837, %836 : vector<8x16xf32>
    %c51_209 = arith.constant 51 : index
    %839 = memref.load %arg2[%c51_209] : memref<98xf32, #tpu.memory_space<smem>>
    %840 = vector.extract_strided_slice %834 {offsets = [0, 0], sizes = [8, 16], strides = [1, 1]} : vector<14x16xf32> to vector<8x16xf32>
    %841 = vector.broadcast %839 : f32 to vector<8x16xf32>
    %842 = arith.mulf %841, %840 : vector<8x16xf32>
    %843 = arith.addf %838, %842 : vector<8x16xf32>
    %844 = arith.addf %830, %843 : vector<8x16xf32>
    %c9_210 = arith.constant 9 : index
    %845 = memref.load %arg2[%c9_210] : memref<98xf32, #tpu.memory_space<smem>>
    %846 = vector.extract_strided_slice %832 {offsets = [1, 0], sizes = [8, 16], strides = [1, 1]} : vector<14x16xf32> to vector<8x16xf32>
    %847 = vector.broadcast %845 : f32 to vector<8x16xf32>
    %848 = arith.mulf %847, %846 : vector<8x16xf32>
    %c58_211 = arith.constant 58 : index
    %849 = memref.load %arg2[%c58_211] : memref<98xf32, #tpu.memory_space<smem>>
    %850 = vector.extract_strided_slice %834 {offsets = [1, 0], sizes = [8, 16], strides = [1, 1]} : vector<14x16xf32> to vector<8x16xf32>
    %851 = vector.broadcast %849 : f32 to vector<8x16xf32>
    %852 = arith.mulf %851, %850 : vector<8x16xf32>
    %853 = arith.addf %848, %852 : vector<8x16xf32>
    %854 = arith.addf %844, %853 : vector<8x16xf32>
    %c16_212 = arith.constant 16 : index
    %855 = memref.load %arg2[%c16_212] : memref<98xf32, #tpu.memory_space<smem>>
    %856 = vector.extract_strided_slice %832 {offsets = [2, 0], sizes = [8, 16], strides = [1, 1]} : vector<14x16xf32> to vector<8x16xf32>
    %857 = vector.broadcast %855 : f32 to vector<8x16xf32>
    %858 = arith.mulf %857, %856 : vector<8x16xf32>
    %c65_213 = arith.constant 65 : index
    %859 = memref.load %arg2[%c65_213] : memref<98xf32, #tpu.memory_space<smem>>
    %860 = vector.extract_strided_slice %834 {offsets = [2, 0], sizes = [8, 16], strides = [1, 1]} : vector<14x16xf32> to vector<8x16xf32>
    %861 = vector.broadcast %859 : f32 to vector<8x16xf32>
    %862 = arith.mulf %861, %860 : vector<8x16xf32>
    %863 = arith.addf %858, %862 : vector<8x16xf32>
    %864 = arith.addf %854, %863 : vector<8x16xf32>
    %c23_214 = arith.constant 23 : index
    %865 = memref.load %arg2[%c23_214] : memref<98xf32, #tpu.memory_space<smem>>
    %866 = vector.extract_strided_slice %832 {offsets = [3, 0], sizes = [8, 16], strides = [1, 1]} : vector<14x16xf32> to vector<8x16xf32>
    %867 = vector.broadcast %865 : f32 to vector<8x16xf32>
    %868 = arith.mulf %867, %866 : vector<8x16xf32>
    %c72_215 = arith.constant 72 : index
    %869 = memref.load %arg2[%c72_215] : memref<98xf32, #tpu.memory_space<smem>>
    %870 = vector.extract_strided_slice %834 {offsets = [3, 0], sizes = [8, 16], strides = [1, 1]} : vector<14x16xf32> to vector<8x16xf32>
    %871 = vector.broadcast %869 : f32 to vector<8x16xf32>
    %872 = arith.mulf %871, %870 : vector<8x16xf32>
    %873 = arith.addf %868, %872 : vector<8x16xf32>
    %874 = arith.addf %864, %873 : vector<8x16xf32>
    %c30_216 = arith.constant 30 : index
    %875 = memref.load %arg2[%c30_216] : memref<98xf32, #tpu.memory_space<smem>>
    %876 = vector.extract_strided_slice %832 {offsets = [4, 0], sizes = [8, 16], strides = [1, 1]} : vector<14x16xf32> to vector<8x16xf32>
    %877 = vector.broadcast %875 : f32 to vector<8x16xf32>
    %878 = arith.mulf %877, %876 : vector<8x16xf32>
    %c79_217 = arith.constant 79 : index
    %879 = memref.load %arg2[%c79_217] : memref<98xf32, #tpu.memory_space<smem>>
    %880 = vector.extract_strided_slice %834 {offsets = [4, 0], sizes = [8, 16], strides = [1, 1]} : vector<14x16xf32> to vector<8x16xf32>
    %881 = vector.broadcast %879 : f32 to vector<8x16xf32>
    %882 = arith.mulf %881, %880 : vector<8x16xf32>
    %883 = arith.addf %878, %882 : vector<8x16xf32>
    %884 = arith.addf %874, %883 : vector<8x16xf32>
    %c37_218 = arith.constant 37 : index
    %885 = memref.load %arg2[%c37_218] : memref<98xf32, #tpu.memory_space<smem>>
    %886 = vector.extract_strided_slice %832 {offsets = [5, 0], sizes = [8, 16], strides = [1, 1]} : vector<14x16xf32> to vector<8x16xf32>
    %887 = vector.broadcast %885 : f32 to vector<8x16xf32>
    %888 = arith.mulf %887, %886 : vector<8x16xf32>
    %c86_219 = arith.constant 86 : index
    %889 = memref.load %arg2[%c86_219] : memref<98xf32, #tpu.memory_space<smem>>
    %890 = vector.extract_strided_slice %834 {offsets = [5, 0], sizes = [8, 16], strides = [1, 1]} : vector<14x16xf32> to vector<8x16xf32>
    %891 = vector.broadcast %889 : f32 to vector<8x16xf32>
    %892 = arith.mulf %891, %890 : vector<8x16xf32>
    %893 = arith.addf %888, %892 : vector<8x16xf32>
    %894 = arith.addf %884, %893 : vector<8x16xf32>
    %c44_220 = arith.constant 44 : index
    %895 = memref.load %arg2[%c44_220] : memref<98xf32, #tpu.memory_space<smem>>
    %896 = vector.extract_strided_slice %832 {offsets = [6, 0], sizes = [8, 16], strides = [1, 1]} : vector<14x16xf32> to vector<8x16xf32>
    %897 = vector.broadcast %895 : f32 to vector<8x16xf32>
    %898 = arith.mulf %897, %896 : vector<8x16xf32>
    %c93_221 = arith.constant 93 : index
    %899 = memref.load %arg2[%c93_221] : memref<98xf32, #tpu.memory_space<smem>>
    %900 = vector.extract_strided_slice %834 {offsets = [6, 0], sizes = [8, 16], strides = [1, 1]} : vector<14x16xf32> to vector<8x16xf32>
    %901 = vector.broadcast %899 : f32 to vector<8x16xf32>
    %902 = arith.mulf %901, %900 : vector<8x16xf32>
    %903 = arith.addf %898, %902 : vector<8x16xf32>
    %904 = arith.addf %894, %903 : vector<8x16xf32>
    %c0_222 = arith.constant 0 : index
    %c8_223 = arith.constant 8 : index
    %c3_224 = arith.constant 3 : index
    %905 = vector.load %arg5[%c0_222, %c8_223, %c3_224] : memref<2x22x128xf32, #tpu.memory_space<vmem>>, vector<1x14x16xf32>
    %906 = vector.shape_cast %905 : vector<1x14x16xf32> to vector<14x16xf32>
    %c1_225 = arith.constant 1 : index
    %c8_226 = arith.constant 8 : index
    %c3_227 = arith.constant 3 : index
    %907 = vector.load %arg5[%c1_225, %c8_226, %c3_227] : memref<2x22x128xf32, #tpu.memory_space<vmem>>, vector<1x14x16xf32>
    %908 = vector.shape_cast %907 : vector<1x14x16xf32> to vector<14x16xf32>
    %c3_228 = arith.constant 3 : index
    %909 = memref.load %arg2[%c3_228] : memref<98xf32, #tpu.memory_space<smem>>
    %910 = vector.extract_strided_slice %906 {offsets = [0, 0], sizes = [8, 16], strides = [1, 1]} : vector<14x16xf32> to vector<8x16xf32>
    %911 = vector.broadcast %909 : f32 to vector<8x16xf32>
    %912 = arith.mulf %911, %910 : vector<8x16xf32>
    %c52_229 = arith.constant 52 : index
    %913 = memref.load %arg2[%c52_229] : memref<98xf32, #tpu.memory_space<smem>>
    %914 = vector.extract_strided_slice %908 {offsets = [0, 0], sizes = [8, 16], strides = [1, 1]} : vector<14x16xf32> to vector<8x16xf32>
    %915 = vector.broadcast %913 : f32 to vector<8x16xf32>
    %916 = arith.mulf %915, %914 : vector<8x16xf32>
    %917 = arith.addf %912, %916 : vector<8x16xf32>
    %918 = arith.addf %904, %917 : vector<8x16xf32>
    %c10_230 = arith.constant 10 : index
    %919 = memref.load %arg2[%c10_230] : memref<98xf32, #tpu.memory_space<smem>>
    %920 = vector.extract_strided_slice %906 {offsets = [1, 0], sizes = [8, 16], strides = [1, 1]} : vector<14x16xf32> to vector<8x16xf32>
    %921 = vector.broadcast %919 : f32 to vector<8x16xf32>
    %922 = arith.mulf %921, %920 : vector<8x16xf32>
    %c59_231 = arith.constant 59 : index
    %923 = memref.load %arg2[%c59_231] : memref<98xf32, #tpu.memory_space<smem>>
    %924 = vector.extract_strided_slice %908 {offsets = [1, 0], sizes = [8, 16], strides = [1, 1]} : vector<14x16xf32> to vector<8x16xf32>
    %925 = vector.broadcast %923 : f32 to vector<8x16xf32>
    %926 = arith.mulf %925, %924 : vector<8x16xf32>
    %927 = arith.addf %922, %926 : vector<8x16xf32>
    %928 = arith.addf %918, %927 : vector<8x16xf32>
    %c17_232 = arith.constant 17 : index
    %929 = memref.load %arg2[%c17_232] : memref<98xf32, #tpu.memory_space<smem>>
    %930 = vector.extract_strided_slice %906 {offsets = [2, 0], sizes = [8, 16], strides = [1, 1]} : vector<14x16xf32> to vector<8x16xf32>
    %931 = vector.broadcast %929 : f32 to vector<8x16xf32>
    %932 = arith.mulf %931, %930 : vector<8x16xf32>
    %c66_233 = arith.constant 66 : index
    %933 = memref.load %arg2[%c66_233] : memref<98xf32, #tpu.memory_space<smem>>
    %934 = vector.extract_strided_slice %908 {offsets = [2, 0], sizes = [8, 16], strides = [1, 1]} : vector<14x16xf32> to vector<8x16xf32>
    %935 = vector.broadcast %933 : f32 to vector<8x16xf32>
    %936 = arith.mulf %935, %934 : vector<8x16xf32>
    %937 = arith.addf %932, %936 : vector<8x16xf32>
    %938 = arith.addf %928, %937 : vector<8x16xf32>
    %c24_234 = arith.constant 24 : index
    %939 = memref.load %arg2[%c24_234] : memref<98xf32, #tpu.memory_space<smem>>
    %940 = vector.extract_strided_slice %906 {offsets = [3, 0], sizes = [8, 16], strides = [1, 1]} : vector<14x16xf32> to vector<8x16xf32>
    %941 = vector.broadcast %939 : f32 to vector<8x16xf32>
    %942 = arith.mulf %941, %940 : vector<8x16xf32>
    %c73_235 = arith.constant 73 : index
    %943 = memref.load %arg2[%c73_235] : memref<98xf32, #tpu.memory_space<smem>>
    %944 = vector.extract_strided_slice %908 {offsets = [3, 0], sizes = [8, 16], strides = [1, 1]} : vector<14x16xf32> to vector<8x16xf32>
    %945 = vector.broadcast %943 : f32 to vector<8x16xf32>
    %946 = arith.mulf %945, %944 : vector<8x16xf32>
    %947 = arith.addf %942, %946 : vector<8x16xf32>
    %948 = arith.addf %938, %947 : vector<8x16xf32>
    %c31_236 = arith.constant 31 : index
    %949 = memref.load %arg2[%c31_236] : memref<98xf32, #tpu.memory_space<smem>>
    %950 = vector.extract_strided_slice %906 {offsets = [4, 0], sizes = [8, 16], strides = [1, 1]} : vector<14x16xf32> to vector<8x16xf32>
    %951 = vector.broadcast %949 : f32 to vector<8x16xf32>
    %952 = arith.mulf %951, %950 : vector<8x16xf32>
    %c80_237 = arith.constant 80 : index
    %953 = memref.load %arg2[%c80_237] : memref<98xf32, #tpu.memory_space<smem>>
    %954 = vector.extract_strided_slice %908 {offsets = [4, 0], sizes = [8, 16], strides = [1, 1]} : vector<14x16xf32> to vector<8x16xf32>
    %955 = vector.broadcast %953 : f32 to vector<8x16xf32>
    %956 = arith.mulf %955, %954 : vector<8x16xf32>
    %957 = arith.addf %952, %956 : vector<8x16xf32>
    %958 = arith.addf %948, %957 : vector<8x16xf32>
    %c38_238 = arith.constant 38 : index
    %959 = memref.load %arg2[%c38_238] : memref<98xf32, #tpu.memory_space<smem>>
    %960 = vector.extract_strided_slice %906 {offsets = [5, 0], sizes = [8, 16], strides = [1, 1]} : vector<14x16xf32> to vector<8x16xf32>
    %961 = vector.broadcast %959 : f32 to vector<8x16xf32>
    %962 = arith.mulf %961, %960 : vector<8x16xf32>
    %c87_239 = arith.constant 87 : index
    %963 = memref.load %arg2[%c87_239] : memref<98xf32, #tpu.memory_space<smem>>
    %964 = vector.extract_strided_slice %908 {offsets = [5, 0], sizes = [8, 16], strides = [1, 1]} : vector<14x16xf32> to vector<8x16xf32>
    %965 = vector.broadcast %963 : f32 to vector<8x16xf32>
    %966 = arith.mulf %965, %964 : vector<8x16xf32>
    %967 = arith.addf %962, %966 : vector<8x16xf32>
    %968 = arith.addf %958, %967 : vector<8x16xf32>
    %c45_240 = arith.constant 45 : index
    %969 = memref.load %arg2[%c45_240] : memref<98xf32, #tpu.memory_space<smem>>
    %970 = vector.extract_strided_slice %906 {offsets = [6, 0], sizes = [8, 16], strides = [1, 1]} : vector<14x16xf32> to vector<8x16xf32>
    %971 = vector.broadcast %969 : f32 to vector<8x16xf32>
    %972 = arith.mulf %971, %970 : vector<8x16xf32>
    %c94_241 = arith.constant 94 : index
    %973 = memref.load %arg2[%c94_241] : memref<98xf32, #tpu.memory_space<smem>>
    %974 = vector.extract_strided_slice %908 {offsets = [6, 0], sizes = [8, 16], strides = [1, 1]} : vector<14x16xf32> to vector<8x16xf32>
    %975 = vector.broadcast %973 : f32 to vector<8x16xf32>
    %976 = arith.mulf %975, %974 : vector<8x16xf32>
    %977 = arith.addf %972, %976 : vector<8x16xf32>
    %978 = arith.addf %968, %977 : vector<8x16xf32>
    %c0_242 = arith.constant 0 : index
    %c8_243 = arith.constant 8 : index
    %c4_244 = arith.constant 4 : index
    %979 = vector.load %arg5[%c0_242, %c8_243, %c4_244] : memref<2x22x128xf32, #tpu.memory_space<vmem>>, vector<1x14x16xf32>
    %980 = vector.shape_cast %979 : vector<1x14x16xf32> to vector<14x16xf32>
    %c1_245 = arith.constant 1 : index
    %c8_246 = arith.constant 8 : index
    %c4_247 = arith.constant 4 : index
    %981 = vector.load %arg5[%c1_245, %c8_246, %c4_247] : memref<2x22x128xf32, #tpu.memory_space<vmem>>, vector<1x14x16xf32>
    %982 = vector.shape_cast %981 : vector<1x14x16xf32> to vector<14x16xf32>
    %c4_248 = arith.constant 4 : index
    %983 = memref.load %arg2[%c4_248] : memref<98xf32, #tpu.memory_space<smem>>
    %984 = vector.extract_strided_slice %980 {offsets = [0, 0], sizes = [8, 16], strides = [1, 1]} : vector<14x16xf32> to vector<8x16xf32>
    %985 = vector.broadcast %983 : f32 to vector<8x16xf32>
    %986 = arith.mulf %985, %984 : vector<8x16xf32>
    %c53_249 = arith.constant 53 : index
    %987 = memref.load %arg2[%c53_249] : memref<98xf32, #tpu.memory_space<smem>>
    %988 = vector.extract_strided_slice %982 {offsets = [0, 0], sizes = [8, 16], strides = [1, 1]} : vector<14x16xf32> to vector<8x16xf32>
    %989 = vector.broadcast %987 : f32 to vector<8x16xf32>
    %990 = arith.mulf %989, %988 : vector<8x16xf32>
    %991 = arith.addf %986, %990 : vector<8x16xf32>
    %992 = arith.addf %978, %991 : vector<8x16xf32>
    %c11_250 = arith.constant 11 : index
    %993 = memref.load %arg2[%c11_250] : memref<98xf32, #tpu.memory_space<smem>>
    %994 = vector.extract_strided_slice %980 {offsets = [1, 0], sizes = [8, 16], strides = [1, 1]} : vector<14x16xf32> to vector<8x16xf32>
    %995 = vector.broadcast %993 : f32 to vector<8x16xf32>
    %996 = arith.mulf %995, %994 : vector<8x16xf32>
    %c60_251 = arith.constant 60 : index
    %997 = memref.load %arg2[%c60_251] : memref<98xf32, #tpu.memory_space<smem>>
    %998 = vector.extract_strided_slice %982 {offsets = [1, 0], sizes = [8, 16], strides = [1, 1]} : vector<14x16xf32> to vector<8x16xf32>
    %999 = vector.broadcast %997 : f32 to vector<8x16xf32>
    %1000 = arith.mulf %999, %998 : vector<8x16xf32>
    %1001 = arith.addf %996, %1000 : vector<8x16xf32>
    %1002 = arith.addf %992, %1001 : vector<8x16xf32>
    %c18_252 = arith.constant 18 : index
    %1003 = memref.load %arg2[%c18_252] : memref<98xf32, #tpu.memory_space<smem>>
    %1004 = vector.extract_strided_slice %980 {offsets = [2, 0], sizes = [8, 16], strides = [1, 1]} : vector<14x16xf32> to vector<8x16xf32>
    %1005 = vector.broadcast %1003 : f32 to vector<8x16xf32>
    %1006 = arith.mulf %1005, %1004 : vector<8x16xf32>
    %c67_253 = arith.constant 67 : index
    %1007 = memref.load %arg2[%c67_253] : memref<98xf32, #tpu.memory_space<smem>>
    %1008 = vector.extract_strided_slice %982 {offsets = [2, 0], sizes = [8, 16], strides = [1, 1]} : vector<14x16xf32> to vector<8x16xf32>
    %1009 = vector.broadcast %1007 : f32 to vector<8x16xf32>
    %1010 = arith.mulf %1009, %1008 : vector<8x16xf32>
    %1011 = arith.addf %1006, %1010 : vector<8x16xf32>
    %1012 = arith.addf %1002, %1011 : vector<8x16xf32>
    %c25_254 = arith.constant 25 : index
    %1013 = memref.load %arg2[%c25_254] : memref<98xf32, #tpu.memory_space<smem>>
    %1014 = vector.extract_strided_slice %980 {offsets = [3, 0], sizes = [8, 16], strides = [1, 1]} : vector<14x16xf32> to vector<8x16xf32>
    %1015 = vector.broadcast %1013 : f32 to vector<8x16xf32>
    %1016 = arith.mulf %1015, %1014 : vector<8x16xf32>
    %c74_255 = arith.constant 74 : index
    %1017 = memref.load %arg2[%c74_255] : memref<98xf32, #tpu.memory_space<smem>>
    %1018 = vector.extract_strided_slice %982 {offsets = [3, 0], sizes = [8, 16], strides = [1, 1]} : vector<14x16xf32> to vector<8x16xf32>
    %1019 = vector.broadcast %1017 : f32 to vector<8x16xf32>
    %1020 = arith.mulf %1019, %1018 : vector<8x16xf32>
    %1021 = arith.addf %1016, %1020 : vector<8x16xf32>
    %1022 = arith.addf %1012, %1021 : vector<8x16xf32>
    %c32_256 = arith.constant 32 : index
    %1023 = memref.load %arg2[%c32_256] : memref<98xf32, #tpu.memory_space<smem>>
    %1024 = vector.extract_strided_slice %980 {offsets = [4, 0], sizes = [8, 16], strides = [1, 1]} : vector<14x16xf32> to vector<8x16xf32>
    %1025 = vector.broadcast %1023 : f32 to vector<8x16xf32>
    %1026 = arith.mulf %1025, %1024 : vector<8x16xf32>
    %c81_257 = arith.constant 81 : index
    %1027 = memref.load %arg2[%c81_257] : memref<98xf32, #tpu.memory_space<smem>>
    %1028 = vector.extract_strided_slice %982 {offsets = [4, 0], sizes = [8, 16], strides = [1, 1]} : vector<14x16xf32> to vector<8x16xf32>
    %1029 = vector.broadcast %1027 : f32 to vector<8x16xf32>
    %1030 = arith.mulf %1029, %1028 : vector<8x16xf32>
    %1031 = arith.addf %1026, %1030 : vector<8x16xf32>
    %1032 = arith.addf %1022, %1031 : vector<8x16xf32>
    %c39_258 = arith.constant 39 : index
    %1033 = memref.load %arg2[%c39_258] : memref<98xf32, #tpu.memory_space<smem>>
    %1034 = vector.extract_strided_slice %980 {offsets = [5, 0], sizes = [8, 16], strides = [1, 1]} : vector<14x16xf32> to vector<8x16xf32>
    %1035 = vector.broadcast %1033 : f32 to vector<8x16xf32>
    %1036 = arith.mulf %1035, %1034 : vector<8x16xf32>
    %c88_259 = arith.constant 88 : index
    %1037 = memref.load %arg2[%c88_259] : memref<98xf32, #tpu.memory_space<smem>>
    %1038 = vector.extract_strided_slice %982 {offsets = [5, 0], sizes = [8, 16], strides = [1, 1]} : vector<14x16xf32> to vector<8x16xf32>
    %1039 = vector.broadcast %1037 : f32 to vector<8x16xf32>
    %1040 = arith.mulf %1039, %1038 : vector<8x16xf32>
    %1041 = arith.addf %1036, %1040 : vector<8x16xf32>
    %1042 = arith.addf %1032, %1041 : vector<8x16xf32>
    %c46_260 = arith.constant 46 : index
    %1043 = memref.load %arg2[%c46_260] : memref<98xf32, #tpu.memory_space<smem>>
    %1044 = vector.extract_strided_slice %980 {offsets = [6, 0], sizes = [8, 16], strides = [1, 1]} : vector<14x16xf32> to vector<8x16xf32>
    %1045 = vector.broadcast %1043 : f32 to vector<8x16xf32>
    %1046 = arith.mulf %1045, %1044 : vector<8x16xf32>
    %c95_261 = arith.constant 95 : index
    %1047 = memref.load %arg2[%c95_261] : memref<98xf32, #tpu.memory_space<smem>>
    %1048 = vector.extract_strided_slice %982 {offsets = [6, 0], sizes = [8, 16], strides = [1, 1]} : vector<14x16xf32> to vector<8x16xf32>
    %1049 = vector.broadcast %1047 : f32 to vector<8x16xf32>
    %1050 = arith.mulf %1049, %1048 : vector<8x16xf32>
    %1051 = arith.addf %1046, %1050 : vector<8x16xf32>
    %1052 = arith.addf %1042, %1051 : vector<8x16xf32>
    %c0_262 = arith.constant 0 : index
    %c8_263 = arith.constant 8 : index
    %c5_264 = arith.constant 5 : index
    %1053 = vector.load %arg5[%c0_262, %c8_263, %c5_264] : memref<2x22x128xf32, #tpu.memory_space<vmem>>, vector<1x14x16xf32>
    %1054 = vector.shape_cast %1053 : vector<1x14x16xf32> to vector<14x16xf32>
    %c1_265 = arith.constant 1 : index
    %c8_266 = arith.constant 8 : index
    %c5_267 = arith.constant 5 : index
    %1055 = vector.load %arg5[%c1_265, %c8_266, %c5_267] : memref<2x22x128xf32, #tpu.memory_space<vmem>>, vector<1x14x16xf32>
    %1056 = vector.shape_cast %1055 : vector<1x14x16xf32> to vector<14x16xf32>
    %c5_268 = arith.constant 5 : index
    %1057 = memref.load %arg2[%c5_268] : memref<98xf32, #tpu.memory_space<smem>>
    %1058 = vector.extract_strided_slice %1054 {offsets = [0, 0], sizes = [8, 16], strides = [1, 1]} : vector<14x16xf32> to vector<8x16xf32>
    %1059 = vector.broadcast %1057 : f32 to vector<8x16xf32>
    %1060 = arith.mulf %1059, %1058 : vector<8x16xf32>
    %c54_269 = arith.constant 54 : index
    %1061 = memref.load %arg2[%c54_269] : memref<98xf32, #tpu.memory_space<smem>>
    %1062 = vector.extract_strided_slice %1056 {offsets = [0, 0], sizes = [8, 16], strides = [1, 1]} : vector<14x16xf32> to vector<8x16xf32>
    %1063 = vector.broadcast %1061 : f32 to vector<8x16xf32>
    %1064 = arith.mulf %1063, %1062 : vector<8x16xf32>
    %1065 = arith.addf %1060, %1064 : vector<8x16xf32>
    %1066 = arith.addf %1052, %1065 : vector<8x16xf32>
    %c12_270 = arith.constant 12 : index
    %1067 = memref.load %arg2[%c12_270] : memref<98xf32, #tpu.memory_space<smem>>
    %1068 = vector.extract_strided_slice %1054 {offsets = [1, 0], sizes = [8, 16], strides = [1, 1]} : vector<14x16xf32> to vector<8x16xf32>
    %1069 = vector.broadcast %1067 : f32 to vector<8x16xf32>
    %1070 = arith.mulf %1069, %1068 : vector<8x16xf32>
    %c61_271 = arith.constant 61 : index
    %1071 = memref.load %arg2[%c61_271] : memref<98xf32, #tpu.memory_space<smem>>
    %1072 = vector.extract_strided_slice %1056 {offsets = [1, 0], sizes = [8, 16], strides = [1, 1]} : vector<14x16xf32> to vector<8x16xf32>
    %1073 = vector.broadcast %1071 : f32 to vector<8x16xf32>
    %1074 = arith.mulf %1073, %1072 : vector<8x16xf32>
    %1075 = arith.addf %1070, %1074 : vector<8x16xf32>
    %1076 = arith.addf %1066, %1075 : vector<8x16xf32>
    %c19_272 = arith.constant 19 : index
    %1077 = memref.load %arg2[%c19_272] : memref<98xf32, #tpu.memory_space<smem>>
    %1078 = vector.extract_strided_slice %1054 {offsets = [2, 0], sizes = [8, 16], strides = [1, 1]} : vector<14x16xf32> to vector<8x16xf32>
    %1079 = vector.broadcast %1077 : f32 to vector<8x16xf32>
    %1080 = arith.mulf %1079, %1078 : vector<8x16xf32>
    %c68_273 = arith.constant 68 : index
    %1081 = memref.load %arg2[%c68_273] : memref<98xf32, #tpu.memory_space<smem>>
    %1082 = vector.extract_strided_slice %1056 {offsets = [2, 0], sizes = [8, 16], strides = [1, 1]} : vector<14x16xf32> to vector<8x16xf32>
    %1083 = vector.broadcast %1081 : f32 to vector<8x16xf32>
    %1084 = arith.mulf %1083, %1082 : vector<8x16xf32>
    %1085 = arith.addf %1080, %1084 : vector<8x16xf32>
    %1086 = arith.addf %1076, %1085 : vector<8x16xf32>
    %c26_274 = arith.constant 26 : index
    %1087 = memref.load %arg2[%c26_274] : memref<98xf32, #tpu.memory_space<smem>>
    %1088 = vector.extract_strided_slice %1054 {offsets = [3, 0], sizes = [8, 16], strides = [1, 1]} : vector<14x16xf32> to vector<8x16xf32>
    %1089 = vector.broadcast %1087 : f32 to vector<8x16xf32>
    %1090 = arith.mulf %1089, %1088 : vector<8x16xf32>
    %c75_275 = arith.constant 75 : index
    %1091 = memref.load %arg2[%c75_275] : memref<98xf32, #tpu.memory_space<smem>>
    %1092 = vector.extract_strided_slice %1056 {offsets = [3, 0], sizes = [8, 16], strides = [1, 1]} : vector<14x16xf32> to vector<8x16xf32>
    %1093 = vector.broadcast %1091 : f32 to vector<8x16xf32>
    %1094 = arith.mulf %1093, %1092 : vector<8x16xf32>
    %1095 = arith.addf %1090, %1094 : vector<8x16xf32>
    %1096 = arith.addf %1086, %1095 : vector<8x16xf32>
    %c33_276 = arith.constant 33 : index
    %1097 = memref.load %arg2[%c33_276] : memref<98xf32, #tpu.memory_space<smem>>
    %1098 = vector.extract_strided_slice %1054 {offsets = [4, 0], sizes = [8, 16], strides = [1, 1]} : vector<14x16xf32> to vector<8x16xf32>
    %1099 = vector.broadcast %1097 : f32 to vector<8x16xf32>
    %1100 = arith.mulf %1099, %1098 : vector<8x16xf32>
    %c82_277 = arith.constant 82 : index
    %1101 = memref.load %arg2[%c82_277] : memref<98xf32, #tpu.memory_space<smem>>
    %1102 = vector.extract_strided_slice %1056 {offsets = [4, 0], sizes = [8, 16], strides = [1, 1]} : vector<14x16xf32> to vector<8x16xf32>
    %1103 = vector.broadcast %1101 : f32 to vector<8x16xf32>
    %1104 = arith.mulf %1103, %1102 : vector<8x16xf32>
    %1105 = arith.addf %1100, %1104 : vector<8x16xf32>
    %1106 = arith.addf %1096, %1105 : vector<8x16xf32>
    %c40_278 = arith.constant 40 : index
    %1107 = memref.load %arg2[%c40_278] : memref<98xf32, #tpu.memory_space<smem>>
    %1108 = vector.extract_strided_slice %1054 {offsets = [5, 0], sizes = [8, 16], strides = [1, 1]} : vector<14x16xf32> to vector<8x16xf32>
    %1109 = vector.broadcast %1107 : f32 to vector<8x16xf32>
    %1110 = arith.mulf %1109, %1108 : vector<8x16xf32>
    %c89_279 = arith.constant 89 : index
    %1111 = memref.load %arg2[%c89_279] : memref<98xf32, #tpu.memory_space<smem>>
    %1112 = vector.extract_strided_slice %1056 {offsets = [5, 0], sizes = [8, 16], strides = [1, 1]} : vector<14x16xf32> to vector<8x16xf32>
    %1113 = vector.broadcast %1111 : f32 to vector<8x16xf32>
    %1114 = arith.mulf %1113, %1112 : vector<8x16xf32>
    %1115 = arith.addf %1110, %1114 : vector<8x16xf32>
    %1116 = arith.addf %1106, %1115 : vector<8x16xf32>
    %c47_280 = arith.constant 47 : index
    %1117 = memref.load %arg2[%c47_280] : memref<98xf32, #tpu.memory_space<smem>>
    %1118 = vector.extract_strided_slice %1054 {offsets = [6, 0], sizes = [8, 16], strides = [1, 1]} : vector<14x16xf32> to vector<8x16xf32>
    %1119 = vector.broadcast %1117 : f32 to vector<8x16xf32>
    %1120 = arith.mulf %1119, %1118 : vector<8x16xf32>
    %c96_281 = arith.constant 96 : index
    %1121 = memref.load %arg2[%c96_281] : memref<98xf32, #tpu.memory_space<smem>>
    %1122 = vector.extract_strided_slice %1056 {offsets = [6, 0], sizes = [8, 16], strides = [1, 1]} : vector<14x16xf32> to vector<8x16xf32>
    %1123 = vector.broadcast %1121 : f32 to vector<8x16xf32>
    %1124 = arith.mulf %1123, %1122 : vector<8x16xf32>
    %1125 = arith.addf %1120, %1124 : vector<8x16xf32>
    %1126 = arith.addf %1116, %1125 : vector<8x16xf32>
    %c0_282 = arith.constant 0 : index
    %c8_283 = arith.constant 8 : index
    %c6_284 = arith.constant 6 : index
    %1127 = vector.load %arg5[%c0_282, %c8_283, %c6_284] : memref<2x22x128xf32, #tpu.memory_space<vmem>>, vector<1x14x16xf32>
    %1128 = vector.shape_cast %1127 : vector<1x14x16xf32> to vector<14x16xf32>
    %c1_285 = arith.constant 1 : index
    %c8_286 = arith.constant 8 : index
    %c6_287 = arith.constant 6 : index
    %1129 = vector.load %arg5[%c1_285, %c8_286, %c6_287] : memref<2x22x128xf32, #tpu.memory_space<vmem>>, vector<1x14x16xf32>
    %1130 = vector.shape_cast %1129 : vector<1x14x16xf32> to vector<14x16xf32>
    %c6_288 = arith.constant 6 : index
    %1131 = memref.load %arg2[%c6_288] : memref<98xf32, #tpu.memory_space<smem>>
    %1132 = vector.extract_strided_slice %1128 {offsets = [0, 0], sizes = [8, 16], strides = [1, 1]} : vector<14x16xf32> to vector<8x16xf32>
    %1133 = vector.broadcast %1131 : f32 to vector<8x16xf32>
    %1134 = arith.mulf %1133, %1132 : vector<8x16xf32>
    %c55_289 = arith.constant 55 : index
    %1135 = memref.load %arg2[%c55_289] : memref<98xf32, #tpu.memory_space<smem>>
    %1136 = vector.extract_strided_slice %1130 {offsets = [0, 0], sizes = [8, 16], strides = [1, 1]} : vector<14x16xf32> to vector<8x16xf32>
    %1137 = vector.broadcast %1135 : f32 to vector<8x16xf32>
    %1138 = arith.mulf %1137, %1136 : vector<8x16xf32>
    %1139 = arith.addf %1134, %1138 : vector<8x16xf32>
    %1140 = arith.addf %1126, %1139 : vector<8x16xf32>
    %c13_290 = arith.constant 13 : index
    %1141 = memref.load %arg2[%c13_290] : memref<98xf32, #tpu.memory_space<smem>>
    %1142 = vector.extract_strided_slice %1128 {offsets = [1, 0], sizes = [8, 16], strides = [1, 1]} : vector<14x16xf32> to vector<8x16xf32>
    %1143 = vector.broadcast %1141 : f32 to vector<8x16xf32>
    %1144 = arith.mulf %1143, %1142 : vector<8x16xf32>
    %c62_291 = arith.constant 62 : index
    %1145 = memref.load %arg2[%c62_291] : memref<98xf32, #tpu.memory_space<smem>>
    %1146 = vector.extract_strided_slice %1130 {offsets = [1, 0], sizes = [8, 16], strides = [1, 1]} : vector<14x16xf32> to vector<8x16xf32>
    %1147 = vector.broadcast %1145 : f32 to vector<8x16xf32>
    %1148 = arith.mulf %1147, %1146 : vector<8x16xf32>
    %1149 = arith.addf %1144, %1148 : vector<8x16xf32>
    %1150 = arith.addf %1140, %1149 : vector<8x16xf32>
    %c20_292 = arith.constant 20 : index
    %1151 = memref.load %arg2[%c20_292] : memref<98xf32, #tpu.memory_space<smem>>
    %1152 = vector.extract_strided_slice %1128 {offsets = [2, 0], sizes = [8, 16], strides = [1, 1]} : vector<14x16xf32> to vector<8x16xf32>
    %1153 = vector.broadcast %1151 : f32 to vector<8x16xf32>
    %1154 = arith.mulf %1153, %1152 : vector<8x16xf32>
    %c69_293 = arith.constant 69 : index
    %1155 = memref.load %arg2[%c69_293] : memref<98xf32, #tpu.memory_space<smem>>
    %1156 = vector.extract_strided_slice %1130 {offsets = [2, 0], sizes = [8, 16], strides = [1, 1]} : vector<14x16xf32> to vector<8x16xf32>
    %1157 = vector.broadcast %1155 : f32 to vector<8x16xf32>
    %1158 = arith.mulf %1157, %1156 : vector<8x16xf32>
    %1159 = arith.addf %1154, %1158 : vector<8x16xf32>
    %1160 = arith.addf %1150, %1159 : vector<8x16xf32>
    %c27_294 = arith.constant 27 : index
    %1161 = memref.load %arg2[%c27_294] : memref<98xf32, #tpu.memory_space<smem>>
    %1162 = vector.extract_strided_slice %1128 {offsets = [3, 0], sizes = [8, 16], strides = [1, 1]} : vector<14x16xf32> to vector<8x16xf32>
    %1163 = vector.broadcast %1161 : f32 to vector<8x16xf32>
    %1164 = arith.mulf %1163, %1162 : vector<8x16xf32>
    %c76_295 = arith.constant 76 : index
    %1165 = memref.load %arg2[%c76_295] : memref<98xf32, #tpu.memory_space<smem>>
    %1166 = vector.extract_strided_slice %1130 {offsets = [3, 0], sizes = [8, 16], strides = [1, 1]} : vector<14x16xf32> to vector<8x16xf32>
    %1167 = vector.broadcast %1165 : f32 to vector<8x16xf32>
    %1168 = arith.mulf %1167, %1166 : vector<8x16xf32>
    %1169 = arith.addf %1164, %1168 : vector<8x16xf32>
    %1170 = arith.addf %1160, %1169 : vector<8x16xf32>
    %c34_296 = arith.constant 34 : index
    %1171 = memref.load %arg2[%c34_296] : memref<98xf32, #tpu.memory_space<smem>>
    %1172 = vector.extract_strided_slice %1128 {offsets = [4, 0], sizes = [8, 16], strides = [1, 1]} : vector<14x16xf32> to vector<8x16xf32>
    %1173 = vector.broadcast %1171 : f32 to vector<8x16xf32>
    %1174 = arith.mulf %1173, %1172 : vector<8x16xf32>
    %c83_297 = arith.constant 83 : index
    %1175 = memref.load %arg2[%c83_297] : memref<98xf32, #tpu.memory_space<smem>>
    %1176 = vector.extract_strided_slice %1130 {offsets = [4, 0], sizes = [8, 16], strides = [1, 1]} : vector<14x16xf32> to vector<8x16xf32>
    %1177 = vector.broadcast %1175 : f32 to vector<8x16xf32>
    %1178 = arith.mulf %1177, %1176 : vector<8x16xf32>
    %1179 = arith.addf %1174, %1178 : vector<8x16xf32>
    %1180 = arith.addf %1170, %1179 : vector<8x16xf32>
    %c41_298 = arith.constant 41 : index
    %1181 = memref.load %arg2[%c41_298] : memref<98xf32, #tpu.memory_space<smem>>
    %1182 = vector.extract_strided_slice %1128 {offsets = [5, 0], sizes = [8, 16], strides = [1, 1]} : vector<14x16xf32> to vector<8x16xf32>
    %1183 = vector.broadcast %1181 : f32 to vector<8x16xf32>
    %1184 = arith.mulf %1183, %1182 : vector<8x16xf32>
    %c90_299 = arith.constant 90 : index
    %1185 = memref.load %arg2[%c90_299] : memref<98xf32, #tpu.memory_space<smem>>
    %1186 = vector.extract_strided_slice %1130 {offsets = [5, 0], sizes = [8, 16], strides = [1, 1]} : vector<14x16xf32> to vector<8x16xf32>
    %1187 = vector.broadcast %1185 : f32 to vector<8x16xf32>
    %1188 = arith.mulf %1187, %1186 : vector<8x16xf32>
    %1189 = arith.addf %1184, %1188 : vector<8x16xf32>
    %1190 = arith.addf %1180, %1189 : vector<8x16xf32>
    %c48_300 = arith.constant 48 : index
    %1191 = memref.load %arg2[%c48_300] : memref<98xf32, #tpu.memory_space<smem>>
    %1192 = vector.extract_strided_slice %1128 {offsets = [6, 0], sizes = [8, 16], strides = [1, 1]} : vector<14x16xf32> to vector<8x16xf32>
    %1193 = vector.broadcast %1191 : f32 to vector<8x16xf32>
    %1194 = arith.mulf %1193, %1192 : vector<8x16xf32>
    %c97_301 = arith.constant 97 : index
    %1195 = memref.load %arg2[%c97_301] : memref<98xf32, #tpu.memory_space<smem>>
    %1196 = vector.extract_strided_slice %1130 {offsets = [6, 0], sizes = [8, 16], strides = [1, 1]} : vector<14x16xf32> to vector<8x16xf32>
    %1197 = vector.broadcast %1195 : f32 to vector<8x16xf32>
    %1198 = arith.mulf %1197, %1196 : vector<8x16xf32>
    %1199 = arith.addf %1194, %1198 : vector<8x16xf32>
    %1200 = arith.addf %1190, %1199 : vector<8x16xf32>
    %cst_302 = arith.constant 0.000000e+00 : f32
    %1201 = vector.broadcast %cst_302 : f32 to vector<8x16xf32>
    %1202 = arith.maximumf %1200, %1201 : vector<8x16xf32>
    %1203 = arith.negf %1202 : vector<8x16xf32>
    %1204 = math.exp %1203 : vector<8x16xf32>
    %cst_303 = arith.constant 1.000000e+00 : f32
    %1205 = vector.broadcast %cst_303 : f32 to vector<8x16xf32>
    %1206 = arith.addf %1205, %1204 : vector<8x16xf32>
    %1207 = arith.divf %1205, %1206 : vector<8x16xf32>
    %cst_304 = arith.constant 1.000000e+00 : f32
    %1208 = vector.broadcast %cst_304 : f32 to vector<8x16xf32>
    %1209 = arith.addf %1207, %1208 : vector<8x16xf32>
    %c0_305 = arith.constant 0 : index
    %c0_306 = arith.constant 0 : index
    %c8_307 = arith.constant 8 : index
    %c0_308 = arith.constant 0 : index
    %1210 = vector.load %arg4[%c0_305, %c0_306, %c8_307, %c0_308] : memref<1x1x16x16xf32, #tpu.memory_space<vmem>>, vector<1x1x8x16xf32>
    %1211 = vector.shape_cast %1210 : vector<1x1x8x16xf32> to vector<8x16xf32>
    %1212 = vector.shape_cast %1209 : vector<8x16xf32> to vector<1x1x8x16xf32>
    tpu.vector_store %arg4[%c0_305, %c0_306, %c8_307, %c0_308], %1212 {strides = array<i32>} : memref<1x1x16x16xf32, #tpu.memory_space<vmem>>, vector<1x1x8x16xf32>,
    return
  }
  func.func @transform_0(%arg0: i32) -> (i32, i32, i32) {
    %c0_i32 = arith.constant 0 : i32
    %c0_i32_0 = arith.constant 0 : i32
    %c0_i32_1 = arith.constant 0 : i32
    return %arg0, %c0_i32, %c0_i32_0 : i32, i32, i32
  }
  func.func @transform_1(%arg0: i32) -> i32 {
    %c0_i32 = arith.constant 0 : i32
    %c0_i32_0 = arith.constant 0 : i32
    return %c0_i32 : i32
  }
  func.func @transform_2(%arg0: i32) -> (i32, i32, i32) {
    %c0_i32 = arith.constant 0 : i32
    %c0_i32_0 = arith.constant 0 : i32
    %c0_i32_1 = arith.constant 0 : i32
    return %arg0, %c0_i32, %c0_i32_0 : i32, i32, i32
  }
  func.func @transform_3(%arg0: i32) -> (i32, i32, i32, i32) {
    %c0_i32 = arith.constant 0 : i32
    %c0_i32_0 = arith.constant 0 : i32
    %c0_i32_1 = arith.constant 0 : i32
    %c0_i32_2 = arith.constant 0 : i32
    return %arg0, %c0_i32, %c0_i32_0, %c0_i32_1 : i32, i32, i32, i32
  }
}

module attributes {stable_mosaic.version = 11 : i64} {
  func.func @_apply_kernel(%arg0: i32, %arg1: i32, %arg2: i32, %arg3: memref<1x32x256xf32, #tpu.memory_space<vmem>>, %arg4: memref<1x32x1xf32, #tpu.memory_space<vmem>>, %arg5: memref<1x1x256xf32, #tpu.memory_space<vmem>>, %arg6: memref<1x2x32x256xf32, #tpu.memory_space<vmem>>) attributes {dimension_semantics = [#tpu.dimension_semantics<parallel>, #tpu.dimension_semantics<parallel>, #tpu.dimension_semantics<parallel>], iteration_bounds = array<i64: 2, 1, 1>, scalar_prefetch = 0 : i64, scratch_operands = 0 : i64, tpu.core_type = #tpu.core_type<tc>, window_params = [{transform_indices = @transform_0, window_bounds = array<i64: 1, 32, 256>}, {transform_indices = @transform_1, window_bounds = array<i64: 1, 32, 1>}, {transform_indices = @transform_2, window_bounds = array<i64: 1, 1, 256>}, {transform_indices = @transform_3, window_bounds = array<i64: 1, 2, 32, 256>}]} {
    %c0 = arith.constant 0 : index
    %c0_0 = arith.constant 0 : index
    %c0_1 = arith.constant 0 : index
    %0 = vector.load %arg3[%c0, %c0_0, %c0_1] : memref<1x32x256xf32, #tpu.memory_space<vmem>>, vector<1x32x256xf32>
    %1 = vector.shape_cast %0 : vector<1x32x256xf32> to vector<32x256xf32>
    %c0_2 = arith.constant 0 : index
    %c0_3 = arith.constant 0 : index
    %c0_4 = arith.constant 0 : index
    %2 = vector.load %arg4[%c0_2, %c0_3, %c0_4] : memref<1x32x1xf32, #tpu.memory_space<vmem>>, vector<1x32x1xf32>
    %3 = vector.shape_cast %2 : vector<1x32x1xf32> to vector<32x1xf32>
    %4 = vector.broadcast %3 : vector<32x1xf32> to vector<32x256xf32>
    %5 = arith.mulf %1, %4 : vector<32x256xf32>
    %c0_5 = arith.constant 0 : index
    %c0_6 = arith.constant 0 : index
    %c0_7 = arith.constant 0 : index
    %c0_8 = arith.constant 0 : index
    %6 = vector.load %arg6[%c0_5, %c0_6, %c0_7, %c0_8] : memref<1x2x32x256xf32, #tpu.memory_space<vmem>>, vector<1x1x32x256xf32>
    %7 = vector.shape_cast %6 : vector<1x1x32x256xf32> to vector<32x256xf32>
    %8 = vector.shape_cast %5 : vector<32x256xf32> to vector<1x1x32x256xf32>
    tpu.vector_store %arg6[%c0_5, %c0_6, %c0_7, %c0_8], %8 {strides = array<i32>} : memref<1x2x32x256xf32, #tpu.memory_space<vmem>>, vector<1x1x32x256xf32>,
    %c0_9 = arith.constant 0 : index
    %c0_10 = arith.constant 0 : index
    %c0_11 = arith.constant 0 : index
    %9 = vector.load %arg5[%c0_9, %c0_10, %c0_11] : memref<1x1x256xf32, #tpu.memory_space<vmem>>, vector<1x1x256xf32>
    %10 = vector.shape_cast %9 : vector<1x1x256xf32> to vector<1x256xf32>
    %11 = vector.broadcast %10 : vector<1x256xf32> to vector<32x256xf32>
    %12 = arith.mulf %1, %11 : vector<32x256xf32>
    %c0_12 = arith.constant 0 : index
    %c1 = arith.constant 1 : index
    %c0_13 = arith.constant 0 : index
    %c0_14 = arith.constant 0 : index
    %13 = vector.load %arg6[%c0_12, %c1, %c0_13, %c0_14] : memref<1x2x32x256xf32, #tpu.memory_space<vmem>>, vector<1x1x32x256xf32>
    %14 = vector.shape_cast %13 : vector<1x1x32x256xf32> to vector<32x256xf32>
    %15 = vector.shape_cast %12 : vector<32x256xf32> to vector<1x1x32x256xf32>
    tpu.vector_store %arg6[%c0_12, %c1, %c0_13, %c0_14], %15 {strides = array<i32>} : memref<1x2x32x256xf32, #tpu.memory_space<vmem>>, vector<1x1x32x256xf32>,
    return
  }
  func.func @transform_0(%arg0: i32, %arg1: i32, %arg2: i32) -> (i32, i32, i32) {
    %c0_i32 = arith.constant 0 : i32
    return %arg0, %arg1, %arg2 : i32, i32, i32
  }
  func.func @transform_1(%arg0: i32, %arg1: i32, %arg2: i32) -> (i32, i32, i32) {
    %c0_i32 = arith.constant 0 : i32
    %c0_i32_0 = arith.constant 0 : i32
    return %arg0, %arg1, %c0_i32 : i32, i32, i32
  }
  func.func @transform_2(%arg0: i32, %arg1: i32, %arg2: i32) -> (i32, i32, i32) {
    %c0_i32 = arith.constant 0 : i32
    %c0_i32_0 = arith.constant 0 : i32
    return %arg0, %c0_i32, %arg2 : i32, i32, i32
  }
  func.func @transform_3(%arg0: i32, %arg1: i32, %arg2: i32) -> (i32, i32, i32, i32) {
    %c0_i32 = arith.constant 0 : i32
    %c0_i32_0 = arith.constant 0 : i32
    return %arg0, %c0_i32, %arg1, %arg2 : i32, i32, i32, i32
  }
}

</mosaic_0001>

<bundles_post_ra>
// kernel: basic_block_forward.3
= control target key start
LH: loop header
LB: loop body
LE: loop exit
PB: predicated region body
PF: predicated region fallthrough
CT: control target
= control target key end

     0   :  { %s640_s12 = smov 0   ;;  %s642_s13 = smov 0   ;;  %s703_s0 = inlined_call_operand.vmem [shape: f32[2,32,256], index: 0, kind: input, shape index: {}]   ;;  %s704_s1 = inlined_call_operand.vmem [shape: f32[2,32,1], index: 1, kind: input, shape index: {}]   ;;  %s705_s2 = inlined_call_operand.vmem [shape: f32[2,1,256], index: 2, kind: input, shape index: {}]   ;;  %s706_s3 = inlined_call_operand.vmem [shape: f32[2,2,32,256], index: 3, kind: output, shape index: {}]  }
   0x1   :  { %s644_s14 = smov 0  }
   0x2 LB: > { %s32_s15 = sadd.s32 1, %s613_s13  ;;  %p547_p0 = scmp.ge.s32.totalorder %s617_s14, 1  ;;  %s617_s14 = sphi %s644_s14, %s13_s14   ;;  %s613_s13 = sphi %s642_s13, %s708_s13   ;;  %s609_s12 = sphi %s640_s12, %s707_s12  }
   0x3   : > { %p34_p1 = scmp.ge.s32.totalorder %s32_s15, 2  ;;  %p208_p2 = scmp.lt.s32.totalorder %s617_s14, 3 }
   0x5   : > { %s710_s15 = smov (%p34_p1, %s32_s15), 0  ;;  %p209_p3 = pnand %p547_p0, %p208_p2 }
   0x6   : > { %p269_p4 = scmp.lt.s32.totalorder (!%p209_p3), %s609_s12, 1 }
   0x7   : > { %212 = sbr.rel (%p209_p3) target bundleno = 148 (0x94), region = 32 }
   0xc   : > { %v368_v0 = vlaneseq  ;;  %v619_v1 = vmov 0   ;;  %s712_s12 = smov (!%p269_p4, %s609_s12), 1 }
   0xd   : > { %594 = vset.pattern.permute.xlu1 %v619_v1  ;;  %593 = vset.pattern.permute.xlu0 %v619_v1  ;;  %s566_s16 = sshll.u32 %s712_s12, 5  ;;  %s552_s20 = sshll.u32 %s712_s12, 1 }
   0xe   : > { %v369_v2 = vshrl.u32 %v368_v0, 7  ;;  %s291_s19 = scalar_lea.vmem %s704_s1, %s566_s16  ;;  %s565_s21 = sshll.u32 %s712_s12, 6 }
   0xf   : > { %v328_v5 = vld [vmem:[%s291_s19 + $0x10] sm:$0xff]  ;;  %v326_v6 = vld [vmem:[%s291_s19] sm:$0xff]  ;;  %v329_v7 = vld [vmem:[%s291_s19 + $0x18] sm:$0xff]  ;;  %s300_s24 = scalar_lea.vmem %s705_s2, %s552_s20  ;;  %s280_s27 = scalar_lea.vmem %s703_s0, %s565_s21 }
  0x10   : > { %v370_v3 = vsub.s32 0, %v369_v2  ;;  %v374_v4 = vsub.s32 1, %v369_v2  ;;  %342 = vperm.xlu1 %594, %v328_v5   ;;  %332 = vperm.xlu0 %593, %v326_v6   ;;  %v327_v8 = vld [vmem:[%s291_s19 + $0x8] sm:$0xff]  ;;  %v366_v9 = vld [vmem:[%s300_s24] sm:$0x3]  ;;  %s567_s28 = sshll.u32 %s712_s12, 7 }
  0x11   : > { %v322_v10 = vld [vmem:[%s280_s27 + $0x20] sm:$0xff]  ;;  %v323_v13 = vld [vmem:[%s280_s27 + $0x28] sm:$0xff]  ;;  %v324_v15 = vld [vmem:[%s280_s27 + $0x30] sm:$0xff]  ;;  %s676_s4 = scalar_lea.vmem %s706_s3, %s567_s28 }
  0x12   : > { %v371_v11 = vrot.slane %v366_v9, %v370_v3  ;;  %v375_v12 = vrot.slane %v366_v9, %v374_v4  ;;  %v318_v14 = vld [vmem:[%s280_s27] sm:$0xff]  ;;  %v325_v16 = vld [vmem:[%s280_s27 + $0x38] sm:$0xff]  ;;  %v320_v17 = vld [vmem:[%s280_s27 + $0x10] sm:$0xff] }
  0x13   : > { %v321_v18 = vld [vmem:[%s280_s27 + $0x18] sm:$0xff]  ;;  %v319_v21 = vld [vmem:[%s280_s27 + $0x8] sm:$0xff] }
  0x14   : > { %347 = vperm.xlu1 %594, %v329_v7   ;;  %337 = vperm.xlu0 %593, %v327_v8   ;;  %v382_v19 = vmul.f32 %v371_v11, %v322_v10  ;;  %v383_v20 = vmul.f32 %v375_v12, %v323_v13  ;;  %v378_v22 = vmul.f32 %v371_v11, %v318_v14 }
  0x15   : > { %v379_v23 = vmul.f32 %v375_v12, %v319_v21  ;;  %v384_v24 = vmul.f32 %v371_v11, %v324_v15  ;;  %v385_v25 = vmul.f32 %v375_v12, %v325_v16  ;;  %v380_v26 = vmul.f32 %v371_v11, %v320_v17 }
  0x16   : > { %559 = vst [vmem:[%s676_s4 + $0x60] sm:$0xff] %v382_v19  ;;  %560 = vst [vmem:[%s676_s4 + $0x68] sm:$0xff] %v383_v20  ;;  %v381_v27 = vmul.f32 %v375_v12, %v321_v18 }
  0x17   : > { %555 = vst [vmem:[%s676_s4 + $0x40] sm:$0xff] %v378_v22  ;;  %556 = vst [vmem:[%s676_s4 + $0x48] sm:$0xff] %v379_v23 }
  0x18   : > { %561 = vst [vmem:[%s676_s4 + $0x70] sm:$0xff] %v384_v24  ;;  %562 = vst [vmem:[%s676_s4 + $0x78] sm:$0xff] %v385_v25 }
  0x19   : > { %557 = vst [vmem:[%s676_s4 + $0x50] sm:$0xff] %v380_v26  ;;  %558 = vst [vmem:[%s676_s4 + $0x58] sm:$0xff] %v381_v27 }
  0x8b   : > { %v343_v28 = vpop.permute.xlu1 %342  ;;  %v333_v29 = vpop.permute.xlu0 %332 }
  0x8c   : > { %v354_v30 = vmul.f32 %v343_v28, %v322_v10  ;;  %v355_v31 = vmul.f32 %v343_v28, %v323_v13  ;;  %v350_v32 = vmul.f32 %v333_v29, %v318_v14  ;;  %v351_v33 = vmul.f32 %v333_v29, %v319_v21 }
  0x8e   : > { %362 = vst [vmem:[%s676_s4 + $0x20] sm:$0xff] %v354_v30  ;;  %363 = vst [vmem:[%s676_s4 + $0x28] sm:$0xff] %v355_v31 }
  0x8f   : > { %358 = vst [vmem:[%s676_s4] sm:$0xff] %v350_v32  ;;  %359 = vst [vmem:[%s676_s4 + $0x8] sm:$0xff] %v351_v33  ;;  %v348_v34 = vpop.permute.xlu1 %347  ;;  %v338_v35 = vpop.permute.xlu0 %337 }
  0x90   : > { %v356_v36 = vmul.f32 %v348_v34, %v324_v15  ;;  %v357_v37 = vmul.f32 %v348_v34, %v325_v16  ;;  %v352_v38 = vmul.f32 %v338_v35, %v320_v17  ;;  %v353_v39 = vmul.f32 %v338_v35, %v321_v18 }
  0x92   : > { %364 = vst [vmem:[%s676_s4 + $0x30] sm:$0xff] %v356_v36  ;;  %365 = vst [vmem:[%s676_s4 + $0x38] sm:$0xff] %v357_v37 }
  0x93   : > { %360 = vst [vmem:[%s676_s4 + $0x10] sm:$0xff] %v352_v38  ;;  %361 = vst [vmem:[%s676_s4 + $0x18] sm:$0xff] %v353_v39 }
  0x94 PF: > { %s13_s14 = sadd.s32 1, %s617_s14   ;;  %s707_s12 = smov %s613_s13 }
  0x95   : > { %p10_p5 = scmp.ge.s32.totalorder %s13_s14, 4   ;;  %s708_s13 = smov %s710_s15 }
  0x97   :  { %12 = sbr.rel (!%p10_p5) target bundleno = 2 (0x2), region = 69 }

// kernel: basic_block_forward.2
= control target key start
LH: loop header
LB: loop body
LE: loop exit
PB: predicated region body
PF: predicated region fallthrough
CT: control target
= control target key end

     0   :  { %s4406_s0 = inlined_call_operand.vmem [shape: f32[2,32,256], index: 0, kind: input, shape index: {}]   ;;  %s4407_s1 = inlined_call_operand.vmem [shape: f32[98], index: 1, kind: input, shape index: {}]   ;;  %s4408_s2 = inlined_call_operand.vmem [shape: f32[2,32,2], index: 2, kind: output, shape index: {0}]   ;;  %s4409_s3 = inlined_call_operand.vmem [shape: f32[2,1,16,16], index: 3, kind: output, shape index: {1}]  }
   0x1   :  { %4502 = sst [smem:[#allocation108_spill]] %s4406_s0 }
   0x2   :  { %4503 = sst [smem:[#allocation109_spill]] %s4407_s1 }
   0x3   :  { %4504 = sst [smem:[#allocation110_spill]] %s4408_s2 }
   0x4   :  { %4505 = sst [smem:[#allocation111_spill]] %s4409_s3 }
   0x5   :  { %9 = vsyncpa [#allocation4], 0  ;;  %s2620_s12 = smov 0  }
   0x6 LB: > { %4506 = sst [smem:[#allocation6_spill]] %s2582_s12  ;;  %s2626_s13 = sadd.s32 4294967295, %s2582_s12   ;;  %s2582_s12 = sphi %s2620_s12, %s15_s12  }
   0x7   : > { %p2294_p0 = scmp.ge.s32.totalorder %s2582_s12, 1  ;;  %p119_p1 = scmp.lt.s32.totalorder %s2582_s12, 3 }
   0x8   : > { %s4507_s1 = sld [smem:[#allocation109_spill]]  ;;  %p2515_p4 = scmp.eq.s32.totalorder %s2626_s13, 0 }
   0x9   : > { %p2634_p3 = pnand %p2294_p0, %p119_p1 }
   0xb   : > { %p2511_p5 = pneg %p2634_p3 }
   0xd   : > { %p2512_p6 = pnand %p2515_p4, %p2511_p5 }
   0xe   : > { %s132_s16 = sshll.u32 %s4507_s1, 4  ;;  %s133_s16 = int_to_ptr.vmem [resolvable:$true] %s132_s16 }
   0xf   : > { %s2557_s18 = scalar_lea.vmem %s133_s16, 16  ;;  %p2559_p8 = pneg %p2512_p6 }
  0x10   : > { %p2558_p7 = scmp.ne.s32.totalorder %s133_s16, %s2557_s18  ;;  %p2565_p11 = scmp.lt.s32.totalorder %s133_s16, %s133_s16 }
  0x11   : > { %p2566_p12 = scmp.lt.s32.totalorder %s2557_s18, %s2557_s18 }
  0x12   : > { %p2560_p9 = pnand %p2559_p8, %p2558_p7 }
  0x13   : > { %p2567_p13 = por %p2566_p12, %p2565_p11 }
  0x14   : > { %p2561_p10 = pneg %p2560_p9 }
  0x16   : > { %p2568_p2 = pnand %p2567_p13, %p2561_p10 }
  0x18   : > { %2571 = shalt.err (!%p2568_p2)
}
  0x19   : > { %s2584_s19 = smov [#allocation3]   ;;  %153 = sbr.rel (%p2634_p3) target bundleno = 756 (0x2f4), region = 28 }
  0x1a   : > { %2514 = dma.vmem_to_smem (!%p2512_p6), %s133_s16, 16, %s2584_s19, [#allocation4]  }
  0x1e   : > { %2577 = dma.done.wait (%p2515_p4), [#allocation4], 16  }
  0x1f   : > { %2579 = vsyncadd (%p2515_p4), [#allocation4], 4294967280 }
  0x20   : > { %159 = sfence }
  0x21   : > { %p183_p0 = scmp.lt.s32.totalorder %s2626_s13, 1  ;;  %s4509_s0 = sld [smem:[#allocation108_spill]]  ;;  %vm222_vm0 = vcmask 7168   ;;  %vm239_vm1 = vcmask 15368  }
  0x22   : > { %s4510_s3 = sld [smem:[#allocation111_spill]]  ;;  %p4513_p1 = scmp.ne.s32.totalorder %s2626_s13, 0 }
  0x23   : > { %s2651_s20 = scalar_select %p183_p0, %s2626_s13, 1 }
  0x24   : > { %s4512_s2 = sld [smem:[#allocation110_spill]] }
  0x25   : > { %s2504_s21 = sshll.u32 %s2651_s20, 6  ;;  %s2506_s22 = sshll.u32 %s2651_s20, 4 }
  0x26   : > { %s2505_s29 = sshll.u32 %s2651_s20, 5 }
  0x27   : > { %s187_s25 = scalar_lea.vmem %s4509_s0, %s2504_s21 }
  0x28   : > { %s2661_s28 = scalar_lea.vmem %s4510_s3, %s2506_s22  ;;  %v202_v0 = vld [vmem:[%s187_s25 + $0x20] sm:$0xff]  ;;  %v203_v1 = vld [vmem:[%s187_s25 + $0x28] sm:$0xff]  ;;  %v204_v6 = vld [vmem:[%s187_s25 + $0x30] sm:$0xff] }
  0x29   : > { %4511 = sst [smem:[#allocation7_spill]] %s2661_s28  ;;  %v198_v2 = vld [vmem:[%s187_s25] sm:$0xff]  ;;  %v212_v3 = vadd.f32 %v203_v1, %v202_v0  ;;  %v199_v4 = vld [vmem:[%s187_s25 + $0x8] sm:$0xff]  ;;  %v205_v7 = vld [vmem:[%s187_s25 + $0x38] sm:$0xff]  ;;  %v233_v37 = vmax.f32 %v202_v0, %v203_v1 }
  0x2a   : > { %v265_v5 = vmax.f32 %v198_v2, %v202_v0  ;;  %v206_v8 = vadd.f32 %v199_v4, %v198_v2  ;;  %v274_v9 = vmax.f32 %v199_v4, %v203_v1  ;;  %v200_v10 = vld [vmem:[%s187_s25 + $0x10] sm:$0xff]  ;;  %v201_v11 = vld [vmem:[%s187_s25 + $0x18] sm:$0xff]  ;;  %v215_v12 = vadd.f32 %v205_v7, %v204_v6  ;;  %s192_s5 = scalar_lea.vmem %s4512_s2, %s2505_s29 }
  0x2b   : > { %213 = vadd.xlane.f32.xlu1 %v212_v3  ;;  %v244_v13 = vadd.f32 %v200_v10, %v198_v2  ;;  %v253_v14 = vadd.f32 %v201_v11, %v199_v4  ;;  %v266_v15 = vmax.f32 %v200_v10, %v204_v6  ;;  %v209_v16 = vadd.f32 %v201_v11, %v200_v10 }
  0x2c   : > { %207 = vadd.xlane.f32.xlu0 %v206_v8  ;;  %v275_v17 = vmax.f32 %v201_v11, %v205_v7  ;;  %v230_v25 = vmax.f32 %v200_v10, %v201_v11  ;;  %v227_v27 = vmax.f32 %v198_v2, %v199_v4  ;;  %v236_v35 = vmax.f32 %v204_v6, %v205_v7 }
  0x2d   : > { %v245_v18 = vadd.f32 %v244_v13, %v202_v0  ;;  %v254_v19 = vadd.f32 %v253_v14, %v203_v1  ;;  %v267_v20 = vmax.f32 %v265_v5, %v266_v15 }
  0x2e   : > { %v276_v21 = vmax.f32 %v274_v9, %v275_v17 }
  0x2f   : > { %216 = vadd.xlane.f32.xlu1 %v215_v12  ;;  %v246_v22 = vadd.f32 %v245_v18, %v204_v6  ;;  %v255_v23 = vadd.f32 %v254_v19, %v205_v7  ;;  %v268_v24 = vrot.slane %v267_v20, 4 }
  0x30   : > { %v277_v26 = vrot.slane %v276_v21, 4  ;;  %210 = vadd.xlane.f32.xlu0 %v209_v16 }
  0x31   : > { %v247_v28 = vrot.slane %v246_v22, 4  ;;  %v256_v29 = vrot.slane %v255_v23, 4  ;;  %v269_v30 = vmax.f32 %v267_v20, %v268_v24 }
  0x32   : > { %v278_v31 = vmax.f32 %v276_v21, %v277_v26 }
  0x33   : > { %v248_v32 = vadd.f32 %v247_v28, %v246_v22  ;;  %v257_v33 = vadd.f32 %v256_v29, %v255_v23  ;;  %v270_v34 = vrot.slane %v269_v30, 2  ;;  %231 = vmax.xlane.f32.xlu1 %v230_v25 }
  0x34   : > { %v279_v36 = vrot.slane %v278_v31, 2  ;;  %228 = vmax.xlane.f32.xlu0 %v227_v27 }
  0x35   : > { %v249_v38 = vrot.slane %v248_v32, 2  ;;  %v258_v39 = vrot.slane %v257_v33, 2  ;;  %v271_v40 = vmax.f32 %v269_v30, %v270_v34 }
  0x36   : > { %v280_v41 = vmax.f32 %v278_v31, %v279_v36 }
  0x37   : > { %v250_v42 = vadd.f32 %v249_v38, %v248_v32  ;;  %v259_v43 = vadd.f32 %v258_v39, %v257_v33  ;;  %v272_v44 = vrot.slane %v271_v40, 1  ;;  %237 = vmax.xlane.f32.xlu1 %v236_v35 }
  0x38   : > { %v281_v45 = vrot.slane %v280_v41, 1  ;;  %234 = vmax.xlane.f32.xlu0 %v233_v37 }
  0x39   : > { %v251_v46 = vrot.slane %v250_v42, 1  ;;  %v260_v47 = vrot.slane %v259_v43, 1  ;;  %v273_v48 = vmax.f32 %v271_v40, %v272_v44 }
  0x3a   : > { %v2663_v49 = vmax.f32 %v280_v41, %v281_v45 }
  0x3b   : > { %v252_v50 = vadd.f32 %v251_v46, %v250_v42  ;;  %v261_v51 = vadd.f32 %v260_v47, %v259_v43 }
  0x3d   : > { %v263_v52 = vmul.f32 0.03125, %v252_v50  ;;  %v2665_v53 = vmul.f32 0.03125, %v261_v51 }
  0xb4   : > { %v214_v54 = vpop.xlane.xlu1 %213 }
  0xb5   : > { %v220_v55 = vmul.f32 0.00390625, %v214_v54  ;;  %v208_v56 = vpop.xlane.xlu0 %207 }
  0xb6   : > { %v218_v57 = vmul.f32 0.00390625, %v208_v56 }
  0xb7   : > { %225 = vst.msk [vmem:[%s192_s5 + $0x10] sm:$0xff] %vm222_vm0, %v220_v55 }
  0xb8   : > { %223 = vst.msk [vmem:[%s192_s5] sm:$0xff] %vm222_vm0, %v218_v57  ;;  %v217_v58 = vpop.xlane.xlu1 %216 }
  0xb9   : > { %v221_v59 = vmul.f32 0.00390625, %v217_v58  ;;  %v211_v60 = vpop.xlane.xlu0 %210 }
  0xba   : > { %v219_v61 = vmul.f32 0.00390625, %v211_v60 }
  0xbb   : > { %226 = vst.msk [vmem:[%s192_s5 + $0x18] sm:$0xff] %vm222_vm0, %v221_v59 }
  0xbc   : > { %224 = vst.msk [vmem:[%s192_s5 + $0x8] sm:$0xff] %vm222_vm0, %v219_v61  ;;  %v232_v62 = vpop.xlane.xlu1 %231 }
  0xbd   : > { %241 = vst.msk [vmem:[%s192_s5 + $0x8] sm:$0xff] %vm239_vm1, %v232_v62  ;;  %v229_v63 = vpop.xlane.xlu0 %228 }
  0xbe   : > { %240 = vst.msk [vmem:[%s192_s5] sm:$0xff] %vm239_vm1, %v229_v63  ;;  %286 = sbr.rel (%p4513_p1) target bundleno = 199 (0xc7), region = 36 }
  0xc0   : > { %v238_v0 = vpop.xlane.xlu1 %237 }
  0xc1   : > { %243 = vst.msk [vmem:[%s192_s5 + $0x18] sm:$0xff] %vm239_vm1, %v238_v0  ;;  %v235_v1 = vpop.xlane.xlu0 %234 }
  0xc2   : > { %242 = vst.msk [vmem:[%s192_s5 + $0x10] sm:$0xff] %vm239_vm1, %v235_v1 }
  0xc3   : > { %v2585_v2 = vmov 0.0  }
  0xc4   : > { %287 = vst [vmem:[#allocation2] sm:$0xff] %v2585_v2  ;;  %288 = vst [vmem:[#allocation2 + $0x8] sm:$0xff] %v2585_v2 }
  0xc5   : > { %289 = vst [vmem:[#allocation2 + $0x10] sm:$0x3f] %v2585_v2  ;;  %290 = vst [vmem:[#allocation2 + $0x18] sm:$0xff] %v2585_v2 }
  0xc6   : > { %291 = vst [vmem:[#allocation2 + $0x20] sm:$0xff] %v2585_v2  ;;  %292 = vst [vmem:[#allocation2 + $0x28] sm:$0x3f] %v2585_v2 }
  0xc7 PF: > { %s2586_s6 = smov 115   ;;  %s2587_s7 = smov 3   ;;  %vm297_vm2 = vcmask 147480   ;;  %vm451_vm3 = vcmask 1046528   ;;  %vm469_vm4 = vcmask 1045504   ;;  %vm487_vm5 = vcmask 1044480  }
  0xc8   : > { %305 = vrot.lane.b32.xlu1 %v263_v52, %s2586_s6  ;;  %294 = vrot.lane.b32.xlu0 %v263_v52, %s2587_s7  ;;  %s2588_s8 = smov 99   ;;  %s2589_s9 = smov 83   ;;  %vm505_vm6 = vcmask 1043456   ;;  %vm523_vm7 = vcmask 1042432   ;;  %vm541_vm8 = vcmask 1041408   ;;  %vm1311_vm9 = vcmask 130048  }
  0xc9   : > { %s2590_s10 = smov 67   ;;  %s2591_s11 = smov 51  }
  0xca   : > { %s2592_s13 = smov 35   ;;  %s2593_s14 = smov 19  }
  0xcb   : > { %s2685_s15 = sld [smem:[#allocation3 + $0x1]] }
  0xcc   : > { %309 = vrot.lane.b32.xlu1 %v273_v48, %s2586_s6  ;;  %300 = vrot.lane.b32.xlu0 %v273_v48, %s2587_s7  ;;  %s2687_s16 = sld [smem:[#allocation3 + $0x32]] }
  0xcd   : > { %s2691_s17 = sld [smem:[#allocation3 + $0x2]] }
  0xce   : > { %s2693_s18 = sld [smem:[#allocation3 + $0x33]] }
  0xcf   : > { %s2695_s19 = sld [smem:[#allocation3 + $0x3]] }
  0xd0   : > { %317 = vrot.lane.b32.xlu1 %v273_v48, %s2588_s8  ;;  %313 = vrot.lane.b32.xlu0 %v263_v52, %s2588_s8  ;;  %s2697_s20 = sld [smem:[#allocation3 + $0x34]] }
  0xd1   : > { %4514 = sst [smem:[#allocation8_spill]] %s2685_s15 }
  0xd2   : > { %4515 = sst [smem:[#allocation9_spill]] %s2687_s16 }
  0xd3   : > { %4516 = sst [smem:[#allocation10_spill]] %s2691_s17 }
  0xd4   : > { %325 = vrot.lane.b32.xlu1 %v273_v48, %s2589_s9  ;;  %321 = vrot.lane.b32.xlu0 %v263_v52, %s2589_s9  ;;  %4517 = sst [smem:[#allocation11_spill]] %s2693_s18 }
  0xd5   : > { %4518 = sst [smem:[#allocation12_spill]] %s2695_s19 }
  0xd6   : > { %4519 = sst [smem:[#allocation13_spill]] %s2697_s20 }
  0xd7   : > { %s2701_s21 = sld [smem:[#allocation3 + $0x8]] }
  0xd8   : > { %333 = vrot.lane.b32.xlu1 %v273_v48, %s2590_s10  ;;  %329 = vrot.lane.b32.xlu0 %v263_v52, %s2590_s10  ;;  %s2703_s22 = sld [smem:[#allocation3 + $0x39]] }
  0xd9   : > { %s2705_s23 = sld [smem:[#allocation3 + $0xf]] }
  0xda   : > { %s2707_s24 = sld [smem:[#allocation3 + $0x40]] }
  0xdb   : > { %s2709_s25 = sld [smem:[#allocation3 + $0x16]] }
  0xdc   : > { %341 = vrot.lane.b32.xlu1 %v273_v48, %s2591_s11  ;;  %337 = vrot.lane.b32.xlu0 %v263_v52, %s2591_s11  ;;  %s2711_s26 = sld [smem:[#allocation3 + $0x47]] }
  0xdd   : > { %s2713_s27 = sld [smem:[#allocation3 + $0x1d]]  ;;  %v2834_v13 = vstv %s2701_s21 }
  0xde   : > { %s2715_s29 = sld [smem:[#allocation3 + $0x4e]]  ;;  %v2837_v14 = vstv %s2703_s22 }
  0xdf   : > { %s2717_s30 = sld [smem:[#allocation3 + $0x24]]  ;;  %v2840_v15 = vstv %s2705_s23 }
  0xe0   : > { %349 = vrot.lane.b32.xlu1 %v273_v48, %s2592_s13  ;;  %345 = vrot.lane.b32.xlu0 %v263_v52, %s2592_s13  ;;  %s2719_s4 = sld [smem:[#allocation3 + $0x55]]  ;;  %v2845_v18 = vstv %s2707_s24 }
  0xe1   : > { %s2721_s5 = sld [smem:[#allocation3 + $0x2b]]  ;;  %v2848_v19 = vstv %s2709_s25 }
  0xe2   : > { %s2739_s0 = sld [smem:[#allocation3 + $0x4f]]  ;;  %v2851_v20 = vstv %s2711_s26 }
  0xe3   : > { %s2741_s1 = sld [smem:[#allocation3 + $0x25]]  ;;  %v2854_v21 = vstv %s2713_s27 }
  0xe4   : > { %357 = vrot.lane.b32.xlu1 %v273_v48, %s2593_s14  ;;  %353 = vrot.lane.b32.xlu0 %v263_v52, %s2593_s14  ;;  %s2743_s2 = sld [smem:[#allocation3 + $0x56]]  ;;  %v2861_v22 = vstv %s2715_s29 }
  0xe5   : > { %s2745_s3 = sld [smem:[#allocation3 + $0x2c]]  ;;  %v2864_v23 = vstv %s2717_s30 }
  0xe6   : > { %s2747_s12 = sld [smem:[#allocation3 + $0x5d]]  ;;  %v2867_v24 = vstv %s2719_s4 }
  0xe7   : > { %s2749_s28 = sld [smem:[#allocation3 + $0xa]]  ;;  %v2870_v25 = vstv %s2721_s5 }
  0xe8   : > { %367 = vrot.lane.b32.xlu1 %v2663_v49, %s2587_s7  ;;  %362 = vrot.lane.b32.xlu0 %v2665_v53, %s2587_s7  ;;  %s2725_s7 = sld [smem:[#allocation3 + $0x9]] }
  0xe9   : > { %4525 = sst [smem:[#allocation19_spill]] %s2739_s0 }
  0xea   : > { %4526 = sst [smem:[#allocation20_spill]] %s2741_s1 }
  0xeb   : > { %4527 = sst [smem:[#allocation21_spill]] %s2743_s2 }
  0xec   : > { %375 = vrot.lane.b32.xlu1 %v2663_v49, %s2586_s6  ;;  %371 = vrot.lane.b32.xlu0 %v2665_v53, %s2586_s6  ;;  %s2723_s6 = sld [smem:[#allocation3 + $0x5c]] }
  0xed   : > { %4528 = sst [smem:[#allocation22_spill]] %s2745_s3 }
  0xee   : > { %4529 = sst [smem:[#allocation23_spill]] %s2747_s12  ;;  %v2878_v27 = vstv %s2725_s7 }
  0xef   : > { %4530 = sst [smem:[#allocation24_spill]] %s2749_s28 }
  0xf0   : > { %383 = vrot.lane.b32.xlu1 %v2663_v49, %s2588_s8  ;;  %379 = vrot.lane.b32.xlu0 %v2665_v53, %s2588_s8  ;;  %s2727_s8 = sld [smem:[#allocation3 + $0x3a]] }
  0xf1   : > { %s2761_s0 = sld [smem:[#allocation3 + $0x1f]] }
  0xf2   : > { %s2763_s1 = sld [smem:[#allocation3 + $0x50]]  ;;  %v2875_v26 = vstv %s2723_s6 }
  0xf3   : > { %s2765_s2 = sld [smem:[#allocation3 + $0x26]] }
  0xf4   : > { %391 = vrot.lane.b32.xlu1 %v2663_v49, %s2589_s9  ;;  %387 = vrot.lane.b32.xlu0 %v2665_v53, %s2589_s9  ;;  %s2729_s9 = sld [smem:[#allocation3 + $0x10]] }
  0xf5   : > { %s2767_s3 = sld [smem:[#allocation3 + $0x57]] }
  0xf6   : > { %s2769_s12 = sld [smem:[#allocation3 + $0x2d]]  ;;  %v2881_v28 = vstv %s2727_s8 }
  0xf7   : > { %4536 = sst [smem:[#allocation30_spill]] %s2761_s0 }
  0xf8   : > { %399 = vrot.lane.b32.xlu1 %v2663_v49, %s2590_s10  ;;  %395 = vrot.lane.b32.xlu0 %v2665_v53, %s2590_s10  ;;  %s2731_s10 = sld [smem:[#allocation3 + $0x41]] }
  0xf9   : > { %4537 = sst [smem:[#allocation31_spill]] %s2763_s1 }
  0xfa   : > { %4520 = sst [smem:[#allocation14_spill]] %s2729_s9 }
  0xfb   : > { %s2751_s9 = sld [smem:[#allocation3 + $0x3b]] }
  0xfc   : > { %407 = vrot.lane.b32.xlu1 %v2663_v49, %s2591_s11  ;;  %403 = vrot.lane.b32.xlu0 %v2665_v53, %s2591_s11  ;;  %s2733_s11 = sld [smem:[#allocation3 + $0x17]] }
  0xfd   : > { %4538 = sst [smem:[#allocation32_spill]] %s2765_s2 }
  0xfe   : > { %4521 = sst [smem:[#allocation15_spill]] %s2731_s10 }
  0xff   : > { %s2753_s10 = sld [smem:[#allocation3 + $0x11]] }
 0x100   : > { %415 = vrot.lane.b32.xlu1 %v2663_v49, %s2592_s13  ;;  %411 = vrot.lane.b32.xlu0 %v2665_v53, %s2592_s13  ;;  %s2735_s13 = sld [smem:[#allocation3 + $0x48]] }
 0x101   : > { %4531 = sst [smem:[#allocation25_spill]] %s2751_s9 }
 0x102   : > { %4522 = sst [smem:[#allocation16_spill]] %s2733_s11 }
 0x103   : > { %s2755_s11 = sld [smem:[#allocation3 + $0x42]] }
 0x104   : > { %423 = vrot.lane.b32.xlu1 %v2663_v49, %s2593_s14  ;;  %419 = vrot.lane.b32.xlu0 %v2665_v53, %s2593_s14  ;;  %s2737_s14 = sld [smem:[#allocation3 + $0x1e]] }
 0x105   : > { %4532 = sst [smem:[#allocation26_spill]] %s2753_s10 }
 0x106   : > { %4523 = sst [smem:[#allocation17_spill]] %s2735_s13 }
 0x107   : > { %s2757_s13 = sld [smem:[#allocation3 + $0x18]] }
 0x108   : > { %4539 = sst [smem:[#allocation33_spill]] %s2767_s3 }
 0x109   : > { %4533 = sst [smem:[#allocation27_spill]] %s2755_s11 }
 0x10a   : > { %4524 = sst [smem:[#allocation18_spill]] %s2737_s14 }
 0x10b   : > { %s2759_s14 = sld [smem:[#allocation3 + $0x49]] }
 0x10c   : > { %4540 = sst [smem:[#allocation34_spill]] %s2769_s12 }
 0x10d   : > { %4534 = sst [smem:[#allocation28_spill]] %s2757_s13 }
 0x10e   : > { %s2771_s28 = sld [smem:[#allocation3 + $0x5e]] }
 0x10f   : > { %s2773_s9 = sld [smem:[#allocation3 + $0x4]] }
 0x110   : > { %s2775_s10 = sld [smem:[#allocation3 + $0x35]] }
 0x111   : > { %4535 = sst [smem:[#allocation29_spill]] %s2759_s14 }
 0x112   : > { %s2777_s11 = sld [smem:[#allocation3 + $0xb]] }
 0x113   : > { %s2779_s13 = sld [smem:[#allocation3 + $0x3c]] }
 0x114   : > { %4541 = sst [smem:[#allocation35_spill]] %s2771_s28 }
 0x115   : > { %4542 = sst [smem:[#allocation36_spill]] %s2773_s9 }
 0x116   : > { %4543 = sst [smem:[#allocation37_spill]] %s2775_s10 }
 0x117   : > { %s2781_s14 = sld [smem:[#allocation3 + $0x12]] }
 0x118   : > { %4544 = sst [smem:[#allocation38_spill]] %s2777_s11 }
 0x119   : > { %4545 = sst [smem:[#allocation39_spill]] %s2779_s13 }
 0x11a   : > { %s2783_s0 = sld [smem:[#allocation3 + $0x43]] }
 0x11b   : > { %s2785_s1 = sld [smem:[#allocation3 + $0x19]] }
 0x11c   : > { %s2787_s2 = sld [smem:[#allocation3 + $0x4a]] }
 0x11d   : > { %4546 = sst [smem:[#allocation40_spill]] %s2781_s14 }
 0x11e   : > { %s2789_s3 = sld [smem:[#allocation3]] }
 0x11f   : > { %s2791_s12 = sld [smem:[#allocation3 + $0x31]] }
 0x120   : > { %s2793_s28 = sld [smem:[#allocation3 + $0x7]]  ;;  %v2979_v60 = vstv %s2783_s0 }
 0x121   : > { %4547 = sst [smem:[#allocation41_spill]] %s2785_s1  ;;  %4609 = vst [vmem:[#allocation66_spill] sm:$0xff] %v2979_v60 }
 0x122   : > { %4548 = sst [smem:[#allocation42_spill]] %s2787_s2 }
 0x123   : > { %s2795_s9 = sld [smem:[#allocation3 + $0x38]] }
 0x124   : > { %s2797_s10 = sld [smem:[#allocation3 + $0xe]] }
 0x125   : > { %s2799_s11 = sld [smem:[#allocation3 + $0x3f]] }
 0x126   : > { %s2801_s13 = sld [smem:[#allocation3 + $0x15]]  ;;  %v2990_v1 = vstv %s2793_s28 }
 0x127   : > { %s2803_s14 = sld [smem:[#allocation3 + $0x46]]  ;;  %4614 = vst [vmem:[#allocation69_spill] sm:$0xff] %v2990_v1 }
 0x128   : > { %s2805_s1 = sld [smem:[#allocation3 + $0x1c]] }
 0x129   : > { %4549 = sst [smem:[#allocation43_spill]] %s2795_s9 }
 0x12a   : > { %s2807_s2 = sld [smem:[#allocation3 + $0x4d]] }
 0x12b   : > { %s2809_s9 = sld [smem:[#allocation3 + $0x23]] }
 0x12c   : > { %4550 = sst [smem:[#allocation44_spill]] %s2801_s13 }
 0x12d   : > { %4551 = sst [smem:[#allocation45_spill]] %s2803_s14 }
 0x12e   : > { %4552 = sst [smem:[#allocation46_spill]] %s2805_s1 }
 0x12f   : > { %s2813_s14 = sld [smem:[#allocation3 + $0x54]] }
 0x130   : > { %4553 = sst [smem:[#allocation47_spill]] %s2807_s2 }
 0x131   : > { %s2815_s13 = sld [smem:[#allocation3 + $0x2a]] }
 0x132   : > { %s2817_s2 = sld [smem:[#allocation3 + $0x5b]] }
 0x133   : > { %s2819_s1 = sld [smem:[#allocation3 + $0x20]] }
 0x134   : > { %s2842_s15 = sld [smem:[#allocation3 + $0x58]] }
 0x135   : > { %4554 = sst [smem:[#allocation48_spill]] %s2813_s14 }
 0x136   : > { %s2824_s14 = sld [smem:[#allocation3 + $0x51]] }
 0x137   : > { %s4556_s19 = sld [smem:[#allocation14_spill]]  ;;  %v3022_v0 = vstv %s2815_s13 }
 0x138   : > { %4555 = sst [smem:[#allocation49_spill]] %s2817_s2  ;;  %4627 = vst [vmem:[#allocation79_spill] sm:$0xff] %v3022_v0 }
 0x139   : > { %s2830_s2 = sld [smem:[#allocation3 + $0x27]]  ;;  %v3028_v56 = vstv %s2819_s1 }
 0x13a   : > { %v306_v3 = vpop.permute.xlu1 %305  ;;  %v295_v4 = vpop.permute.xlu0 %294  ;;  %s4557_s20 = sld [smem:[#allocation15_spill]]  ;;  %4629 = vst [vmem:[#allocation81_spill] sm:$0xff] %v3028_v56  ;;  %v3037_v11 = vstv %s2842_s15  ;;  %s2595_s15 = smov 126  }
 0x13b   : > { %308 = vst.msk [vmem:[#allocation2 + $0x4] sm:$0x1] %vm297_vm2, %v306_v3  ;;  %298 = vst.msk [vmem:[#allocation2 + $0x3] sm:$0x1] %vm297_vm2, %v295_v4  ;;  %s4558_s21 = sld [smem:[#allocation16_spill]]  ;;  %v2996_v3 = vstv %s2797_s10  ;;  %v2999_v4 = vstv %s2799_s11 }
 0x13c   : > { %s4559_s22 = sld [smem:[#allocation17_spill]]  ;;  %4616 = vst [vmem:[#allocation71_spill] sm:$0xff] %v2996_v3  ;;  %4617 = vst [vmem:[#allocation72_spill] sm:$0xff] %v2999_v4  ;;  %v3031_v55 = vstv %s2824_s14  ;;  %s2596_s14 = smov 125  }
 0x13d   : > { %s2856_s23 = sld [smem:[#allocation3 + $0x2e]]  ;;  %v2884_v29 = vstv %s4556_s19  ;;  %4630 = vst [vmem:[#allocation82_spill] sm:$0xff] %v3031_v55  ;;  %4632 = vst [vmem:[#allocation84_spill] sm:$0xff] %v3037_v11 }
 0x13e   : > { %v310_v5 = vpop.permute.xlu1 %309  ;;  %v301_v6 = vpop.permute.xlu0 %300  ;;  %s4560_s18 = sld [smem:[#allocation18_spill]] }
 0x13f   : > { %312 = vst.msk [vmem:[#allocation2 + $0x1c] sm:$0x1] %vm297_vm2, %v310_v5  ;;  %304 = vst.msk [vmem:[#allocation2 + $0x1b] sm:$0x1] %vm297_vm2, %v301_v6  ;;  %s4561_s24 = sld [smem:[#allocation19_spill]]  ;;  %v3034_v12 = vstv %s2830_s2  ;;  %s2594_s2 = smov 127  }
 0x140   : > { %s4562_s25 = sld [smem:[#allocation20_spill]]  ;;  %v2889_v30 = vstv %s4557_s20  ;;  %4631 = vst [vmem:[#allocation83_spill] sm:$0xff] %v3034_v12 }
 0x141   : > { %s4563_s26 = sld [smem:[#allocation21_spill]]  ;;  %v2892_v31 = vstv %s4558_s21 }
 0x142   : > { %v318_v16 = vpop.permute.xlu1 %317  ;;  %v314_v17 = vpop.permute.xlu0 %313  ;;  %s2872_s27 = sld [smem:[#allocation3 + $0x5f]]  ;;  %4570 = vst [vmem:[#allocation50_spill] sm:$0xff] %v2892_v31  ;;  %v2895_v32 = vstv %s4559_s22 }
 0x143   : > { %320 = vst.msk [vmem:[#allocation2 + $0x1d] sm:$0x1] %vm297_vm2, %v318_v16  ;;  %316 = vst.msk [vmem:[#allocation2 + $0x5] sm:$0x1] %vm297_vm2, %v314_v17  ;;  %s4565_s17 = sld [smem:[#allocation22_spill]] }
 0x144   : > { %s4566_s29 = sld [smem:[#allocation23_spill]]  ;;  %4572 = vst [vmem:[#allocation51_spill] sm:$0xff] %v2895_v32  ;;  %v2898_v33 = vstv %s4560_s18 }
 0x145   : > { %s2886_s30 = sld [smem:[#allocation3 + $0x5]]  ;;  %v2903_v36 = vstv %s4561_s24 }
 0x146   : > { %s4568_s4 = sld [smem:[#allocation24_spill]]  ;;  %v326_v34 = vpop.permute.xlu1 %325  ;;  %v322_v35 = vpop.permute.xlu0 %321  ;;  %v2906_v37 = vstv %s4562_s25 }
 0x147   : > { %s4569_s5 = sld [smem:[#allocation25_spill]]  ;;  %v2909_v38 = vstv %s4563_s26  ;;  %328 = vst.msk [vmem:[#allocation2 + $0x1e] sm:$0x1] %vm297_vm2, %v326_v34  ;;  %324 = vst.msk [vmem:[#allocation2 + $0x6] sm:$0x1] %vm297_vm2, %v322_v35 }
 0x148   : > { %4564 = sst [smem:[#allocation14_spill]] %s2872_s27  ;;  %4579 = vst [vmem:[#allocation52_spill] sm:$0xff] %v2909_v38 }
 0x149   : > { %s4571_s16 = sld [smem:[#allocation26_spill]]  ;;  %v2912_v39 = vstv %s4565_s17 }
 0x14a   : > { %s4573_s6 = sld [smem:[#allocation27_spill]]  ;;  %4581 = vst [vmem:[#allocation53_spill] sm:$0xff] %v2912_v39  ;;  %v2919_v40 = vstv %s4566_s29  ;;  %v334_v52 = vpop.permute.xlu1 %333  ;;  %v330_v53 = vpop.permute.xlu0 %329 }
 0x14b   : > { %4567 = sst [smem:[#allocation15_spill]] %s2886_s30  ;;  %336 = vst.msk [vmem:[#allocation2 + $0x1f] sm:$0x1] %vm297_vm2, %v334_v52  ;;  %332 = vst.msk [vmem:[#allocation2 + $0x7] sm:$0x1] %vm297_vm2, %v330_v53  ;;  %v3014_v52 = vstv %s2809_s9 }
 0x14c   : > { %s2900_s7 = sld [smem:[#allocation3 + $0x36]]  ;;  %v2922_v41 = vstv %s4568_s4  ;;  %4625 = vst [vmem:[#allocation77_spill] sm:$0xff] %v3014_v52 }
 0x14d   : > { %s4575_s8 = sld [smem:[#allocation28_spill]]  ;;  %4584 = vst [vmem:[#allocation54_spill] sm:$0xff] %v2922_v41  ;;  %v2925_v42 = vstv %s4569_s5 }
 0x14e   : > { %s4576_s19 = sld [smem:[#allocation29_spill]]  ;;  %v342_v6 = vpop.permute.xlu1 %341  ;;  %v338_v16 = vpop.permute.xlu0 %337 }
 0x14f   : > { %s4577_s27 = sld [smem:[#allocation30_spill]]  ;;  %v2928_v43 = vstv %s4571_s16  ;;  %344 = vst.msk [vmem:[#allocation2 + $0x20] sm:$0x1] %vm297_vm2, %v342_v6  ;;  %340 = vst.msk [vmem:[#allocation2 + $0x8] sm:$0x1] %vm297_vm2, %v338_v16  ;;  %v3040_v6 = vstv %s2856_s23 }
 0x150   : > { %s4578_s20 = sld [smem:[#allocation31_spill]]  ;;  %4587 = vst [vmem:[#allocation55_spill] sm:$0xff] %v2928_v43  ;;  %v2933_v44 = vstv %s4573_s6  ;;  %4634 = vst [vmem:[#allocation85_spill] sm:$0xff] %v3040_v6 }
 0x151   : > { %s4580_s21 = sld [smem:[#allocation32_spill]] }
 0x152   : > { %4574 = sst [smem:[#allocation16_spill]] %s2900_s7  ;;  %v3050_v7 = vld [vmem:[#allocation2 + $0x18] sm:$0xff]  ;;  %v3052_v55 = vld [vmem:[#allocation2] sm:$0xff]  ;;  %v350_v12 = vpop.permute.xlu1 %349  ;;  %v346_v11 = vpop.permute.xlu0 %345 }
 0x153   : > { %s4582_s18 = sld [smem:[#allocation33_spill]]  ;;  %v2936_v45 = vstv %s4575_s8  ;;  %4642 = vst [vmem:[#allocation88_spill] sm:$0xff] %v3050_v7  ;;  %4643 = vst [vmem:[#allocation89_spill] sm:$0xff] %v3052_v55  ;;  %v603_v3 = vmul.f32 %v2851_v20, %v3050_v7 }
 0x154   : > { %s2914_s22 = sld [smem:[#allocation3 + $0xc]]  ;;  %v2939_v46 = vstv %s4576_s19  ;;  %352 = vst.msk [vmem:[#allocation2 + $0x21] sm:$0x1] %vm297_vm2, %v350_v12  ;;  %348 = vst.msk [vmem:[#allocation2 + $0x9] sm:$0x1] %vm297_vm2, %v346_v11  ;;  %v561_v11 = vmul.f32 %v2834_v13, %v3052_v55 }
 0x155   : > { %s4583_s7 = sld [smem:[#allocation34_spill]]  ;;  %4590 = vst [vmem:[#allocation56_spill] sm:$0xff] %v2939_v46  ;;  %v2942_v47 = vstv %s4577_s27 }
 0x156   : > { %s4585_s24 = sld [smem:[#allocation35_spill]]  ;;  %4591 = vst [vmem:[#allocation57_spill] sm:$0xff] %v2942_v47  ;;  %v2947_v48 = vstv %s4578_s20 }
 0x157   : > { %s4586_s25 = sld [smem:[#allocation36_spill]]  ;;  %4594 = vst [vmem:[#allocation58_spill] sm:$0xff] %v2947_v48  ;;  %v2950_v49 = vstv %s4580_s21 }
 0x158   : > { %s4588_s17 = sld [smem:[#allocation37_spill]]  ;;  %4595 = vst [vmem:[#allocation59_spill] sm:$0xff] %v2950_v49 }
 0x159   : > { %s2930_s26 = sld [smem:[#allocation3 + $0x3d]]  ;;  %v2953_v50 = vstv %s4582_s18 }
 0x15a   : > { %s4589_s30 = sld [smem:[#allocation38_spill]]  ;;  %4597 = vst [vmem:[#allocation60_spill] sm:$0xff] %v2953_v50  ;;  %v3048_v8 = vstv %s2914_s22 }
 0x15b   : > { %s4592_s29 = sld [smem:[#allocation39_spill]]  ;;  %v2956_v51 = vstv %s4583_s7  ;;  %4640 = vst [vmem:[#allocation87_spill] sm:$0xff] %v3048_v8 }
 0x15c   : > { %s2944_s4 = sld [smem:[#allocation3 + $0x13]]  ;;  %4599 = vst [vmem:[#allocation61_spill] sm:$0xff] %v2956_v51  ;;  %v2961_v54 = vstv %s4585_s24 }
 0x15d   : > { %s4593_s5 = sld [smem:[#allocation40_spill]]  ;;  %4601 = vst [vmem:[#allocation62_spill] sm:$0xff] %v2961_v54 }
 0x15e   : > { %s4596_s16 = sld [smem:[#allocation41_spill]] }
 0x15f   : > { %s4598_s6 = sld [smem:[#allocation42_spill]]  ;;  %v3055_v56 = vstv %s2930_s26 }
 0x160   : > { %s2958_s8 = sld [smem:[#allocation3 + $0x44]]  ;;  %v2966_v57 = vstv %s4589_s30  ;;  %4644 = vst [vmem:[#allocation90_spill] sm:$0xff] %v3055_v56 }
 0x161   : > { %s4600_s27 = sld [smem:[#allocation43_spill]]  ;;  %4603 = vst [vmem:[#allocation63_spill] sm:$0xff] %v2966_v57  ;;  %v2973_v58 = vstv %s4592_s29 }
 0x162   : > { %s4602_s19 = sld [smem:[#allocation44_spill]]  ;;  %4606 = vst [vmem:[#allocation64_spill] sm:$0xff] %v2973_v58  ;;  %v3058_v6 = vstv %s2944_s4  ;;  %s2597_s4 = smov 124  }
 0x163   : > { %s2968_s20 = sld [smem:[#allocation3 + $0x1a]]  ;;  %v2976_v59 = vstv %s4593_s5  ;;  %4645 = vst [vmem:[#allocation91_spill] sm:$0xff] %v3058_v6 }
 0x164   : > { %s4604_s7 = sld [smem:[#allocation45_spill]]  ;;  %4608 = vst [vmem:[#allocation65_spill] sm:$0xff] %v2976_v59  ;;  %v2982_v61 = vstv %s4596_s16 }
 0x165   : > { %s4605_s21 = sld [smem:[#allocation46_spill]]  ;;  %4610 = vst [vmem:[#allocation67_spill] sm:$0xff] %v2982_v61  ;;  %v2985_v62 = vstv %s4598_s6 }
 0x166   : > { %s4607_s18 = sld [smem:[#allocation47_spill]]  ;;  %4611 = vst [vmem:[#allocation68_spill] sm:$0xff] %v2985_v62 }
 0x167   : > { %s4612_s30 = sld [smem:[#allocation48_spill]]  ;;  %v2993_v2 = vstv %s4600_s27 }
 0x168   : > { %s4613_s24 = sld [smem:[#allocation49_spill]]  ;;  %4615 = vst [vmem:[#allocation70_spill] sm:$0xff] %v2993_v2  ;;  %v3002_v5 = vstv %s4602_s19 }
 0x169   : > { %4618 = vst [vmem:[#allocation73_spill] sm:$0xff] %v3002_v5  ;;  %s4619_s0 = sld [smem:[#allocation14_spill]]  ;;  %v354_v5 = vpop.permute.xlu0 %353 }
 0x16a   : > { %s4620_s29 = sld [smem:[#allocation15_spill]]  ;;  %v3005_v17 = vstv %s4604_s7  ;;  %356 = vst.msk [vmem:[#allocation2 + $0xa] sm:$0x1] %vm297_vm2, %v354_v5  ;;  %v641_v5 = vmul.f32 %v2867_v24, %v3050_v7 }
 0x16b   : > { %4621 = vst [vmem:[#allocation74_spill] sm:$0xff] %v3005_v17  ;;  %s4622_s28 = sld [smem:[#allocation16_spill]]  ;;  %v3008_v34 = vstv %s4605_s21  ;;  %v358_v17 = vpop.permute.xlu1 %357 }
 0x16c   : > { %4623 = vst [vmem:[#allocation75_spill] sm:$0xff] %v3008_v34  ;;  %v3011_v35 = vstv %s4607_s18  ;;  %s4633_s9 = sld [smem:[#allocation8_spill]]  ;;  %360 = vst.msk [vmem:[#allocation2 + $0x22] sm:$0x1] %vm297_vm2, %v358_v17  ;;  %v656_v17 = vmul.f32 %v2870_v25, %v3052_v55 }
 0x16d   : > { %4624 = vst [vmem:[#allocation76_spill] sm:$0xff] %v3011_v35  ;;  %v3019_v53 = vstv %s4612_s30  ;;  %s4635_s10 = sld [smem:[#allocation9_spill]]  ;;  %s2599_s30 = smov 122  }
 0x16e   : > { %4626 = vst [vmem:[#allocation78_spill] sm:$0xff] %v3019_v53  ;;  %v3025_v63 = vstv %s4613_s24  ;;  %s4637_s11 = sld [smem:[#allocation10_spill]] }
 0x16f   : > { %4628 = vst [vmem:[#allocation80_spill] sm:$0xff] %v3025_v63  ;;  %v3043_v16 = vstv %s4619_s0  ;;  %s4638_s13 = sld [smem:[#allocation11_spill]]  ;;  %v3061_v63 = vstv %s2958_s8  ;;  %s2598_s8 = smov 123  }
 0x170   : > { %4636 = vst [vmem:[#allocation86_spill] sm:$0xff] %v3043_v16  ;;  %s4639_s5 = sld [smem:[#allocation12_spill]]  ;;  %4646 = vst [vmem:[#allocation92_spill] sm:$0xff] %v3061_v63  ;;  %v3064_v16 = vstv %s2968_s20 }
 0x171   : > { %s4641_s1 = sld [smem:[#allocation13_spill]]  ;;  %4647 = vst [vmem:[#allocation93_spill] sm:$0xff] %v3064_v16 }
 0x172   : > { %v4648_v9 = vstv %s4633_s9  ;;  %s3543_s23 = sld [smem:[#allocation3 + $0x4b]] }
 0x173   : > { %v549_v10 = vmul.f32 %v4648_v9, %v3052_v55  ;;  %v4649_v8 = vstv %s4635_s10  ;;  %v565_v9 = vmul.f32 %v2837_v14, %v3050_v7  ;;  %s3567_s22 = sld [smem:[#allocation3 + $0x21]] }
 0x174   : > { %v552_v0 = vmul.f32 %v4649_v8, %v3050_v7  ;;  %v4650_v53 = vstv %s4637_s11  ;;  %s3678_s26 = sld [smem:[#allocation3 + $0x52]] }
 0x175   : > { %v675_v52 = vmul.f32 %v4650_v53, %v3052_v55  ;;  %v4651_v56 = vstv %s4638_s13  ;;  %v580_v53 = vmul.f32 %v2840_v15, %v3052_v55  ;;  %v3094_v4 = vadd.f32 %v565_v9, %v561_v11  ;;  %s3801_s16 = sld [smem:[#allocation3 + $0x28]] }
 0x176   : > { %v678_v6 = vmul.f32 %v4651_v56, %v3050_v7  ;;  %v4652_v63 = vstv %s4639_s5  ;;  %v553_v34 = vadd.f32 %v552_v0, %v549_v10  ;;  %v584_v56 = vmul.f32 %v2845_v18, %v3050_v7  ;;  %s3845_s6 = sld [smem:[#allocation3 + $0x59]] }
 0x177   : > { %v801_v35 = vmul.f32 %v4652_v63, %v3052_v55  ;;  %v4653_v16 = vstv %s4641_s1  ;;  %4654 = vst [vmem:[#allocation94_spill] sm:$0xff] %v3094_v4  ;;  %v618_v0 = vmul.f32 %v2854_v21, %v3052_v55  ;;  %v660_v9 = vmul.f32 %v2875_v26, %v3050_v7  ;;  %s4002_s27 = sld [smem:[#allocation3 + $0x6]] }
 0x178   : > { %v804_v12 = vmul.f32 %v4653_v16, %v3050_v7  ;;  %v679_v8 = vadd.f32 %v678_v6, %v675_v52  ;;  %v599_v16 = vmul.f32 %v2848_v19, %v3052_v55  ;;  %555 = vrot.lane.b32.xlu0 %v553_v34, %s2594_s2  ;;  %v3103_v10 = vadd.f32 %v584_v56, %v580_v53  ;;  %v368_v56 = vpop.permute.xlu1 %367  ;;  %v363_v6 = vpop.permute.xlu0 %362  ;;  %s4100_s19 = sld [smem:[#allocation3 + $0x3e]] }
 0x179   : > { %v637_v52 = vmul.f32 %v2864_v23, %v3052_v55  ;;  %v687_v53 = vmul.f32 %v2878_v27, %v3052_v55  ;;  %v691_v4 = vmul.f32 %v2881_v28, %v3050_v7  ;;  %v706_v34 = vmul.f32 %v2884_v29, %v3052_v55  ;;  %370 = vst.msk [vmem:[#allocation2 + $0x23] sm:$0x1] %vm297_vm2, %v368_v56  ;;  %s4128_s20 = sld [smem:[#allocation3 + $0x14]] }
 0x17a   : > { %v805_v63 = vadd.f32 %v804_v12, %v801_v35  ;;  %v622_v35 = vmul.f32 %v2861_v22, %v3050_v7  ;;  %v3112_v12 = vadd.f32 %v603_v3, %v599_v16  ;;  %365 = vst.msk [vmem:[#allocation2 + $0xb] sm:$0x1] %vm297_vm2, %v363_v6  ;;  %v729_v6 = vmul.f32 %v2895_v32, %v3050_v7  ;;  %s4140_s7 = sld [smem:[#allocation3 + $0x45]] }
 0x17b   : > { %v3126_v16 = vadd.f32 %v641_v5, %v637_v52  ;;  %v710_v52 = vmul.f32 %v2889_v30, %v3050_v7  ;;  %v725_v5 = vmul.f32 %v2892_v31, %v3052_v55  ;;  %v767_v32 = vmul.f32 %v2909_v38, %v3050_v7  ;;  %s4163_s21 = sld [smem:[#allocation3 + $0x1b]] }
 0x17c   : > { %4655 = vst [vmem:[#allocation95_spill] sm:$0xff] %v3112_v12  ;;  %v3119_v11 = vadd.f32 %v622_v35, %v618_v0  ;;  %681 = vrot.lane.b32.xlu0 %v679_v8, %s2595_s15  ;;  %v3136_v35 = vadd.f32 %v660_v9, %v656_v17  ;;  %v3143_v12 = vadd.f32 %v691_v4, %v687_v53  ;;  %v376_v31 = vpop.permute.xlu1 %375  ;;  %v372_v3 = vpop.permute.xlu0 %371  ;;  %s4169_s18 = sld [smem:[#allocation3 + $0x4c]] }
 0x17d   : > { %v744_v8 = vmul.f32 %v2898_v33, %v3052_v55  ;;  %v3150_v17 = vadd.f32 %v710_v52, %v706_v34  ;;  %v748_v9 = vmul.f32 %v2903_v36, %v3050_v7  ;;  %v763_v0 = vmul.f32 %v2906_v37, %v3052_v55  ;;  %378 = vst.msk [vmem:[#allocation2 + $0x24] sm:$0x1] %vm297_vm2, %v376_v31  ;;  %s4192_s24 = sld [smem:[#allocation3 + $0x22]] }
 0x17e   : > { %v3157_v53 = vadd.f32 %v729_v6, %v725_v5  ;;  %v782_v56 = vmul.f32 %v2912_v39, %v3052_v55  ;;  %374 = vst.msk [vmem:[#allocation2 + $0xc] sm:$0x1] %vm297_vm2, %v372_v3  ;;  %v786_v5 = vmul.f32 %v2919_v40, %v3050_v7  ;;  %v813_v6 = vmul.f32 %v2922_v41, %v3052_v55  ;;  %s4203_s0 = sld [smem:[#allocation3 + $0x53]] }
 0x17f   : > { %v3167_v52 = vadd.f32 %v748_v9, %v744_v8  ;;  %v3174_v39 = vadd.f32 %v767_v32, %v763_v0  ;;  %v817_v31 = vmul.f32 %v2925_v42, %v3050_v7  ;;  %v836_v9 = vmul.f32 %v2933_v44, %v3050_v7 }
 0x180   : > { %807 = vrot.lane.b32.xlu0 %v805_v63, %s2596_s14  ;;  %v832_v63 = vmul.f32 %v2928_v43, %v3052_v55  ;;  %v3181_v8 = vadd.f32 %v786_v5, %v782_v56  ;;  %v851_v34 = vmul.f32 %v2936_v45, %v3052_v55  ;;  %v384_v41 = vpop.permute.xlu1 %383  ;;  %v380_v4 = vpop.permute.xlu0 %379  ;;  %v855_v43 = vmul.f32 %v2939_v46, %v3050_v7 }
 0x181   : > { %v3188_v0 = vadd.f32 %v817_v31, %v813_v6  ;;  %v870_v56 = vmul.f32 %v2942_v47, %v3052_v55  ;;  %386 = vst.msk [vmem:[#allocation2 + $0x25] sm:$0x1] %vm297_vm2, %v384_v41  ;;  %382 = vst.msk [vmem:[#allocation2 + $0xd] sm:$0x1] %vm297_vm2, %v380_v4  ;;  %v874_v32 = vmul.f32 %v2947_v48, %v3050_v7  ;;  %v4658_v48 = vstv %s4586_s25 }
 0x182   : > { %v3197_v3 = vadd.f32 %v836_v9, %v832_v63  ;;  %v889_v6 = vmul.f32 %v2950_v49, %v3052_v55  ;;  %v3204_v46 = vadd.f32 %v855_v43, %v851_v34  ;;  %v893_v41 = vmul.f32 %v2953_v50, %v3050_v7 }
 0x183   : > { %v908_v4 = vmul.f32 %v2956_v51, %v3052_v55  ;;  %v3211_v9 = vadd.f32 %v874_v32, %v870_v56  ;;  %v912_v5 = vmul.f32 %v2961_v54, %v3050_v7  ;;  %v927_v49 = vmul.f32 %v4658_v48, %v3052_v55 }
 0x184   : > { %4656 = vst [vmem:[#allocation96_spill] sm:$0xff] %v3204_v46  ;;  %v392_v47 = vpop.permute.xlu1 %391  ;;  %v388_v31 = vpop.permute.xlu0 %387  ;;  %v3219_v34 = vadd.f32 %v893_v41, %v889_v6  ;;  %v4660_v51 = vstv %s4588_s17  ;;  %v939_v32 = vmul.f32 %v2966_v57, %v3052_v55  ;;  %v943_v6 = vmul.f32 %v2973_v58, %v3050_v7 }
 0x185   : > { %4657 = vst [vmem:[#allocation97_spill] sm:$0xff] %v3211_v9  ;;  %v930_v50 = vmul.f32 %v4660_v51, %v3050_v7  ;;  %394 = vst.msk [vmem:[#allocation2 + $0x26] sm:$0x1] %vm297_vm2, %v392_v47  ;;  %v3229_v56 = vadd.f32 %v912_v5, %v908_v4  ;;  %v958_v51 = vmul.f32 %v2976_v59, %v3052_v55  ;;  %v4668_v5 = vstv %s2791_s12 }
 0x186   : > { %4659 = vst [vmem:[#allocation98_spill] sm:$0xff] %v3219_v34  ;;  %390 = vst.msk [vmem:[#allocation2 + $0xe] sm:$0x1] %vm297_vm2, %v388_v31  ;;  %v962_v47 = vmul.f32 %v2979_v60, %v3050_v7  ;;  %v3242_v31 = vmul.f32 %v2982_v61, %v3052_v55  ;;  %v3245_v4 = vadd.f32 %v943_v6, %v939_v32  ;;  %v4679_v54 = vstv %s4635_s10  ;;  %s4260_s10 = sld [smem:[#allocation3 + $0x61]] }
 0x187   : > { %4661 = vst [vmem:[#allocation99_spill] sm:$0xff] %v3229_v56  ;;  %v3236_v43 = vadd.f32 %v930_v50, %v927_v49  ;;  %v3249_v48 = vmul.f32 %v2985_v62, %v3050_v7  ;;  %v4665_v49 = vstv %s2789_s3  ;;  %v3265_v32 = vmul.f32 %v4668_v5, %v3050_v7 }
 0x188   : > { %4663 = vst [vmem:[#allocation101_spill] sm:$0xff] %v3242_v31  ;;  %v3254_v50 = vmul.f32 %v4665_v49, %v3052_v55  ;;  %v3256_v41 = vld [vmem:[#allocation2 + $0x20] sm:$0x3f]  ;;  %v3258_v63 = vld [vmem:[#allocation2 + $0x8] sm:$0x3f]  ;;  %v396_v31 = vpop.permute.xlu0 %395  ;;  %v3260_v61 = vadd.f32 %v962_v47, %v958_v51  ;;  %v3269_v6 = vmul.f32 %v2990_v1, %v3052_v55  ;;  %v3273_v49 = vmul.f32 %v2993_v2, %v3050_v7 }
 0x189   : > { %4662 = vst [vmem:[#allocation100_spill] sm:$0xff] %v3236_v43  ;;  %4664 = vst [vmem:[#allocation102_spill] sm:$0xff] %v3249_v48  ;;  %v400_v43 = vpop.permute.xlu1 %399  ;;  %v562_v51 = vmul.f32 %v2834_v13, %v3258_v63  ;;  %v566_v47 = vmul.f32 %v2837_v14, %v3256_v41  ;;  %v581_v5 = vmul.f32 %v2840_v15, %v3258_v63  ;;  %v4680_v9 = vstv %s4637_s11  ;;  %s4762_s11 = sld [smem:[#allocation7_spill]] }
 0x18a   : > { %4666 = vst [vmem:[#allocation103_spill] sm:$0xff] %v3254_v50  ;;  %4667 = vst [vmem:[#allocation104_spill] sm:$0xff] %v3260_v61  ;;  %v585_v55 = vmul.f32 %v2845_v18, %v3256_v41  ;;  %v600_v7 = vmul.f32 %v2848_v19, %v3258_v63  ;;  %v638_v1 = vmul.f32 %v2864_v23, %v3258_v63  ;;  %v4691_v61 = vrot.slane %v3167_v52, 4 }
 0x18b   : > { %4669 = vst [vmem:[#allocation105_spill] sm:$0xff] %v3265_v32  ;;  %4670 = vst [vmem:[#allocation106_spill] sm:$0xff] %v3269_v6  ;;  %v568_v6 = vadd.f32 %v566_v47, %v562_v51  ;;  %v642_v32 = vmul.f32 %v2867_v24, %v3256_v41  ;;  %v657_v59 = vmul.f32 %v2870_v25, %v3258_v63 }
 0x18c   : > { %4671 = vst [vmem:[#allocation107_spill] sm:$0xff] %v3273_v49  ;;  %402 = vst.msk [vmem:[#allocation2 + $0x27] sm:$0x1] %vm297_vm2, %v400_v43  ;;  %v604_v43 = vmul.f32 %v2851_v20, %v3256_v41  ;;  %v623_v49 = vmul.f32 %v2861_v22, %v3256_v41  ;;  %v587_v2 = vadd.f32 %v585_v55, %v581_v5  ;;  %v404_v48 = vpop.permute.xlu0 %403 }
 0x18d   : > { %398 = vst.msk [vmem:[#allocation2 + $0xf] sm:$0x1] %vm297_vm2, %v396_v31  ;;  %v619_v31 = vmul.f32 %v2854_v21, %v3258_v63  ;;  %v408_v50 = vpop.permute.xlu1 %407  ;;  %v661_v58 = vmul.f32 %v2875_v26, %v3256_v41  ;;  %406 = vst.msk [vmem:[#allocation2 + $0x10] sm:$0x1] %vm297_vm2, %v404_v48  ;;  %v572_v55 = vrot.slane %v568_v6, 1  ;;  %v644_v47 = vadd.f32 %v642_v32, %v638_v1 }
 0x18e   : > { %v606_v62 = vadd.f32 %v604_v43, %v600_v7  ;;  %410 = vst.msk [vmem:[#allocation2 + $0x28] sm:$0x1] %vm297_vm2, %v408_v50  ;;  %v591_v51 = vrot.slane %v587_v2, 2  ;;  %v688_v5 = vmul.f32 %v2878_v27, %v3258_v63  ;;  %v4672_v43 = vld [vmem:[#allocation94_spill] sm:$0xff]  ;;  %v4674_v50 = vrot.slane %v3103_v10, 2  ;;  %v4675_v10 = vld [vmem:[#allocation95_spill] sm:$0xff] }
 0x18f   : > { %v625_v60 = vadd.f32 %v623_v49, %v619_v31  ;;  %v663_v7 = vadd.f32 %v661_v58, %v657_v59  ;;  %v692_v49 = vmul.f32 %v2881_v28, %v3256_v41  ;;  %v4673_v31 = vrot.slane %v4672_v43, 1 }
 0x190   : > { %v610_v57 = vrot.slane %v606_v62, 3  ;;  %v592_v2 = vsel %vm469_vm4, %v4674_v50, %v591_v51  ;;  %v648_v1 = vrot.slane %v644_v47, 5  ;;  %v412_v48 = vpop.permute.xlu0 %411  ;;  %v4676_v32 = vrot.slane %v4675_v10, 3 }
 0x191   : > { %v629_v56 = vrot.slane %v625_v60, 4  ;;  %v573_v34 = vsel %vm451_vm3, %v4673_v31, %v572_v55  ;;  %v707_v60 = vmul.f32 %v2884_v29, %v3258_v63  ;;  %v416_v62 = vpop.permute.xlu1 %415  ;;  %v4677_v55 = vrot.slane %v3119_v11, 4  ;;  %414 = vst.msk [vmem:[#allocation2 + $0x11] sm:$0x1] %vm297_vm2, %v412_v48 }
 0x192   : > { %574 = vrot.lane.b32.xlu0 %v573_v34, %s2594_s2  ;;  %v611_v6 = vsel %vm487_vm5, %v4676_v32, %v610_v57  ;;  %v667_v47 = vrot.slane %v663_v7, 6  ;;  %v694_v43 = vadd.f32 %v692_v49, %v688_v5  ;;  %418 = vst.msk [vmem:[#allocation2 + $0x29] sm:$0x1] %vm297_vm2, %v416_v62  ;;  %v4678_v31 = vstv %s4633_s9  ;;  %s4253_s9 = sld [smem:[#allocation3 + $0x30]] }
 0x193   : > { %v3315_v58 = vld [vmem:[#allocation2 + $0x20] sm:$0xff]  ;;  %v630_v51 = vsel %vm505_vm6, %v4677_v55, %v629_v56  ;;  %v4681_v57 = vstv %s4638_s13  ;;  %v4682_v32 = vstv %s4639_s5  ;;  %v4683_v5 = vstv %s4641_s1 }
 0x194   : > { %v3317_v59 = vld [vmem:[#allocation2 + $0x8] sm:$0xff]  ;;  %v1432_v34 = vmul.f32 %v3315_v58, %v4679_v54  ;;  %v1558_v11 = vmul.f32 %v3315_v58, %v4681_v57  ;;  %v1684_v7 = vmul.f32 %v3315_v58, %v4683_v5  ;;  %v4684_v49 = vrot.slane %v3126_v16, 5  ;;  %v420_v16 = vpop.permute.xlu0 %419 }
 0x195   : > { %v1429_v50 = vmul.f32 %v3317_v59, %v4678_v31  ;;  %v1555_v10 = vmul.f32 %v3317_v59, %v4680_v9  ;;  %v1681_v56 = vmul.f32 %v3317_v59, %v4682_v32  ;;  %v4685_v48 = vrot.slane %v3136_v35, 6  ;;  %v424_v32 = vpop.permute.xlu1 %423  ;;  %422 = vst.msk [vmem:[#allocation2 + $0x12] sm:$0x1] %vm297_vm2, %v420_v16 }
 0x196   : > { %v3349_v62 = vsel %vm523_vm7, %v4684_v49, %v648_v1  ;;  %v1441_v31 = vmul.f32 %v3317_v59, %v2834_v13  ;;  %v1445_v57 = vmul.f32 %v3315_v58, %v2837_v14  ;;  %593 = vrot.lane.b32.xlu0 %v592_v2, %s2594_s2  ;;  %v698_v1 = vrot.slane %v694_v43, 1  ;;  %426 = vst.msk [vmem:[#allocation2 + $0x2a] sm:$0x1] %vm297_vm2, %v424_v32 }
 0x197   : > { %v3354_v54 = vsel %vm541_vm8, %v4685_v48, %v667_v47  ;;  %v1433_v9 = vadd.f32 %v1432_v34, %v1429_v50  ;;  %v1559_v55 = vadd.f32 %v1558_v11, %v1555_v10  ;;  %v1685_v5 = vadd.f32 %v1684_v7, %v1681_v56  ;;  %v4687_v7 = vld [vmem:[#allocation50_spill] sm:$0xff]  ;;  %v4688_v48 = vld [vmem:[#allocation51_spill] sm:$0xff] }
 0x198   : > { %v1460_v35 = vmul.f32 %v3317_v59, %v2840_v15  ;;  %v1464_v47 = vmul.f32 %v3315_v58, %v2845_v18  ;;  %v3368_v50 = vadd.f32 %v1445_v57, %v1441_v31  ;;  %v711_v2 = vmul.f32 %v2889_v30, %v3256_v41 }
 0x199   : > { %1435 = vrot.lane.b32.xlu1 %v1433_v9, %s2594_s2  ;;  %v1479_v43 = vmul.f32 %v3317_v59, %v2848_v19  ;;  %v1483_v34 = vmul.f32 %v3315_v58, %v2851_v20  ;;  %v4686_v10 = vrot.slane %v3143_v12, 1  ;;  %v726_v49 = vmul.f32 %v4687_v7, %v3258_v63 }
 0x19a   : > { %v1466_v56 = vadd.f32 %v1464_v47, %v1460_v35  ;;  %v730_v9 = vmul.f32 %v4688_v48, %v3256_v41  ;;  %v1451_v31 = vrot.slane %v3368_v50, 1  ;;  %v713_v57 = vadd.f32 %v711_v2, %v707_v60  ;;  %612 = vrot.lane.b32.xlu0 %v611_v6, %s2594_s2 }
 0x19b   : > { %v3379_v11 = vsel %vm451_vm3, %v4686_v10, %v698_v1  ;;  %v1485_v32 = vadd.f32 %v1483_v34, %v1479_v43  ;;  %v1498_v16 = vmul.f32 %v3317_v59, %v2854_v21  ;;  %v1502_v1 = vmul.f32 %v3315_v58, %v2861_v22 }
 0x19c   : > { %v1470_v12 = vrot.slane %v1466_v56, 2  ;;  %v732_v46 = vadd.f32 %v730_v9, %v726_v49  ;;  %v745_v35 = vmul.f32 %v2898_v33, %v3258_v63  ;;  %v717_v47 = vrot.slane %v713_v57, 2 }
 0x19d   : > { %1561 = vrot.lane.b32.xlu1 %v1559_v55, %s2595_s15  ;;  %v1489_v10 = vrot.slane %v1485_v32, 3  ;;  %v749_v60 = vmul.f32 %v2903_v36, %v3256_v41  ;;  %v1517_v50 = vmul.f32 %v3317_v59, %v2864_v23  ;;  %v1504_v6 = vadd.f32 %v1502_v1, %v1498_v16  ;;  %v3413_v32 = vld [vmem:[#allocation2 + $0x10] sm:$0x3f] }
 0x19e   : > { %v736_v2 = vrot.slane %v732_v46, 3  ;;  %v1521_v43 = vmul.f32 %v3315_v58, %v2867_v24  ;;  %v764_v34 = vmul.f32 %v2906_v37, %v3258_v63  ;;  %v4689_v56 = vrot.slane %v3150_v17, 2  ;;  %v3411_v46 = vld [vmem:[#allocation2 + $0x28] sm:$0x3f]  ;;  %631 = vrot.lane.b32.xlu0 %v630_v51, %s2594_s2 }
 0x19f   : > { %v751_v49 = vadd.f32 %v749_v60, %v745_v35  ;;  %v768_v9 = vmul.f32 %v2909_v38, %v3256_v41  ;;  %v1536_v57 = vmul.f32 %v3317_v59, %v2870_v25  ;;  %v4690_v16 = vrot.slane %v3157_v53, 3 }
 0x1a0   : > { %v3405_v55 = vsel %vm469_vm4, %v4689_v56, %v717_v47  ;;  %v1508_v1 = vrot.slane %v1504_v6, 4  ;;  %v1523_v47 = vadd.f32 %v1521_v43, %v1517_v50  ;;  %v1540_v35 = vmul.f32 %v3315_v58, %v2875_v26 }
 0x1a1   : > { %v3419_v17 = vsel %vm487_vm5, %v4690_v16, %v736_v2  ;;  %1687 = vrot.lane.b32.xlu1 %v1685_v5, %s2596_s14  ;;  %v1442_v60 = vmul.f32 %v3413_v32, %v2834_v13  ;;  %v1446_v56 = vmul.f32 %v3411_v46, %v2837_v14  ;;  %v1461_v51 = vmul.f32 %v3413_v32, %v2840_v15 }
 0x1a2   : > { %v1465_v53 = vmul.f32 %v3411_v46, %v2845_v18  ;;  %v1480_v50 = vmul.f32 %v3413_v32, %v2848_v19  ;;  %v1484_v2 = vmul.f32 %v3411_v46, %v2851_v20  ;;  %v1499_v5 = vmul.f32 %v3413_v32, %v2854_v21  ;;  %650 = vrot.lane.b32.xlu0 %v3349_v62, %s2594_s2 }
 0x1a3   : > { %v1503_v13 = vmul.f32 %v3411_v46, %v2861_v22  ;;  %v1448_v6 = vadd.f32 %v1446_v56, %v1442_v60  ;;  %v755_v43 = vrot.slane %v751_v49, 4  ;;  %v1518_v15 = vmul.f32 %v3413_v32, %v2864_v23 }
 0x1a4   : > { %v1467_v14 = vadd.f32 %v1465_v53, %v1461_v51  ;;  %v1486_v18 = vadd.f32 %v1484_v2, %v1480_v50  ;;  %v1522_v20 = vmul.f32 %v3411_v46, %v2867_v24  ;;  %v1527_v16 = vrot.slane %v1523_v47, 5 }
 0x1a5   : > { %v1505_v19 = vadd.f32 %v1503_v13, %v1499_v5  ;;  %v1452_v38 = vrot.slane %v1448_v6, 1  ;;  %v3449_v22 = vsel %vm505_vm6, %v4691_v61, %v755_v43  ;;  %v770_v49 = vadd.f32 %v768_v9, %v764_v34  ;;  %v4694_v13 = vld [vmem:[#allocation54_spill] sm:$0xff] }
 0x1a6   : > { %v1471_v21 = vrot.slane %v1467_v14, 2  ;;  %v1490_v60 = vrot.slane %v1486_v18, 3  ;;  %v1524_v23 = vadd.f32 %v1522_v20, %v1518_v15  ;;  %v1537_v62 = vmul.f32 %v3413_v32, %v2870_v25  ;;  %669 = vrot.lane.b32.xlu0 %v3354_v54, %s2594_s2 }
 0x1a7   : > { %v1509_v56 = vrot.slane %v1505_v19, 4  ;;  %v1453_v51 = vsel %vm451_vm3, %v1451_v31, %v1452_v38  ;;  %v774_v24 = vrot.slane %v770_v49, 5  ;;  %v1541_v47 = vmul.f32 %v3411_v46, %v2875_v26 }
 0x1a8   : > { %v1472_v53 = vsel %vm469_vm4, %v1470_v12, %v1471_v21  ;;  %1454 = vrot.lane.b32.xlu1 %v1453_v51, %s2594_s2  ;;  %v1491_v61 = vsel %vm487_vm5, %v1489_v10, %v1490_v60  ;;  %v1528_v34 = vrot.slane %v1524_v23, 5  ;;  %v1542_v9 = vadd.f32 %v1540_v35, %v1536_v57  ;;  %v4693_v12 = vld [vmem:[#allocation53_spill] sm:$0xff] }
 0x1a9   : > { %v1510_v52 = vsel %vm505_vm6, %v1508_v1, %v1509_v56  ;;  %v4692_v25 = vrot.slane %v3174_v39, 5  ;;  %v1543_v31 = vadd.f32 %v1541_v47, %v1537_v62  ;;  %v783_v26 = vmul.f32 %v4693_v12, %v3258_v63  ;;  %v4696_v62 = vld [vmem:[#allocation55_spill] sm:$0xff] }
 0x1aa   : > { %v787_v54 = vmul.f32 %v2919_v40, %v3256_v41  ;;  %v3472_v50 = vsel %vm523_vm7, %v1527_v16, %v1528_v34  ;;  %v1546_v10 = vrot.slane %v1542_v9, 6  ;;  %v1567_v1 = vmul.f32 %v3317_v59, %v2878_v27  ;;  %700 = vrot.lane.b32.xlu0 %v3379_v11, %s2595_s15 }
 0x1ab   : > { %v3465_v38 = vsel %vm523_vm7, %v4692_v25, %v774_v24  ;;  %v1568_v39 = vmul.f32 %v3413_v32, %v2878_v27  ;;  %v1547_v57 = vrot.slane %v1543_v31, 6  ;;  %v1571_v2 = vmul.f32 %v3315_v58, %v2881_v28 }
 0x1ac   : > { %v789_v35 = vadd.f32 %v787_v54, %v783_v26  ;;  %v1572_v5 = vmul.f32 %v3411_v46, %v2881_v28  ;;  %1473 = vrot.lane.b32.xlu1 %v1472_v53, %s2594_s2  ;;  %v814_v6 = vmul.f32 %v4694_v13, %v3258_v63  ;;  %v818_v14 = vmul.f32 %v2925_v42, %v3256_v41 }
 0x1ad   : > { %v1586_v27 = vmul.f32 %v3317_v59, %v2884_v29  ;;  %v949_v43 = vrot.slane %v3245_v4, 1  ;;  %v3493_v15 = vsel %vm541_vm8, %v1546_v10, %v1547_v57  ;;  %v1573_v18 = vadd.f32 %v1571_v2, %v1567_v1 }
 0x1ae   : > { %v793_v28 = vrot.slane %v789_v35, 6  ;;  %v1574_v19 = vadd.f32 %v1572_v5, %v1568_v39  ;;  %v820_v11 = vadd.f32 %v818_v14, %v814_v6  ;;  %v1587_v20 = vmul.f32 %v3413_v32, %v2884_v29  ;;  %719 = vrot.lane.b32.xlu0 %v3405_v55, %s2595_s15 }
 0x1af   : > { %v1590_v16 = vmul.f32 %v3315_v58, %v2889_v30  ;;  %v1591_v21 = vmul.f32 %v3411_v46, %v2889_v30  ;;  %v4695_v49 = vrot.slane %v3181_v8, 6  ;;  %v1577_v56 = vrot.slane %v1573_v18, 1 }
 0x1b0   : > { %v1578_v23 = vrot.slane %v1574_v19, 1  ;;  %v833_v51 = vmul.f32 %v4696_v62, %v3258_v63  ;;  %1492 = vrot.lane.b32.xlu1 %v1491_v61, %s2594_s2  ;;  %v824_v29 = vrot.slane %v820_v11, 1  ;;  %v837_v30 = vmul.f32 %v2933_v44, %v3256_v41 }
 0x1b1   : > { %v3504_v60 = vsel %vm541_vm8, %v4695_v49, %v793_v28  ;;  %v1592_v53 = vadd.f32 %v1590_v16, %v1586_v27  ;;  %v1593_v24 = vadd.f32 %v1591_v21, %v1587_v20  ;;  %v1605_v47 = vmul.f32 %v3317_v59, %v4687_v7  ;;  %v4700_v28 = vld [vmem:[#allocation57_spill] sm:$0xff] }
 0x1b2   : > { %v3514_v8 = vsel %vm451_vm3, %v1577_v56, %v1578_v23  ;;  %v1606_v34 = vmul.f32 %v3413_v32, %v4687_v7  ;;  %v1609_v55 = vmul.f32 %v3315_v58, %v4688_v48  ;;  %v4697_v61 = vrot.slane %v3188_v0, 1  ;;  %v4698_v7 = vld [vmem:[#allocation56_spill] sm:$0xff]  ;;  %738 = vrot.lane.b32.xlu0 %v3419_v17, %s2595_s15 }
 0x1b3   : > { %v1596_v25 = vrot.slane %v1592_v53, 2  ;;  %v1597_v31 = vrot.slane %v1593_v24, 2  ;;  %v839_v26 = vadd.f32 %v837_v30, %v833_v51  ;;  %v1610_v54 = vmul.f32 %v3411_v46, %v4688_v48  ;;  %v4702_v56 = vld [vmem:[#allocation104_spill] sm:$0xff] }
 0x1b4   : > { %v3525_v9 = vsel %vm451_vm3, %v4697_v61, %v824_v29  ;;  %v1611_v10 = vadd.f32 %v1609_v55, %v1605_v47  ;;  %v852_v1 = vmul.f32 %v2936_v45, %v3258_v63  ;;  %v856_v39 = vmul.f32 %v4698_v7, %v3256_v41  ;;  %1511 = vrot.lane.b32.xlu1 %v1510_v52, %s2594_s2  ;;  %v4703_v29 = vld [vmem:[#allocation96_spill] sm:$0xff]  ;;  %v4706_v55 = vld [vmem:[#allocation59_spill] sm:$0xff] }
 0x1b5   : > { %v3537_v0 = vsel %vm469_vm4, %v1596_v25, %v1597_v31  ;;  %v843_v57 = vrot.slane %v839_v26, 2  ;;  %v1624_v35 = vmul.f32 %v3317_v59, %v2898_v33  ;;  %v1625_v48 = vmul.f32 %v3413_v32, %v2898_v33  ;;  %v4701_v33 = vld [vmem:[#allocation58_spill] sm:$0xff]  ;;  %v4707_v31 = vld [vmem:[#allocation60_spill] sm:$0xff] }
 0x1b6   : > { %v1612_v2 = vadd.f32 %v1610_v54, %v1606_v34  ;;  %v1615_v5 = vrot.slane %v1611_v10, 3  ;;  %v858_v6 = vadd.f32 %v856_v39, %v852_v1  ;;  %v1628_v17 = vmul.f32 %v3315_v58, %v2903_v36  ;;  %757 = vrot.lane.b32.xlu0 %v3449_v22, %s2595_s15  ;;  %v4708_v39 = vld [vmem:[#allocation97_spill] sm:$0xff] }
 0x1b7   : > { %v4699_v52 = vrot.slane %v3197_v3, 2  ;;  %v1629_v27 = vmul.f32 %v3411_v46, %v2903_v36  ;;  %v871_v18 = vmul.f32 %v4700_v28, %v3258_v63  ;;  %v875_v19 = vmul.f32 %v4701_v33, %v3256_v41 }
 0x1b8   : > { %v1616_v11 = vrot.slane %v1612_v2, 3  ;;  %v862_v20 = vrot.slane %v858_v6, 3  ;;  %v1630_v16 = vadd.f32 %v1628_v17, %v1624_v35  ;;  %v1643_v21 = vmul.f32 %v3317_v59, %v2906_v37  ;;  %1530 = vrot.lane.b32.xlu1 %v3472_v50, %s2594_s2  ;;  %v4705_v50 = vld [vmem:[#allocation52_spill] sm:$0xff]  ;;  %v4710_v17 = vld [vmem:[#allocation61_spill] sm:$0xff] }
 0x1b9   : > { %v3550_v14 = vsel %vm469_vm4, %v4699_v52, %v843_v57  ;;  %v1631_v3 = vadd.f32 %v1629_v27, %v1625_v48  ;;  %v877_v36 = vadd.f32 %v875_v19, %v871_v18  ;;  %v1644_v49 = vmul.f32 %v3413_v32, %v2906_v37  ;;  %v4711_v27 = vld [vmem:[#allocation62_spill] sm:$0xff] }
 0x1ba   : > { %v968_v23 = vrot.slane %v4702_v56, 2  ;;  %v3570_v51 = vsel %vm487_vm5, %v1615_v5, %v1616_v11  ;;  %v4704_v53 = vrot.slane %v4703_v29, 3  ;;  %v1634_v22 = vrot.slane %v1630_v16, 4  ;;  %776 = vrot.lane.b32.xlu0 %v3465_v38, %s2595_s15  ;;  %v4712_v29 = vld [vmem:[#allocation98_spill] sm:$0xff] }
 0x1bb   : > { %v1647_v30 = vmul.f32 %v3315_v58, %v4705_v50  ;;  %v1635_v47 = vrot.slane %v1631_v3, 4  ;;  %v881_v34 = vrot.slane %v877_v36, 4  ;;  %v1648_v37 = vmul.f32 %v3411_v46, %v4705_v50 }
 0x1bc   : > { %v3575_v24 = vsel %vm487_vm5, %v4704_v53, %v862_v20  ;;  %v890_v61 = vmul.f32 %v4706_v55, %v3258_v63  ;;  %v894_v26 = vmul.f32 %v4707_v31, %v3256_v41  ;;  %v1662_v54 = vmul.f32 %v3317_v59, %v4693_v12  ;;  %1549 = vrot.lane.b32.xlu1 %v3493_v15, %s2594_s2 }
 0x1bd   : > { %v1649_v25 = vadd.f32 %v1647_v30, %v1643_v21  ;;  %v1663_v10 = vmul.f32 %v3413_v32, %v4693_v12  ;;  %v3594_v1 = vsel %vm505_vm6, %v1634_v22, %v1635_v47  ;;  %v4709_v57 = vrot.slane %v4708_v39, 4  ;;  %v4716_v39 = vld [vmem:[#allocation63_spill] sm:$0xff] }
 0x1be   : > { %v1650_v48 = vadd.f32 %v1648_v37, %v1644_v49  ;;  %v3602_v2 = vstv %s3543_s23  ;;  %v896_v6 = vadd.f32 %v894_v26, %v890_v61  ;;  %v1666_v38 = vmul.f32 %v3315_v58, %v2919_v40  ;;  %795 = vrot.lane.b32.xlu0 %v3504_v60, %s2595_s15 }
 0x1bf   : > { %v3599_v35 = vsel %vm505_vm6, %v4709_v57, %v881_v34  ;;  %v1653_v5 = vrot.slane %v1649_v25, 5  ;;  %v1667_v12 = vmul.f32 %v3411_v46, %v2919_v40  ;;  %v909_v52 = vmul.f32 %v4710_v17, %v3258_v63 }
 0x1c0   : > { %v1654_v15 = vrot.slane %v1650_v48, 5  ;;  %v913_v18 = vmul.f32 %v4711_v27, %v3256_v41  ;;  %v1693_v19 = vmul.f32 %v3317_v59, %v4694_v13  ;;  %v900_v11 = vrot.slane %v896_v6, 5  ;;  %1580 = vrot.lane.b32.xlu1 %v3514_v8, %s2595_s15  ;;  %v4717_v48 = vld [vmem:[#allocation64_spill] sm:$0xff] }
 0x1c1   : > { %v1668_v20 = vadd.f32 %v1666_v38, %v1662_v54  ;;  %v1669_v16 = vadd.f32 %v1667_v12, %v1663_v10  ;;  %v1694_v21 = vmul.f32 %v3413_v32, %v4694_v13  ;;  %v1697_v36 = vmul.f32 %v3315_v58, %v2925_v42 }
 0x1c2   : > { %v3621_v40 = vsel %vm523_vm7, %v1653_v5, %v1654_v15  ;;  %v915_v3 = vadd.f32 %v913_v18, %v909_v52  ;;  %v3626_v49 = vstv %s3567_s22  ;;  %v4713_v53 = vrot.slane %v4712_v29, 5  ;;  %826 = vrot.lane.b32.xlu0 %v3525_v9, %s2596_s14 }
 0x1c3   : > { %v1672_v13 = vrot.slane %v1668_v20, 6  ;;  %v1673_v50 = vrot.slane %v1669_v16, 6  ;;  %v1698_v60 = vmul.f32 %v3411_v46, %v2925_v42  ;;  %v1699_v30 = vadd.f32 %v1697_v36, %v1693_v19  ;;  %v4714_v42 = vld [vmem:[#allocation99_spill] sm:$0xff]  ;;  %v4718_v20 = vld [vmem:[#allocation65_spill] sm:$0xff]  ;;  %v4719_v36 = vld [vmem:[#allocation66_spill] sm:$0xff] }
 0x1c4   : > { %v3631_v22 = vsel %vm523_vm7, %v4713_v53, %v900_v11  ;;  %v919_v8 = vrot.slane %v915_v3, 6  ;;  %v1712_v47 = vmul.f32 %v3317_v59, %v4696_v62  ;;  %v1713_v34 = vmul.f32 %v3413_v32, %v4696_v62  ;;  %1599 = vrot.lane.b32.xlu1 %v3537_v0, %s2595_s15 }
 0x1c5   : > { %v3640_v37 = vsel %vm541_vm8, %v1672_v13, %v1673_v50  ;;  %v1700_v61 = vadd.f32 %v1698_v60, %v1694_v21  ;;  %v1716_v25 = vmul.f32 %v3315_v58, %v2933_v44  ;;  %v1717_v26 = vmul.f32 %v3411_v46, %v2933_v44 }
 0x1c6   : > { %v4715_v54 = vrot.slane %v4714_v42, 6  ;;  %v1703_v10 = vrot.slane %v1699_v30, 1  ;;  %v940_v57 = vmul.f32 %v4716_v39, %v3258_v63  ;;  %v944_v5 = vmul.f32 %v4717_v48, %v3256_v41  ;;  %845 = vrot.lane.b32.xlu0 %v3550_v14, %s2596_s14  ;;  %v4723_v42 = vld [vmem:[#allocation102_spill] sm:$0xff] }
 0x1c7   : > { %v1704_v6 = vrot.slane %v1700_v61, 1  ;;  %v1718_v44 = vadd.f32 %v1716_v25, %v1712_v47  ;;  %v1719_v38 = vadd.f32 %v1717_v26, %v1713_v34  ;;  %v1731_v9 = vmul.f32 %v3317_v59, %v2936_v45  ;;  %v4720_v34 = vld [vmem:[#allocation67_spill] sm:$0xff]  ;;  %v4722_v26 = vld [vmem:[#allocation101_spill] sm:$0xff] }
 0x1c8   : > { %v3653_v62 = vsel %vm541_vm8, %v4715_v54, %v919_v8  ;;  %v946_v12 = vadd.f32 %v944_v5, %v940_v57  ;;  %v1732_v0 = vmul.f32 %v3413_v32, %v2936_v45  ;;  %v1735_v15 = vmul.f32 %v3315_v58, %v4698_v7  ;;  %1618 = vrot.lane.b32.xlu1 %v3570_v51, %s2595_s15 }
 0x1c9   : > { %v1736_v52 = vmul.f32 %v3411_v46, %v4698_v7  ;;  %v3668_v18 = vsel %vm451_vm3, %v1703_v10, %v1704_v6  ;;  %v1722_v19 = vrot.slane %v1718_v44, 2  ;;  %v1723_v11 = vrot.slane %v1719_v38, 2 }
 0x1ca   : > { %v959_v16 = vmul.f32 %v4718_v20, %v3258_v63  ;;  %v950_v45 = vrot.slane %v946_v12, 1  ;;  %v1737_v21 = vadd.f32 %v1735_v15, %v1731_v9  ;;  %v963_v7 = vmul.f32 %v4719_v36, %v3256_v41  ;;  %864 = vrot.lane.b32.xlu0 %v3575_v24, %s2596_s14  ;;  %v4725_v15 = vld [vmem:[#allocation105_spill] sm:$0xff] }
 0x1cb   : > { %v1738_v3 = vadd.f32 %v1736_v52, %v1732_v0  ;;  %v3681_v29 = vsel %vm469_vm4, %v1722_v19, %v1723_v11  ;;  %v1750_v53 = vmul.f32 %v3317_v59, %v4700_v28  ;;  %v1751_v14 = vmul.f32 %v3413_v32, %v4700_v28  ;;  %v4721_v28 = vld [vmem:[#allocation68_spill] sm:$0xff]  ;;  %v4724_v0 = vld [vmem:[#allocation103_spill] sm:$0xff]  ;;  %v4726_v19 = vld [vmem:[#allocation69_spill] sm:$0xff] }
 0x1cc   : > { %v1754_v51 = vmul.f32 %v3315_v58, %v4701_v33  ;;  %v3692_v13 = vsel %vm451_vm3, %v949_v43, %v950_v45  ;;  %v1741_v50 = vrot.slane %v1737_v21, 3  ;;  %v965_v8 = vadd.f32 %v963_v7, %v959_v16  ;;  %1637 = vrot.lane.b32.xlu1 %v3594_v1, %s2595_s15  ;;  %v4727_v11 = vld [vmem:[#allocation70_spill] sm:$0xff]  ;;  %v4729_v7 = vld [vmem:[#allocation107_spill] sm:$0xff] }
 0x1cd   : > { %v1742_v60 = vrot.slane %v1738_v3, 3  ;;  %v1755_v30 = vmul.f32 %v3411_v46, %v4701_v33  ;;  %v978_v61 = vmul.f32 %v4720_v34, %v3258_v63  ;;  %v982_v25 = vmul.f32 %v4721_v28, %v3256_v41  ;;  %v4728_v3 = vld [vmem:[#allocation106_spill] sm:$0xff] }
 0x1ce   : > { %v1756_v47 = vadd.f32 %v1754_v51, %v1750_v53  ;;  %v969_v43 = vrot.slane %v965_v8, 2  ;;  %v983_v33 = vadd.f32 %v4723_v42, %v4722_v26  ;;  %v1769_v54 = vmul.f32 %v3317_v59, %v4706_v55  ;;  %883 = vrot.lane.b32.xlu0 %v3599_v35, %s2596_s14  ;;  %v4730_v35 = vld [vmem:[#allocation89_spill] sm:$0xff] }
 0x1cf   : > { %v3705_v4 = vsel %vm487_vm5, %v1741_v50, %v1742_v60  ;;  %v1757_v10 = vadd.f32 %v1755_v30, %v1751_v14  ;;  %v984_v5 = vadd.f32 %v982_v25, %v978_v61  ;;  %v1770_v24 = vmul.f32 %v3413_v32, %v4706_v55  ;;  %v4731_v14 = vld [vmem:[#allocation71_spill] sm:$0xff]  ;;  %v4733_v61 = vld [vmem:[#allocation72_spill] sm:$0xff]  ;;  %v4734_v26 = vld [vmem:[#allocation73_spill] sm:$0xff] }
 0x1d0   : > { %v1760_v57 = vrot.slane %v1756_v47, 4  ;;  %v3716_v1 = vsel %vm469_vm4, %v968_v23, %v969_v43  ;;  %v987_v6 = vrot.slane %v983_v33, 3  ;;  %v1773_v44 = vmul.f32 %v3315_v58, %v4707_v31  ;;  %1656 = vrot.lane.b32.xlu1 %v3621_v40, %s2595_s15  ;;  %v4732_v47 = vld [vmem:[#allocation88_spill] sm:$0xff] }
 0x1d1   : > { %v1774_v38 = vmul.f32 %v3411_v46, %v4707_v31  ;;  %v1761_v9 = vrot.slane %v1757_v10, 4  ;;  %v988_v12 = vrot.slane %v984_v5, 3  ;;  %v437_v52 = vadd.f32 %v4725_v15, %v4724_v0  ;;  %v4737_v0 = vld [vmem:[#allocation76_spill] sm:$0xff] }
 0x1d2   : > { %v442_v55 = vmul.f32 %v4726_v19, %v3258_v63  ;;  %v1775_v56 = vadd.f32 %v1773_v44, %v1769_v54  ;;  %v446_v16 = vmul.f32 %v4727_v11, %v3256_v41  ;;  %v3733_v31 = vstv %s3678_s26  ;;  %902 = vrot.lane.b32.xlu0 %v3631_v22, %s2596_s14  ;;  %v4736_v22 = vld [vmem:[#allocation75_spill] sm:$0xff] }
 0x1d3   : > { %v1776_v23 = vadd.f32 %v1774_v38, %v1770_v24  ;;  %v3736_v45 = vsel %vm505_vm6, %v1760_v57, %v1761_v9  ;;  %v3739_v21 = vsel %vm487_vm5, %v987_v6, %v988_v12  ;;  %v447_v53 = vadd.f32 %v4729_v7, %v4728_v3  ;;  %v4735_v57 = vld [vmem:[#allocation74_spill] sm:$0xff] }
 0x1d4   : > { %v459_v51 = vmul.f32 %v4731_v14, %v4730_v35  ;;  %v1779_v40 = vrot.slane %v1775_v56, 5  ;;  %v448_v60 = vadd.f32 %v446_v16, %v442_v55  ;;  %v460_v8 = vmul.f32 %v4731_v14, %v3258_v63  ;;  %1675 = vrot.lane.b32.xlu1 %v3640_v37, %s2595_s15 }
 0x1d5   : > { %v1780_v50 = vrot.slane %v1776_v23, 5  ;;  %v452_v30 = vrot.slane %v447_v53, 1  ;;  %v463_v25 = vmul.f32 %v4733_v61, %v4732_v47  ;;  %v464_v43 = vmul.f32 %v4733_v61, %v3256_v41 }
 0x1d6   : > { %v477_v42 = vmul.f32 %v4734_v26, %v4730_v35  ;;  %v453_v54 = vrot.slane %v448_v60, 1  ;;  %v478_v10 = vmul.f32 %v4734_v26, %v3258_v63  ;;  %v481_v5 = vmul.f32 %v4735_v57, %v4732_v47  ;;  %921 = vrot.lane.b32.xlu0 %v3653_v62, %s2596_s14 }
 0x1d7   : > { %v3758_v33 = vsel %vm523_vm7, %v1779_v40, %v1780_v50  ;;  %v465_v24 = vadd.f32 %v463_v25, %v459_v51  ;;  %v466_v6 = vadd.f32 %v464_v43, %v460_v8  ;;  %v482_v44 = vmul.f32 %v4735_v57, %v3256_v41  ;;  %v4738_v51 = vld [vmem:[#allocation77_spill] sm:$0xff]  ;;  %v4739_v8 = vld [vmem:[#allocation78_spill] sm:$0xff] }
 0x1d8   : > { %v495_v38 = vmul.f32 %v4736_v22, %v4730_v35  ;;  %v454_v37 = vsel %vm451_vm3, %v452_v30, %v453_v54  ;;  %v483_v9 = vadd.f32 %v481_v5, %v477_v42  ;;  %v496_v12 = vmul.f32 %v4736_v22, %v3258_v63  ;;  %1706 = vrot.lane.b32.xlu1 %v3668_v18, %s2596_s14 }
 0x1d9   : > { %v499_v15 = vmul.f32 %v4737_v0, %v4732_v47  ;;  %v456_v55 = vadd.f32 %v454_v37, %v437_v52  ;;  %v470_v56 = vrot.slane %v465_v24, 2  ;;  %v471_v23 = vrot.slane %v466_v6, 2  ;;  %v4741_v6 = vld [vmem:[#allocation100_spill] sm:$0xff]  ;;  %v3797_v37 = vld [vmem:[#allocation2 + $0x18] sm:$0xff] }
 0x1da   : > { %v484_v16 = vadd.f32 %v482_v44, %v478_v10  ;;  %v488_v3 = vrot.slane %v483_v9, 3  ;;  %v500_v7 = vmul.f32 %v4737_v0, %v3256_v41  ;;  %v513_v40 = vmul.f32 %v4738_v51, %v4730_v35  ;;  %v4740_v10 = vld [vmem:[#allocation79_spill] sm:$0xff]  ;;  %933 = vrot.lane.b32.xlu0 %v4741_v6, %s2597_s4  ;;  %v4742_v9 = vld [vmem:[#allocation80_spill] sm:$0xff] }
 0x1db   : > { %v501_v53 = vadd.f32 %v499_v15, %v495_v38  ;;  %v472_v50 = vsel %vm469_vm4, %v470_v56, %v471_v23  ;;  %v514_v60 = vmul.f32 %v4738_v51, %v3258_v63  ;;  %v517_v62 = vmul.f32 %v4739_v8, %v4732_v47  ;;  %v4743_v56 = vld [vmem:[#allocation81_spill] sm:$0xff] }
 0x1dc   : > { %v489_v52 = vrot.slane %v484_v16, 3  ;;  %v474_v30 = vadd.f32 %v472_v50, %v456_v55  ;;  %v502_v25 = vadd.f32 %v500_v7, %v496_v12  ;;  %v518_v43 = vmul.f32 %v4739_v8, %v3256_v41  ;;  %1725 = vrot.lane.b32.xlu1 %v3681_v29, %s2596_s14  ;;  %v3805_v55 = vld [vmem:[#allocation2] sm:$0xff] }
 0x1dd   : > { %v506_v18 = vrot.slane %v501_v53, 4  ;;  %v519_v54 = vadd.f32 %v517_v62, %v513_v40  ;;  %v531_v5 = vmul.f32 %v4740_v10, %v4730_v35  ;;  %v532_v24 = vmul.f32 %v4740_v10, %v3258_v63  ;;  %v4744_v53 = vld [vmem:[#allocation82_spill] sm:$0xff] }
 0x1de   : > { %v490_v42 = vsel %vm487_vm5, %v488_v3, %v489_v52  ;;  %v507_v44 = vrot.slane %v502_v25, 4  ;;  %v520_v38 = vadd.f32 %v518_v43, %v514_v60  ;;  %v535_v12 = vmul.f32 %v3797_v37, %v4742_v9  ;;  %952 = vrot.lane.b32.xlu0 %v3692_v13, %s2597_s4 }
 0x1df   : > { %v492_v47 = vadd.f32 %v490_v42, %v474_v30  ;;  %v524_v35 = vrot.slane %v519_v54, 5  ;;  %v536_v15 = vmul.f32 %v4742_v9, %v3256_v41  ;;  %v996_v23 = vmul.f32 %v3805_v55, %v4743_v56 }
 0x1e0   : > { %v997_v29 = vmul.f32 %v4743_v56, %v3258_v63  ;;  %v508_v16 = vsel %vm505_vm6, %v506_v18, %v507_v44  ;;  %v525_v3 = vrot.slane %v520_v38, 5  ;;  %v537_v7 = vadd.f32 %v535_v12, %v531_v5  ;;  %1744 = vrot.lane.b32.xlu1 %v3705_v4, %s2596_s14 }
 0x1e1   : > { %v1000_v40 = vmul.f32 %v3797_v37, %v4744_v53  ;;  %v510_v50 = vadd.f32 %v508_v16, %v492_v47  ;;  %v538_v52 = vadd.f32 %v536_v15, %v532_v24  ;;  %v1001_v60 = vmul.f32 %v4744_v53, %v3256_v41  ;;  %v4745_v47 = vld [vmem:[#allocation83_spill] sm:$0xff] }
 0x1e2   : > { %v1788_v62 = vmul.f32 %v3317_v59, %v4710_v17  ;;  %v526_v30 = vsel %vm523_vm7, %v524_v35, %v525_v3  ;;  %v542_v25 = vrot.slane %v537_v7, 6  ;;  %v1789_v43 = vmul.f32 %v3413_v32, %v4710_v17  ;;  %v4746_v35 = vld [vmem:[#allocation84_spill] sm:$0xff]  ;;  %971 = vrot.lane.b32.xlu0 %v3716_v1, %s2597_s4 }
 0x1e3   : > { %v1002_v18 = vadd.f32 %v1000_v40, %v996_v23  ;;  %v528_v42 = vadd.f32 %v526_v30, %v510_v50  ;;  %v543_v54 = vrot.slane %v538_v52, 6  ;;  %v1003_v5 = vadd.f32 %v1001_v60, %v997_v29  ;;  %v4749_v30 = vld [vmem:[#allocation85_spill] sm:$0xff] }
 0x1e4   : > { %v1792_v24 = vmul.f32 %v3315_v58, %v4711_v27  ;;  %v1793_v13 = vmul.f32 %v3411_v46, %v4711_v27  ;;  %v1015_v4 = vmul.f32 %v3805_v55, %v4745_v47  ;;  %v1016_v44 = vmul.f32 %v4745_v47, %v3258_v63  ;;  %1763 = vrot.lane.b32.xlu1 %v3736_v45, %s2596_s14 }
 0x1e5   : > { %v1006_v6 = vrot.slane %v1002_v18, 4  ;;  %v544_v17 = vsel %vm541_vm8, %v542_v25, %v543_v54  ;;  %v1007_v38 = vrot.slane %v1003_v5, 4  ;;  %v1019_v15 = vmul.f32 %v3797_v37, %v4746_v35 }
 0x1e6   : > { %v1794_v12 = vadd.f32 %v1792_v24, %v1788_v62  ;;  %v546_v27 = vadd.f32 %v544_v17, %v528_v42  ;;  %v1795_v23 = vadd.f32 %v1793_v13, %v1789_v43  ;;  %v1020_v29 = vmul.f32 %v4746_v35, %v3256_v41  ;;  %v4750_v42 = vld [vmem:[#allocation86_spill] sm:$0xff]  ;;  %990 = vrot.lane.b32.xlu0 %v3739_v21, %s2597_s4 }
 0x1e7   : > { %v3843_v16 = vstv %s3801_s16  ;;  %v1008_v3 = vsel %vm505_vm6, %v1006_v6, %v1007_v38  ;;  %v1021_v40 = vadd.f32 %v1019_v15, %v1015_v4  ;;  %v4747_v50 = vstv %s4586_s25  ;;  %s3869_s25 = sld [smem:[#allocation3 + $0x2f]] }
 0x1e8   : > { %v1798_v7 = vrot.slane %v1794_v12, 6  ;;  %v1807_v52 = vmul.f32 %v3317_v59, %v4747_v50  ;;  %v1799_v1 = vrot.slane %v1795_v23, 6  ;;  %v1022_v60 = vadd.f32 %v1020_v29, %v1016_v44  ;;  %1782 = vrot.lane.b32.xlu1 %v3758_v33, %s2596_s14 }
 0x1e9   : > { %v4748_v62 = vstv %s4588_s17  ;;  %v1034_v25 = vmul.f32 %v3805_v55, %v4749_v30  ;;  %v1025_v18 = vrot.slane %v1021_v40, 5  ;;  %v1035_v43 = vmul.f32 %v4749_v30, %v3258_v63  ;;  %s3893_s17 = sld [smem:[#allocation3 + $0x60]] }
 0x1ea   : > { %v1810_v45 = vmul.f32 %v3315_v58, %v4748_v62  ;;  %v1038_v54 = vmul.f32 %v3797_v37, %v4750_v42  ;;  %v1039_v5 = vmul.f32 %v4750_v42, %v3256_v41  ;;  %v1800_v24 = vsel %vm541_vm8, %v1798_v7, %v1799_v1  ;;  %v556_v40 = vpop.permute.xlu0 %555  ;;  %1009 = vrot.lane.b32.xlu0 %v1008_v3, %s2597_s4 }
 0x1eb   : > { %v1026_v6 = vrot.slane %v1022_v60, 5  ;;  %v1819_v4 = vmul.f32 %v3317_v59, %v4716_v39  ;;  %v1820_v38 = vmul.f32 %v3413_v32, %v4716_v39  ;;  %v1823_v21 = vmul.f32 %v3315_v58, %v4717_v48 }
 0x1ec   : > { %v1811_v13 = vadd.f32 %v1810_v45, %v1807_v52  ;;  %v1040_v44 = vadd.f32 %v1038_v54, %v1034_v25  ;;  %v1041_v17 = vadd.f32 %v1039_v5, %v1035_v43  ;;  %v1824_v12 = vmul.f32 %v3411_v46, %v4717_v48  ;;  %1801 = vrot.lane.b32.xlu1 %v1800_v24, %s2596_s14  ;;  %v4753_v5 = vld [vmem:[#allocation87_spill] sm:$0xff] }
 0x1ed   : > { %v1027_v33 = vsel %vm523_vm7, %v1025_v18, %v1026_v6  ;;  %v4751_v15 = vstv %s4620_s29  ;;  %v4752_v29 = vstv %s4622_s28  ;;  %v1825_v1 = vadd.f32 %v1823_v21, %v1819_v4 }
 0x1ee   : > { %v1053_v23 = vmul.f32 %v3805_v55, %v4751_v15  ;;  %v1056_v7 = vmul.f32 %v3797_v37, %v4752_v29  ;;  %v1044_v50 = vrot.slane %v1040_v44, 6  ;;  %v1045_v52 = vrot.slane %v1041_v17, 6  ;;  %v4754_v44 = vld [vmem:[#allocation90_spill] sm:$0xff]  ;;  %1028 = vrot.lane.b32.xlu0 %v1027_v33, %s2597_s4 }
 0x1ef   : > { %v1838_v39 = vmul.f32 %v3317_v59, %v4718_v20  ;;  %v3886_v60 = vadd.f32 %v556_v40, %v546_v27  ;;  %v1826_v48 = vadd.f32 %v1824_v12, %v1820_v38  ;;  %v3891_v45 = vstv %s3845_s6 }
 0x1f0   : > { %v1057_v62 = vadd.f32 %v1056_v7, %v1053_v23  ;;  %v1046_v25 = vsel %vm541_vm8, %v1044_v50, %v1045_v52  ;;  %v1829_v18 = vrot.slane %v1825_v1, 1  ;;  %v1839_v43 = vmul.f32 %v3413_v32, %v4718_v20  ;;  %1813 = vrot.lane.b32.xlu1 %v1811_v13, %s2597_s4  ;;  %v4755_v13 = vld [vmem:[#allocation91_spill] sm:$0xff] }
 0x1f1   : > { %v1842_v27 = vmul.f32 %v3315_v58, %v4719_v36  ;;  %v1830_v54 = vrot.slane %v1826_v48, 1  ;;  %v1843_v3 = vmul.f32 %v3411_v46, %v4719_v36  ;;  %v1065_v24 = vmul.f32 %v3805_v55, %v4753_v5 }
 0x1f2   : > { %v1066_v6 = vmul.f32 %v4753_v5, %v3258_v63  ;;  %v1069_v17 = vmul.f32 %v3797_v37, %v4754_v44  ;;  %v1070_v20 = vmul.f32 %v4754_v44, %v3256_v41  ;;  %v1857_v38 = vmul.f32 %v3317_v59, %v4720_v34  ;;  %1047 = vrot.lane.b32.xlu0 %v1046_v25, %s2597_s4 }
 0x1f3   : > { %v1844_v4 = vadd.f32 %v1842_v27, %v1838_v39  ;;  %v1831_v36 = vsel %vm451_vm3, %v1829_v18, %v1830_v54  ;;  %v1845_v21 = vadd.f32 %v1843_v3, %v1839_v43  ;;  %v1858_v12 = vmul.f32 %v3413_v32, %v4720_v34  ;;  %v4756_v18 = vld [vmem:[#allocation92_spill] sm:$0xff] }
 0x1f4   : > { %v3918_v15 = vstv %s3869_s25  ;;  %v1071_v29 = vadd.f32 %v1069_v17, %v1065_v24  ;;  %v1072_v7 = vadd.f32 %v1070_v20, %v1066_v6  ;;  %v1861_v40 = vmul.f32 %v3315_v58, %v4721_v28  ;;  %1832 = vrot.lane.b32.xlu1 %v1831_v36, %s2597_s4 }
 0x1f5   : > { %v1848_v23 = vrot.slane %v1844_v4, 2  ;;  %v1849_v50 = vrot.slane %v1845_v21, 2  ;;  %v1862_v33 = vmul.f32 %v3411_v46, %v4721_v28  ;;  %v1084_v52 = vmul.f32 %v3805_v55, %v4755_v13 }
 0x1f6   : > { %v1085_v1 = vmul.f32 %v4755_v13, %v3258_v63  ;;  %v1075_v34 = vrot.slane %v1071_v29, 1  ;;  %v1076_v39 = vrot.slane %v1072_v7, 1  ;;  %v1863_v48 = vadd.f32 %v1861_v40, %v1857_v38  ;;  %1059 = vrot.lane.b32.xlu0 %v1057_v62, %s2598_s8 }
 0x1f7   : > { %v1088_v43 = vmul.f32 %v3797_v37, %v4756_v18  ;;  %v1850_v27 = vsel %vm469_vm4, %v1848_v23, %v1849_v50  ;;  %v1864_v54 = vadd.f32 %v1862_v33, %v1858_v12  ;;  %v1089_v28 = vmul.f32 %v4756_v18, %v3256_v41  ;;  %v4757_v12 = vld [vmem:[#allocation93_spill] sm:$0xff] }
 0x1f8   : > { %v3936_v3 = vstv %s3893_s17  ;;  %v1077_v24 = vsel %vm451_vm3, %v1075_v34, %v1076_v39  ;;  %v1867_v6 = vrot.slane %v1863_v48, 3  ;;  %v1876_v17 = vmul.f32 %v3317_v59, %v4743_v56  ;;  %1851 = vrot.lane.b32.xlu1 %v1850_v27, %s2597_s4 }
 0x1f9   : > { %v1090_v4 = vadd.f32 %v1088_v43, %v1084_v52  ;;  %v1868_v20 = vrot.slane %v1864_v54, 3  ;;  %v1091_v38 = vadd.f32 %v1089_v28, %v1085_v1  ;;  %v1877_v25 = vmul.f32 %v3413_v32, %v4743_v56 }
 0x1fa   : > { %v1880_v36 = vmul.f32 %v3315_v58, %v4744_v53  ;;  %v1881_v41 = vmul.f32 %v3411_v46, %v4744_v53  ;;  %v1103_v23 = vmul.f32 %v3805_v55, %v4757_v12  ;;  %v1104_v29 = vmul.f32 %v4757_v12, %v3258_v63  ;;  %v3956_v53 = vld [vmem:[#allocation2 + $0x20] sm:$0x3f]  ;;  %1078 = vrot.lane.b32.xlu0 %v1077_v24, %s2598_s8 }
 0x1fb   : > { %v1094_v21 = vrot.slane %v1090_v4, 2  ;;  %v1869_v56 = vsel %vm487_vm5, %v1867_v6, %v1868_v20  ;;  %v1095_v7 = vrot.slane %v1091_v38, 2  ;;  %v1107_v50 = vmul.f32 %v3797_v37, %v3602_v2  ;;  %v3971_v6 = vpop.permute.xlu0 %681 }
 0x1fc   : > { %v1882_v40 = vadd.f32 %v1880_v36, %v1876_v17  ;;  %v1883_v33 = vadd.f32 %v1881_v41, %v1877_v25  ;;  %v1108_v52 = vmul.f32 %v3956_v53, %v3602_v2  ;;  %v1895_v63 = vmul.f32 %v3317_v59, %v4745_v47  ;;  %1870 = vrot.lane.b32.xlu1 %v1869_v56, %s2597_s4  ;;  %v3975_v17 = vld [vmem:[#allocation2 + $0x8] sm:$0x3f] }
 0x1fd   : > { %v1896_v62 = vmul.f32 %v3413_v32, %v4745_v47  ;;  %v1096_v1 = vsel %vm469_vm4, %v1094_v21, %v1095_v7  ;;  %v1109_v39 = vadd.f32 %v1107_v50, %v1103_v23  ;;  %v1899_v48 = vmul.f32 %v3315_v58, %v4746_v35 }
 0x1fe   : > { %v1886_v34 = vrot.slane %v1882_v40, 4  ;;  %v1887_v43 = vrot.slane %v1883_v33, 4  ;;  %v1110_v27 = vadd.f32 %v1108_v52, %v1104_v29  ;;  %v1900_v54 = vmul.f32 %v3411_v46, %v4746_v35  ;;  %1097 = vrot.lane.b32.xlu0 %v1096_v1, %s2598_s8 }
 0x1ff   : > { %v1122_v28 = vmul.f32 %v3805_v55, %v3626_v49  ;;  %v1113_v47 = vrot.slane %v1109_v39, 3  ;;  %v1901_v4 = vadd.f32 %v1899_v48, %v1895_v63  ;;  %v1123_v20 = vmul.f32 %v3975_v17, %v3626_v49 }
 0x200   : > { %v1126_v38 = vmul.f32 %v3797_v37, %v3733_v31  ;;  %v1888_v35 = vsel %vm505_vm6, %v1886_v34, %v1887_v43  ;;  %v1114_v25 = vrot.slane %v1110_v27, 3  ;;  %v1902_v36 = vadd.f32 %v1900_v54, %v1896_v62  ;;  %v3998_v62 = vld [vmem:[#allocation2 + $0x20] sm:$0xff]  ;;  %v4007_v43 = vpop.permute.xlu0 %807 }
 0x201   : > { %v1127_v24 = vmul.f32 %v3956_v53, %v3733_v31  ;;  %v1905_v21 = vrot.slane %v1901_v4, 5  ;;  %v1914_v23 = vmul.f32 %v3317_v59, %v4749_v30  ;;  %v1915_v29 = vmul.f32 %v3413_v32, %v4749_v30  ;;  %1889 = vrot.lane.b32.xlu1 %v1888_v35, %s2597_s4 }
 0x202   : > { %v1128_v41 = vadd.f32 %v1126_v38, %v1122_v28  ;;  %v1115_v56 = vsel %vm487_vm5, %v1113_v47, %v1114_v25  ;;  %v1906_v7 = vrot.slane %v1902_v36, 5  ;;  %v1918_v50 = vmul.f32 %v3315_v58, %v4750_v42  ;;  %v4032_v36 = vld [vmem:[#allocation2 + $0x8] sm:$0xff] }
 0x203   : > { %v1129_v40 = vadd.f32 %v1127_v24, %v1123_v20  ;;  %v1919_v52 = vmul.f32 %v3411_v46, %v4750_v42  ;;  %v4758_v63 = vstv %s2791_s12  ;;  %v1331_v30 = vmul.f32 %v3998_v62, %v4727_v11  ;;  %1116 = vrot.lane.b32.xlu0 %v1115_v56, %s2598_s8  ;;  %s4096_s12 = sld [smem:[#allocation3 + $0xd]] }
 0x204   : > { %v1132_v33 = vrot.slane %v1128_v41, 4  ;;  %v1322_v59 = vmul.f32 %v3315_v58, %v4758_v63  ;;  %v1907_v34 = vsel %vm523_vm7, %v1905_v21, %v1906_v7  ;;  %v1920_v1 = vadd.f32 %v1918_v50, %v1914_v23  ;;  %v575_v41 = vpop.permute.xlu0 %574 }
 0x205   : > { %v1133_v39 = vrot.slane %v1129_v40, 4  ;;  %v1332_v48 = vmul.f32 %v3411_v46, %v4727_v11  ;;  %v1921_v42 = vadd.f32 %v1919_v52, %v1915_v29  ;;  %v1348_v58 = vmul.f32 %v3998_v62, %v4733_v61  ;;  %1908 = vrot.lane.b32.xlu1 %v1907_v34, %s2597_s4 }
 0x206   : > { %v1349_v27 = vmul.f32 %v3411_v46, %v4733_v61  ;;  %v1365_v54 = vmul.f32 %v3998_v62, %v4735_v57  ;;  %v1924_v47 = vrot.slane %v1920_v1, 6  ;;  %v1366_v4 = vmul.f32 %v3411_v46, %v4735_v57 }
 0x207   : > { %v1134_v28 = vsel %vm505_vm6, %v1132_v33, %v1133_v39  ;;  %v1382_v11 = vmul.f32 %v3998_v62, %v4737_v0  ;;  %v1925_v20 = vrot.slane %v1921_v42, 6  ;;  %v1383_v61 = vmul.f32 %v3411_v46, %v4737_v0 }
 0x208   : > { %v1399_v38 = vmul.f32 %v3998_v62, %v4739_v8  ;;  %v1400_v35 = vmul.f32 %v3411_v46, %v4739_v8  ;;  %v1416_v57 = vmul.f32 %v3998_v62, %v4742_v9  ;;  %v1417_v25 = vmul.f32 %v3411_v46, %v4742_v9  ;;  %1135 = vrot.lane.b32.xlu0 %v1134_v28, %s2598_s8 }
 0x209   : > { %v4759_v24 = vstv %s2789_s3  ;;  %v1327_v0 = vmul.f32 %v4032_v36, %v4726_v19  ;;  %v1926_v23 = vsel %vm541_vm8, %v1924_v47, %v1925_v20  ;;  %v1328_v8 = vmul.f32 %v3413_v32, %v4726_v19  ;;  %s4087_s3 = sld [smem:[#allocation3 + $0x37]] }
 0x20a   : > { %v1319_v21 = vmul.f32 %v4032_v36, %v4759_v24  ;;  %v1344_v29 = vmul.f32 %v4032_v36, %v4731_v14  ;;  %v1345_v46 = vmul.f32 %v3413_v32, %v4731_v14  ;;  %v577_v9 = vadd.f32 %v575_v41, %v3886_v60  ;;  %1927 = vrot.lane.b32.xlu1 %v1926_v23, %s2597_s4 }
 0x20b   : > { %v1333_v7 = vadd.f32 %v1331_v30, %v1327_v0  ;;  %v1361_v40 = vmul.f32 %v4032_v36, %v4734_v26  ;;  %v1334_v50 = vadd.f32 %v1332_v48, %v1328_v8  ;;  %v1178_v52 = vstv %s4002_s27  ;;  %v4058_v48 = vpop.permute.xlu1 %1435 }
 0x20c   : > { %v1323_v56 = vadd.f32 %v1322_v59, %v1319_v21  ;;  %v1350_v33 = vadd.f32 %v1348_v58, %v1344_v29  ;;  %v1351_v19 = vadd.f32 %v1349_v27, %v1345_v46  ;;  %v1362_v34 = vmul.f32 %v3413_v32, %v4734_v26  ;;  %v594_v59 = vpop.permute.xlu0 %593 }
 0x20d   : > { %v1337_v63 = vrot.slane %v1333_v7, 1  ;;  %v1367_v14 = vadd.f32 %v1365_v54, %v1361_v40  ;;  %v1378_v60 = vmul.f32 %v4032_v36, %v4736_v22  ;;  %v1338_v30 = vrot.slane %v1334_v50, 1 }
 0x20e   : > { %v1354_v39 = vrot.slane %v1350_v33, 2  ;;  %v1355_v1 = vrot.slane %v1351_v19, 2  ;;  %v1379_v42 = vmul.f32 %v3413_v32, %v4736_v22  ;;  %v596_v28 = vadd.f32 %v594_v59, %v577_v9 }
 0x20f   : > { %v1368_v58 = vadd.f32 %v1366_v4, %v1362_v34  ;;  %v1371_v27 = vrot.slane %v1367_v14, 3  ;;  %v1384_v47 = vadd.f32 %v1382_v11, %v1378_v60  ;;  %v1339_v20 = vsel %vm451_vm3, %v1337_v63, %v1338_v30  ;;  %v4068_v11 = vld [vmem:[#allocation2 + $0x10] sm:$0x3f]  ;;  %v4076_v50 = vpop.permute.xlu1 %1561 }
 0x210   : > { %v1356_v26 = vsel %vm469_vm4, %v1354_v39, %v1355_v1  ;;  %v1385_v54 = vadd.f32 %v1383_v61, %v1379_v42  ;;  %v1395_v24 = vmul.f32 %v4032_v36, %v4738_v51  ;;  %v1341_v21 = vadd.f32 %v1339_v20, %v1323_v56  ;;  %v613_v61 = vpop.permute.xlu0 %612 }
 0x211   : > { %v1372_v0 = vrot.slane %v1368_v58, 3  ;;  %v1388_v41 = vrot.slane %v1384_v47, 4  ;;  %v1396_v22 = vmul.f32 %v3413_v32, %v4738_v51  ;;  %v1412_v4 = vmul.f32 %v4032_v36, %v4740_v10 }
 0x212   : > { %v1389_v23 = vrot.slane %v1385_v54, 4  ;;  %v1401_v8 = vadd.f32 %v1399_v38, %v1395_v24  ;;  %v1413_v29 = vmul.f32 %v4068_v11, %v4740_v10  ;;  %v1358_v46 = vadd.f32 %v1356_v26, %v1341_v21 }
 0x213   : > { %v1373_v9 = vsel %vm487_vm5, %v1371_v27, %v1372_v0  ;;  %v1402_v56 = vadd.f32 %v1400_v35, %v1396_v22  ;;  %v1141_v7 = vmul.f32 %v3805_v55, %v3843_v16  ;;  %v1418_v38 = vadd.f32 %v1416_v57, %v1412_v4 }
 0x214   : > { %v1390_v32 = vsel %vm505_vm6, %v1388_v41, %v1389_v23  ;;  %v1405_v51 = vrot.slane %v1401_v8, 5  ;;  %v1419_v40 = vadd.f32 %v1417_v25, %v1413_v29  ;;  %v1375_v33 = vadd.f32 %v1373_v9, %v1358_v46  ;;  %v632_v59 = vpop.permute.xlu0 %631  ;;  %v4108_v23 = vpop.permute.xlu1 %1687  ;;  %v4115_v46 = vld [vmem:[#allocation2 + $0x28] sm:$0x3f] }
 0x215   : > { %v1406_v19 = vrot.slane %v1402_v56, 5  ;;  %v1142_v10 = vmul.f32 %v3975_v17, %v3843_v16  ;;  %v1145_v63 = vmul.f32 %v3797_v37, %v3891_v45  ;;  %v1422_v35 = vrot.slane %v1418_v38, 6 }
 0x216   : > { %v1423_v34 = vrot.slane %v1419_v40, 6  ;;  %v1146_v14 = vmul.f32 %v3956_v53, %v3891_v45  ;;  %v4760_v60 = vstv %s4620_s29  ;;  %v1392_v25 = vadd.f32 %v1390_v32, %v1375_v33  ;;  %s4219_s29 = sld [smem:[#allocation3 + $0x29]] }
 0x217   : > { %v1933_v57 = vmul.f32 %v4032_v36, %v4760_v60  ;;  %v1407_v30 = vsel %vm523_vm7, %v1405_v51, %v1406_v19  ;;  %v1147_v39 = vadd.f32 %v1145_v63, %v1141_v7  ;;  %v4761_v1 = vstv %s4622_s28  ;;  %s4230_s28 = sld [smem:[#allocation3 + $0x5a]] }
 0x218   : > { %v1936_v42 = vmul.f32 %v3998_v62, %v4761_v1  ;;  %v1424_v58 = vsel %vm541_vm8, %v1422_v35, %v1423_v34  ;;  %v1148_v27 = vadd.f32 %v1146_v14, %v1142_v10  ;;  %v615_v47 = vadd.f32 %v613_v61, %v596_v28  ;;  %v651_v8 = vpop.permute.xlu0 %650 }
 0x219   : > { %v1160_v20 = vmul.f32 %v3805_v55, %v3918_v15  ;;  %v1409_v26 = vadd.f32 %v1407_v30, %v1392_v25  ;;  %v1151_v54 = vrot.slane %v1147_v39, 5  ;;  %v1161_v21 = vmul.f32 %v3975_v17, %v3918_v15 }
 0x21a   : > { %v1937_v24 = vadd.f32 %v1936_v42, %v1933_v57  ;;  %v1152_v0 = vrot.slane %v1148_v27, 5  ;;  %v1164_v41 = vmul.f32 %v3797_v37, %v3936_v3  ;;  %v1165_v28 = vmul.f32 %v3956_v53, %v3936_v3  ;;  %v1455_v35 = vpop.permute.xlu1 %1454 }
 0x21b   : > { %v1945_v22 = vmul.f32 %v4032_v36, %v4753_v5  ;;  %v1426_v4 = vadd.f32 %v1424_v58, %v1409_v26  ;;  %v1946_v29 = vmul.f32 %v4068_v11, %v4753_v5  ;;  %v1949_v61 = vmul.f32 %v3998_v62, %v4754_v44 }
 0x21c   : > { %1939 = vrot.lane.b32.xlu1 %v1937_v24, %s2598_s8  ;;  %v1950_v9 = vmul.f32 %v4115_v46, %v4754_v44  ;;  %v1153_v56 = vsel %vm523_vm7, %v1151_v54, %v1152_v0  ;;  %v1166_v7 = vadd.f32 %v1164_v41, %v1160_v20  ;;  %v1167_v32 = vadd.f32 %v1165_v28, %v1161_v21  ;;  %v670_v34 = vpop.permute.xlu0 %669 }
 0x21d   : > { %v634_v51 = vadd.f32 %v632_v59, %v615_v47  ;;  %v1438_v38 = vadd.f32 %v4058_v48, %v1426_v4  ;;  %1154 = vrot.lane.b32.xlu0 %v1153_v56, %s2598_s8  ;;  %v1951_v40 = vadd.f32 %v1949_v61, %v1945_v22  ;;  %v1179_v33 = vmul.f32 %v3805_v55, %v1178_v52 }
 0x21e   : > { %v1952_v5 = vadd.f32 %v1950_v9, %v1946_v29  ;;  %v1170_v19 = vrot.slane %v1166_v7, 6  ;;  %v1171_v10 = vrot.slane %v1167_v32, 6  ;;  %v1181_v63 = vstv %s4087_s3  ;;  %v1474_v26 = vpop.permute.xlu1 %1473 }
 0x21f   : > { %v1964_v44 = vmul.f32 %v4032_v36, %v4755_v13  ;;  %v1955_v48 = vrot.slane %v1951_v40, 1  ;;  %v1182_v60 = vmul.f32 %v3797_v37, %v1181_v63  ;;  %v1965_v57 = vmul.f32 %v4068_v11, %v4755_v13 }
 0x220   : > { %v1956_v14 = vrot.slane %v1952_v5, 1  ;;  %v1172_v59 = vsel %vm541_vm8, %v1170_v19, %v1171_v10  ;;  %v1968_v25 = vmul.f32 %v3998_v62, %v4756_v18  ;;  %v1969_v30 = vmul.f32 %v4115_v46, %v4756_v18  ;;  %v701_v54 = vpop.permute.xlu0 %700 }
 0x221   : > { %v653_v39 = vadd.f32 %v651_v8, %v634_v51  ;;  %1173 = vrot.lane.b32.xlu0 %v1172_v59, %s2598_s8  ;;  %v1183_v42 = vadd.f32 %v1182_v60, %v1179_v33  ;;  %v4145_v58 = vstv %s4096_s12  ;;  %v4148_v27 = vstv %s4100_s19 }
 0x222   : > { %v1957_v1 = vsel %vm451_vm3, %v1955_v48, %v1956_v14  ;;  %v1970_v13 = vadd.f32 %v1968_v25, %v1964_v44  ;;  %v1971_v47 = vadd.f32 %v1969_v30, %v1965_v57  ;;  %v1191_v20 = vmul.f32 %v3805_v55, %v4145_v58  ;;  %v1493_v40 = vpop.permute.xlu1 %1492 }
 0x223   : > { %1958 = vrot.lane.b32.xlu1 %v1957_v1, %s2598_s8  ;;  %v1192_v18 = vmul.f32 %v3975_v17, %v4145_v58  ;;  %v1195_v24 = vmul.f32 %v3797_v37, %v4148_v27  ;;  %v1196_v21 = vmul.f32 %v3956_v53, %v4148_v27  ;;  %v1983_v0 = vmul.f32 %v4032_v36, %v4757_v12 }
 0x224   : > { %v1984_v41 = vmul.f32 %v4068_v11, %v4757_v12  ;;  %v1974_v28 = vrot.slane %v1970_v13, 2  ;;  %v1975_v22 = vrot.slane %v1971_v47, 2  ;;  %v1987_v8 = vmul.f32 %v3998_v62, %v3602_v2  ;;  %v720_v5 = vpop.permute.xlu0 %719 }
 0x225   : > { %v1988_v4 = vmul.f32 %v4115_v46, %v3602_v2  ;;  %1185 = vrot.lane.b32.xlu0 %v1183_v42, %s2599_s30  ;;  %v1197_v29 = vadd.f32 %v1195_v24, %v1191_v20  ;;  %v1198_v61 = vadd.f32 %v1196_v21, %v1192_v18  ;;  %v1457_v9 = vadd.f32 %v1455_v35, %v1438_v38 }
 0x226   : > { %v672_v12 = vadd.f32 %v670_v34, %v653_v39  ;;  %v1976_v56 = vsel %vm469_vm4, %v1974_v28, %v1975_v22  ;;  %v1989_v7 = vadd.f32 %v1987_v8, %v1983_v0  ;;  %v4174_v51 = vstv %s4128_s20  ;;  %v1512_v39 = vpop.permute.xlu1 %1511 }
 0x227   : > { %v1990_v32 = vadd.f32 %v1988_v4, %v1984_v41  ;;  %1977 = vrot.lane.b32.xlu1 %v1976_v56, %s2598_s8  ;;  %v1201_v2 = vrot.slane %v1197_v29, 1  ;;  %v1202_v33 = vrot.slane %v1198_v61, 1  ;;  %v1210_v10 = vmul.f32 %v3805_v55, %v4174_v51 }
 0x228   : > { %v684_v19 = vadd.f32 %v3971_v6, %v672_v12  ;;  %v1993_v38 = vrot.slane %v1989_v7, 3  ;;  %v1211_v35 = vmul.f32 %v3975_v17, %v4174_v51  ;;  %v4183_v34 = vstv %s4140_s7  ;;  %v739_v1 = vpop.permute.xlu0 %738 }
 0x229   : > { %v1994_v44 = vrot.slane %v1990_v32, 3  ;;  %v1203_v48 = vsel %vm451_vm3, %v1201_v2, %v1202_v33  ;;  %v1214_v14 = vmul.f32 %v3797_v37, %v4183_v34  ;;  %v1215_v60 = vmul.f32 %v3956_v53, %v4183_v34 }
 0x22a   : > { %v2002_v6 = vmul.f32 %v4032_v36, %v3626_v49  ;;  %1204 = vrot.lane.b32.xlu0 %v1203_v48, %s2599_s30  ;;  %v2003_v59 = vmul.f32 %v4068_v11, %v3626_v49  ;;  %v2006_v25 = vmul.f32 %v3998_v62, %v3733_v31  ;;  %v2007_v30 = vmul.f32 %v4115_v46, %v3733_v31  ;;  %v1531_v4 = vpop.permute.xlu1 %1530 }
 0x22b   : > { %v1995_v57 = vsel %vm487_vm5, %v1993_v38, %v1994_v44  ;;  %v1216_v42 = vadd.f32 %v1214_v14, %v1210_v10  ;;  %v1217_v13 = vadd.f32 %v1215_v60, %v1211_v35  ;;  %v1476_v47 = vadd.f32 %v1474_v26, %v1457_v9 }
 0x22c   : > { %1996 = vrot.lane.b32.xlu1 %v1995_v57, %s2598_s8  ;;  %v703_v20 = vadd.f32 %v701_v54, %v684_v19  ;;  %v2008_v18 = vadd.f32 %v2006_v25, %v2002_v6  ;;  %v2009_v24 = vadd.f32 %v2007_v30, %v2003_v59  ;;  %v4206_v21 = vstv %s4163_s21  ;;  %v4221_v29 = vpop.permute.xlu0 %757 }
 0x22d   : > { %v4209_v49 = vstv %s4169_s18  ;;  %v1220_v0 = vrot.slane %v1216_v42, 2  ;;  %v1221_v41 = vrot.slane %v1217_v13, 2  ;;  %v1229_v31 = vmul.f32 %v3805_v55, %v4206_v21 }
 0x22e   : > { %v1230_v28 = vmul.f32 %v3975_v17, %v4206_v21  ;;  %v2012_v22 = vrot.slane %v2008_v18, 4  ;;  %v2013_v8 = vrot.slane %v2009_v24, 4  ;;  %v1233_v26 = vmul.f32 %v3797_v37, %v4209_v49  ;;  %v4242_v60 = vpop.permute.xlu1 %1549 }
 0x22f   : > { %v1234_v54 = vmul.f32 %v3956_v53, %v4209_v49  ;;  %v1222_v61 = vsel %vm469_vm4, %v1220_v0, %v1221_v41  ;;  %v2021_v9 = vmul.f32 %v4032_v36, %v3843_v16  ;;  %v2022_v12 = vmul.f32 %v4068_v11, %v3843_v16 }
 0x230   : > { %v2025_v56 = vmul.f32 %v3998_v62, %v3891_v45  ;;  %1223 = vrot.lane.b32.xlu0 %v1222_v61, %s2599_s30  ;;  %v2014_v7 = vsel %vm505_vm6, %v2012_v22, %v2013_v8  ;;  %v1235_v32 = vadd.f32 %v1233_v26, %v1229_v31  ;;  %v2026_v33 = vmul.f32 %v4115_v46, %v3891_v45  ;;  %v4244_v6 = vpop.permute.xlu0 %776 }
 0x231   : > { %v1236_v2 = vadd.f32 %v1234_v54, %v1230_v28  ;;  %2015 = vrot.lane.b32.xlu1 %v2014_v7, %s2598_s8  ;;  %v1495_v10 = vadd.f32 %v1493_v40, %v1476_v47  ;;  %v722_v16 = vadd.f32 %v720_v5, %v703_v20  ;;  %v4238_v38 = vstv %s4192_s24 }
 0x232   : > { %v2027_v19 = vadd.f32 %v2025_v56, %v2021_v9  ;;  %v1239_v44 = vrot.slane %v1235_v32, 3  ;;  %v2028_v48 = vadd.f32 %v2026_v33, %v2022_v12  ;;  %v1248_v14 = vmul.f32 %v3805_v55, %v4238_v38  ;;  %v4270_v28 = vpop.permute.xlu1 %1580 }
 0x233   : > { %v1240_v35 = vrot.slane %v1236_v2, 3  ;;  %v1249_v45 = vmul.f32 %v3975_v17, %v4238_v38  ;;  %v4249_v59 = vstv %s4203_s0  ;;  %v2040_v40 = vmul.f32 %v4032_v36, %v3918_v15 }
 0x234   : > { %v2031_v57 = vrot.slane %v2027_v19, 5  ;;  %v2032_v25 = vrot.slane %v2028_v48, 5  ;;  %v1252_v30 = vmul.f32 %v3797_v37, %v4249_v59  ;;  %v1253_v42 = vmul.f32 %v3956_v53, %v4249_v59  ;;  %v796_v22 = vpop.permute.xlu0 %795 }
 0x235   : > { %v1241_v5 = vsel %vm487_vm5, %v1239_v44, %v1240_v35  ;;  %v2041_v13 = vmul.f32 %v4068_v11, %v3918_v15  ;;  %v2044_v47 = vmul.f32 %v3998_v62, %v3936_v3  ;;  %v2045_v20 = vmul.f32 %v4115_v46, %v3936_v3 }
 0x236   : > { %1242 = vrot.lane.b32.xlu0 %v1241_v5, %s2599_s30  ;;  %v1514_v18 = vadd.f32 %v1512_v39, %v1495_v10  ;;  %v2033_v24 = vsel %vm523_vm7, %v2031_v57, %v2032_v25  ;;  %v1254_v0 = vadd.f32 %v1252_v30, %v1248_v14  ;;  %v1255_v41 = vadd.f32 %v1253_v42, %v1249_v45  ;;  %v4294_v10 = vpop.permute.xlu1 %1599 }
 0x237   : > { %v741_v31 = vadd.f32 %v739_v1, %v722_v16  ;;  %2034 = vrot.lane.b32.xlu1 %v2033_v24, %s2598_s8  ;;  %v2046_v15 = vadd.f32 %v2044_v47, %v2040_v40  ;;  %v2047_v8 = vadd.f32 %v2045_v20, %v2041_v13  ;;  %v4274_v26 = vstv %s4219_s29 }
 0x238   : > { %v4277_v54 = vstv %s4230_s28  ;;  %v1258_v3 = vrot.slane %v1254_v0, 4  ;;  %v1259_v39 = vrot.slane %v1255_v41, 4  ;;  %v1267_v61 = vmul.f32 %v3805_v55, %v4274_v26  ;;  %v4296_v16 = vpop.permute.xlu0 %826 }
 0x239   : > { %v1268_v1 = vmul.f32 %v3975_v17, %v4274_v26  ;;  %v2050_v9 = vrot.slane %v2046_v15, 6  ;;  %v2051_v12 = vrot.slane %v2047_v8, 6  ;;  %v1271_v56 = vmul.f32 %v3797_v37, %v4277_v54 }
 0x23a   : > { %v1272_v7 = vmul.f32 %v3956_v53, %v4277_v54  ;;  %v1260_v32 = vsel %vm505_vm6, %v1258_v3, %v1259_v39  ;;  %v2059_v2 = vmul.f32 %v4032_v36, %v1178_v52  ;;  %v2062_v33 = vmul.f32 %v3998_v62, %v1181_v63  ;;  %v1619_v47 = vpop.permute.xlu1 %1618 }
 0x23b   : > { %v1533_v19 = vadd.f32 %v1531_v4, %v1514_v18  ;;  %1261 = vrot.lane.b32.xlu0 %v1260_v32, %s2599_s30  ;;  %v2052_v44 = vsel %vm541_vm8, %v2050_v9, %v2051_v12  ;;  %v1273_v35 = vadd.f32 %v1271_v56, %v1267_v61  ;;  %v760_v14 = vadd.f32 %v4221_v29, %v741_v31 }
 0x23c   : > { %v1274_v48 = vadd.f32 %v1272_v7, %v1268_v1  ;;  %2053 = vrot.lane.b32.xlu1 %v2052_v44, %s2598_s8  ;;  %v2063_v57 = vadd.f32 %v2062_v33, %v2059_v2  ;;  %v4303_v52 = vstv %s4253_s9  ;;  %v4306_v45 = vstv %s4260_s10  ;;  %v4322_v20 = vpop.permute.xlu0 %845 }
 0x23d   : > { %v2071_v63 = vmul.f32 %v4032_v36, %v4145_v58  ;;  %v1277_v4 = vrot.slane %v1273_v35, 5  ;;  %v1286_v5 = vmul.f32 %v3805_v55, %v4303_v52  ;;  %v1287_v25 = vmul.f32 %v3975_v17, %v4303_v52 }
 0x23e   : > { %v1278_v40 = vrot.slane %v1274_v48, 5  ;;  %v1290_v29 = vmul.f32 %v3797_v37, %v4306_v45  ;;  %v1291_v30 = vmul.f32 %v3956_v53, %v4306_v45  ;;  %v2072_v42 = vmul.f32 %v4068_v11, %v4145_v58  ;;  %v1638_v8 = vpop.permute.xlu1 %1637 }
 0x23f   : > { %v2075_v13 = vmul.f32 %v3998_v62, %v4148_v27  ;;  %v2076_v17 = vmul.f32 %v4115_v46, %v4148_v27  ;;  %v1552_v18 = vadd.f32 %v4242_v60, %v1533_v19  ;;  %v779_v37 = vadd.f32 %v4244_v6, %v760_v14 }
 0x240   : > { %v1279_v55 = vsel %vm523_vm7, %v1277_v4, %v1278_v40  ;;  %2065 = vrot.lane.b32.xlu1 %v2063_v57, %s2599_s30  ;;  %v1292_v53 = vadd.f32 %v1290_v29, %v1286_v5  ;;  %v1293_v58 = vadd.f32 %v1291_v30, %v1287_v25  ;;  %v2090_v31 = vmul.f32 %v4032_v36, %v4174_v51  ;;  %v4338_v3 = vpop.permute.xlu0 %864 }
 0x241   : > { %1280 = vrot.lane.b32.xlu0 %v1279_v55, %s2599_s30  ;;  %v2077_v24 = vadd.f32 %v2075_v13, %v2071_v63  ;;  %v2078_v0 = vadd.f32 %v2076_v17, %v2072_v42  ;;  %v1564_v41 = vadd.f32 %v4076_v50, %v1552_v18  ;;  %v2091_v27 = vmul.f32 %v4068_v11, %v4174_v51 }
 0x242   : > { %v1296_v15 = vrot.slane %v1292_v53, 6  ;;  %v1297_v60 = vrot.slane %v1293_v58, 6  ;;  %v2094_v6 = vmul.f32 %v3998_v62, %v4183_v34  ;;  %v2095_v1 = vmul.f32 %v4115_v46, %v4183_v34  ;;  %v1657_v44 = vpop.permute.xlu1 %1656 }
 0x243   : > { %v2081_v39 = vrot.slane %v2077_v24, 1  ;;  %v2082_v61 = vrot.slane %v2078_v0, 1  ;;  %v798_v50 = vadd.f32 %v796_v22, %v779_v37  ;;  %v2109_v51 = vmul.f32 %v4032_v36, %v4206_v21 }
 0x244   : > { %v1298_v9 = vsel %vm541_vm8, %v1296_v15, %v1297_v60  ;;  %v2096_v12 = vadd.f32 %v2094_v6, %v2090_v31  ;;  %v2110_v56 = vmul.f32 %v4068_v11, %v4206_v21  ;;  %v2097_v32 = vadd.f32 %v2095_v1, %v2091_v27  ;;  %v4360_v35 = vpop.permute.xlu0 %883 }
 0x245   : > { %1299 = vrot.lane.b32.xlu0 %v1298_v9, %s2599_s30  ;;  %v2083_v7 = vsel %vm451_vm3, %v2081_v39, %v2082_v61  ;;  %v2113_v2 = vmul.f32 %v3998_v62, %v4209_v49  ;;  %v2114_v34 = vmul.f32 %v4115_v46, %v4209_v49  ;;  %v1583_v33 = vadd.f32 %v4270_v28, %v1564_v41 }
 0x246   : > { %2084 = vrot.lane.b32.xlu1 %v2083_v7, %s2599_s30  ;;  %v2100_v22 = vrot.slane %v2096_v12, 2  ;;  %v4356_v19 = vadd.f32 %v4007_v43, %v798_v50  ;;  %v2128_v21 = vmul.f32 %v4032_v36, %v4238_v38  ;;  %v2101_v48 = vrot.slane %v2097_v32, 2 }
 0x247   : > { %v2115_v14 = vadd.f32 %v2113_v2, %v2109_v51  ;;  %v2116_v57 = vadd.f32 %v2114_v34, %v2110_v56  ;;  %v2129_v49 = vmul.f32 %v4068_v11, %v4238_v38  ;;  %v1602_v63 = vadd.f32 %v4294_v10, %v1583_v33  ;;  %v1676_v38 = vpop.permute.xlu1 %1675 }
 0x248   : > { %v2132_v28 = vmul.f32 %v3998_v62, %v4249_v59  ;;  %v2133_v43 = vmul.f32 %v4115_v46, %v4249_v59  ;;  %v2102_v4 = vsel %vm469_vm4, %v2100_v22, %v2101_v48  ;;  %v2148_v30 = vmul.f32 %v4068_v11, %v4274_v26  ;;  %v903_v42 = vpop.permute.xlu0 %902 }
 0x249   : > { %v2120_v40 = vrot.slane %v2116_v57, 3  ;;  %v2119_v5 = vrot.slane %v2115_v14, 3  ;;  %v1621_v29 = vadd.f32 %v1619_v47, %v1602_v63  ;;  %v2147_v13 = vmul.f32 %v4032_v36, %v4274_v26 }
 0x24a   : > { %2103 = vrot.lane.b32.xlu1 %v2102_v4, %s2599_s30  ;;  %v2135_v25 = vadd.f32 %v2133_v43, %v2129_v49  ;;  %v2134_v10 = vadd.f32 %v2132_v28, %v2128_v21  ;;  %v2151_v59 = vmul.f32 %v3998_v62, %v4277_v54  ;;  %v2152_v55 = vmul.f32 %v4115_v46, %v4277_v54 }
 0x24b   : > { %v1640_v17 = vadd.f32 %v1638_v8, %v1621_v29  ;;  %v2121_v18 = vsel %vm487_vm5, %v2119_v5, %v2120_v40  ;;  %v2167_v53 = vmul.f32 %v4068_v11, %v4303_v52  ;;  %v2171_v58 = vmul.f32 %v4115_v46, %v4306_v45  ;;  %v1707_v24 = vpop.permute.xlu1 %1706 }
 0x24c   : > { %v2139_v37 = vrot.slane %v2135_v25, 4  ;;  %v2154_v47 = vadd.f32 %v2152_v55, %v2148_v30  ;;  %v922_v0 = vpop.permute.xlu0 %921  ;;  %v2138_v41 = vrot.slane %v2134_v10, 4  ;;  %v2153_v31 = vadd.f32 %v2151_v59, %v2147_v13 }
 0x24d   : > { %v1659_v26 = vadd.f32 %v1657_v44, %v1640_v17  ;;  %v2166_v54 = vmul.f32 %v4032_v36, %v4303_v52  ;;  %v2170_v27 = vmul.f32 %v3998_v62, %v4306_v45  ;;  %v2173_v6 = vadd.f32 %v2171_v58, %v2167_v53 }
 0x24e   : > { %2122 = vrot.lane.b32.xlu1 %v2121_v18, %s2599_s30  ;;  %v2140_v60 = vsel %vm505_vm6, %v2138_v41, %v2139_v37  ;;  %v2158_v11 = vrot.slane %v2154_v47, 5  ;;  %v2157_v61 = vrot.slane %v2153_v31, 5  ;;  %v829_v43 = vadd.f32 %v4296_v16, %v4356_v19 }
 0x24f   : > { %v1678_v15 = vadd.f32 %v1676_v38, %v1659_v26  ;;  %v1726_v8 = vpop.permute.xlu1 %1725  ;;  %v2172_v1 = vadd.f32 %v2170_v27, %v2166_v54  ;;  %v2177_v9 = vrot.slane %v2173_v6, 6 }
 0x250   : > { %v934_v39 = vpop.permute.xlu0 %933  ;;  %v2159_v50 = vsel %vm523_vm7, %v2157_v61, %v2158_v11  ;;  %v848_v4 = vadd.f32 %v4322_v20, %v829_v43 }
 0x251   : > { %v1690_v46 = vadd.f32 %v4108_v23, %v1678_v15  ;;  %v2176_v52 = vrot.slane %v2172_v1, 6 }
 0x252   : > { %2141 = vrot.lane.b32.xlu1 %v2140_v60, %s2599_s30  ;;  %v867_v40 = vadd.f32 %v4338_v3, %v848_v4 }
 0x253   : > { %v1745_v36 = vpop.permute.xlu1 %1744  ;;  %v2178_v45 = vsel %vm541_vm8, %v2176_v52, %v2177_v9  ;;  %v1709_v19 = vadd.f32 %v1707_v24, %v1690_v46 }
 0x254   : > { %v953_v62 = vpop.permute.xlu0 %952  ;;  %v886_v29 = vadd.f32 %v4360_v35, %v867_v40 }
 0x255   : > { %v1728_v3 = vadd.f32 %v1726_v8, %v1709_v19 }
 0x256   : > { %2160 = vrot.lane.b32.xlu1 %v2159_v50, %s2599_s30  ;;  %v905_v30 = vadd.f32 %v903_v42, %v886_v29 }
 0x257   : > { %v1764_v12 = vpop.permute.xlu1 %1763  ;;  %v1747_v31 = vadd.f32 %v1745_v36, %v1728_v3 }
 0x258   : > { %v972_v51 = vpop.permute.xlu0 %971  ;;  %v924_v38 = vadd.f32 %v922_v0, %v905_v30 }
 0x259   : > { %v1766_v0 = vadd.f32 %v1764_v12, %v1747_v31 }
 0x25a   : > { %2179 = vrot.lane.b32.xlu1 %v2178_v45, %s2599_s30  ;;  %v936_v59 = vadd.f32 %v934_v39, %v924_v38 }
 0x25b   : > { %v1783_v56 = vpop.permute.xlu1 %1782 }
 0x25c   : > { %v991_v23 = vpop.permute.xlu0 %990  ;;  %v955_v55 = vadd.f32 %v953_v62, %v936_v59  ;;  %v1785_v27 = vadd.f32 %v1783_v56, %v1766_v0 }
 0x25e   : > { %v974_v18 = vadd.f32 %v972_v51, %v955_v55 }
 0x25f   : > { %v1802_v7 = vpop.permute.xlu1 %1801 }
 0x260   : > { %v1010_v32 = vpop.permute.xlu0 %1009  ;;  %v993_v47 = vadd.f32 %v991_v23, %v974_v18  ;;  %v1804_v11 = vadd.f32 %v1802_v7, %v1785_v27 }
 0x262   : > { %v1012_v16 = vadd.f32 %v1010_v32, %v993_v47 }
 0x263   : > { %v1814_v2 = vpop.permute.xlu1 %1813 }
 0x264   : > { %v1029_v34 = vpop.permute.xlu0 %1028  ;;  %v1816_v61 = vadd.f32 %v1814_v2, %v1804_v11 }
 0x265   : > { %v1031_v58 = vadd.f32 %v1029_v34, %v1012_v16 }
 0x267   : > { %v1833_v22 = vpop.permute.xlu1 %1832 }
 0x268   : > { %v1048_v33 = vpop.permute.xlu0 %1047  ;;  %v1835_v50 = vadd.f32 %v1833_v22, %v1816_v61 }
 0x269   : > { %v1050_v26 = vadd.f32 %v1048_v33, %v1031_v58 }
 0x26b   : > { %v1852_v21 = vpop.permute.xlu1 %1851 }
 0x26c   : > { %v1060_v44 = vpop.permute.xlu0 %1059  ;;  %v1854_v9 = vadd.f32 %v1852_v21, %v1835_v50 }
 0x26d   : > { %v1062_v42 = vadd.f32 %v1060_v44, %v1050_v26 }
 0x26f   : > { %v1871_v48 = vpop.permute.xlu1 %1870 }
 0x270   : > { %v1079_v14 = vpop.permute.xlu0 %1078  ;;  %v1873_v52 = vadd.f32 %v1871_v48, %v1854_v9 }
 0x271   : > { %v1081_v54 = vadd.f32 %v1079_v14, %v1062_v42 }
 0x273   : > { %v1890_v57 = vpop.permute.xlu1 %1889 }
 0x274   : > { %v1098_v49 = vpop.permute.xlu0 %1097  ;;  %v1892_v45 = vadd.f32 %v1890_v57, %v1873_v52 }
 0x275   : > { %v1100_v15 = vadd.f32 %v1098_v49, %v1081_v54 }
 0x277   : > { %v1909_v63 = vpop.permute.xlu1 %1908 }
 0x278   : > { %v1117_v28 = vpop.permute.xlu0 %1116  ;;  %v1911_v56 = vadd.f32 %v1909_v63, %v1892_v45 }
 0x279   : > { %v1119_v39 = vadd.f32 %v1117_v28, %v1100_v15 }
 0x27c   : > { %v1928_v5 = vpop.permute.xlu1 %1927  ;;  %v1136_v25 = vpop.permute.xlu0 %1135 }
 0x27d   : > { %v1138_v1 = vadd.f32 %v1136_v25, %v1119_v39  ;;  %v1930_v34 = vadd.f32 %v1928_v5, %v1911_v56 }
 0x28e   : > { %v1940_v10 = vpop.permute.xlu1 %1939 }
 0x28f   : > { %v1155_v13 = vpop.permute.xlu0 %1154  ;;  %v1942_v2 = vadd.f32 %v1940_v10, %v1930_v34 }
 0x290   : > { %v1157_v46 = vadd.f32 %v1155_v13, %v1138_v1 }
 0x293   : > { %v1174_v17 = vpop.permute.xlu0 %1173 }
 0x294   : > { %v1176_v62 = vadd.f32 %v1174_v17, %v1157_v46 }
 0x295   : > { %v1959_v37 = vpop.permute.xlu1 %1958 }
 0x296   : > { %v1961_v22 = vadd.f32 %v1959_v37, %v1942_v2 }
 0x297   : > { %v1186_v53 = vpop.permute.xlu0 %1185 }
 0x298   : > { %v1188_v36 = vadd.f32 %v1186_v53, %v1176_v62 }
 0x299   : > { %v1978_v20 = vpop.permute.xlu1 %1977 }
 0x29a   : > { %v1980_v28 = vadd.f32 %v1978_v20, %v1961_v22 }
 0x29c   : > { %v1205_v41 = vpop.permute.xlu0 %1204 }
 0x29d   : > { %v1207_v12 = vadd.f32 %v1205_v41, %v1188_v36 }
 0x29e   : > { %v1997_v35 = vpop.permute.xlu1 %1996 }
 0x29f   : > { %v1999_v48 = vadd.f32 %v1997_v35, %v1980_v28 }
 0x2a2   : > { %v1224_v60 = vpop.permute.xlu0 %1223 }
 0x2a3   : > { %v2016_v6 = vpop.permute.xlu1 %2015  ;;  %v1226_v32 = vadd.f32 %v1224_v60, %v1207_v12 }
 0x2a4   : > { %v2018_v57 = vadd.f32 %v2016_v6, %v1999_v48 }
 0x2a8   : > { %v1243_v24 = vpop.permute.xlu0 %1242 }
 0x2a9   : > { %v2035_v8 = vpop.permute.xlu1 %2034  ;;  %v1245_v7 = vadd.f32 %v1243_v24, %v1226_v32 }
 0x2aa   : > { %v2037_v30 = vadd.f32 %v2035_v8, %v2018_v57 }
 0x2ad   : > { %v1262_v51 = vpop.permute.xlu0 %1261 }
 0x2ae   : > { %v2054_v23 = vpop.permute.xlu1 %2053  ;;  %v1264_v14 = vadd.f32 %v1262_v51, %v1245_v7 }
 0x2af   : > { %v2056_v63 = vadd.f32 %v2054_v23, %v2037_v30 }
 0x2b2   : > { %v2066_v33 = vpop.permute.xlu1 %2065 }
 0x2b3   : > { %v1281_v44 = vpop.permute.xlu0 %1280  ;;  %v2068_v38 = vadd.f32 %v2066_v33, %v2056_v63 }
 0x2b4   : > { %v1283_v49 = vadd.f32 %v1281_v44, %v1264_v14 }
 0x2b7   : > { %v1300_v21 = vpop.permute.xlu0 %1299 }
 0x2b8   : > { %v2085_v43 = vpop.permute.xlu1 %2084  ;;  %v1302_v4 = vadd.f32 %v1300_v21, %v1283_v49 }
 0x2b9   : > { %v2087_v13 = vadd.f32 %v2085_v43, %v2068_v38 }
 0x2ba   : > { %v1303_v40 = vmax.f32 %v1302_v4, 0.0 }
 0x2bc   : > { %v2403_v25 = vmul.f32 -1.442695, %v1303_v40  ;;  %v2104_v29 = vpop.permute.xlu1 %2103 }
 0x2bd   : > { %v2106_v10 = vadd.f32 %v2104_v29, %v2087_v13 }
 0x2be   : > { %2541 = vpow2.f32 %v2403_v25 }
 0x2c0   : > { %v2123_v5 = vpop.permute.xlu1 %2122 }
 0x2c1   : > { %v2125_v55 = vadd.f32 %v2123_v5, %v2106_v10 }
 0x2c4   : > { %v2142_v59 = vpop.permute.xlu1 %2141 }
 0x2c5   : > { %v2144_v18 = vadd.f32 %v2142_v59, %v2125_v55 }
 0x2c8   : > { %v2161_v17 = vpop.permute.xlu1 %2160 }
 0x2c9   : > { %v2163_v47 = vadd.f32 %v2161_v17, %v2144_v18 }
 0x2cb   : > { %v2542_v37 = vpop.eup %2541 }
 0x2cc   : > { %v1307_v53 = vadd.f32 1.0, %v2542_v37  ;;  %v2180_v16 = vpop.permute.xlu1 %2179 }
 0x2cd   : > { %v2182_v19 = vadd.f32 %v2180_v16, %v2163_v47 }
 0x2ce   : > { %2543 = vrcp.f32 %v1307_v53 }
 0x2cf   : > { %v2183_v20 = vmax.f32 %v2182_v19, 0.0 }
 0x2d1   : > { %v2501_v58 = vmul.f32 -1.442695, %v2183_v20 }
 0x2d3   : > { %2545 = vpow2.f32 %v2501_v58 }
 0x2db   : > { %v2544_v3 = vpop.eup %2543 }
 0x2dc   : > { %v1310_v26 = vadd.f32 1.0, %v2544_v3 }
 0x2de   : > { %1312 = vst.msk [vmem:[%s4762_s11] sm:$0xff] %vm1311_vm9, %v1310_v26 }
 0x2e0   : > { %v2546_v41 = vpop.eup %2545 }
 0x2e1   : > { %v2187_v31 = vadd.f32 1.0, %v2546_v41 }
 0x2e3   : > { %2547 = vrcp.f32 %v2187_v31 }
 0x2f0   : > { %v2548_v35 = vpop.eup %2547 }
 0x2f1   : > { %v2190_v42 = vadd.f32 1.0, %v2548_v35 }
 0x2f3   : > { %2191 = vst.msk [vmem:[%s4762_s11 + $0x8] sm:$0xff] %vm1311_vm9, %v2190_v42 }
 0x2f4 PF: > { %s4763_s13 = sld [smem:[#allocation6_spill]] }
 0x2fa   : > { %s15_s12 = sadd.s32 1, %s4763_s13  }
 0x2fb   : > { %p12_p2 = scmp.ge.s32.totalorder %s15_s12, 4  }
 0x2fd   :  { %14 = sbr.rel (!%p12_p2) target bundleno = 6 (0x6), region = 80 }
 0x302   :  { %2229 = vsyncpa [#allocation4], 1 }
 0x303   :  { %2231 = vsyncpa [#allocation4 + $0x1], 1 }

</bundles_post_ra>
